<compile_context>
chip_gen: v5e
topology: v5e:2x2
jax: 0.10.0
libtpu: 0.0.40
codegen_flags: <defaults>
</compile_context>

<pallas_src>
import functools

import jax
import jax.numpy as jnp
from jax.experimental import pallas as pl
from jax.experimental.pallas import tpu as pltpu

LANE = 128        # TPU lane width; pad feature/class dims to it
NEG_INF = -1e30   # masks padded class lanes out of log_softmax


def _round_up(v, m):
    return ((v + m - 1) // m) * m


def _pad2(x, rows, cols, fill=0.0):
    r, c = x.shape
    return jnp.pad(x, ((0, rows - r), (0, cols - c)), constant_values=fill)


def _choose_tiles(n_p):
    """Pick (tile_m, tile_k) dividing n_p.

    tile_k (contiguous reduction dim of A) as large as possible (<=512) for long
    DMA bursts and full MXU K; tile_m <=256 but keeping >=2 row tiles on the
    'parallel' axis so v7x's 2 TensorCores both get work."""
    tile_k = 128
    for cand in (512, 256, 128):
        if n_p % cand == 0:
            tile_k = cand
            break
    tile_m = 128
    for cand in (256, 128):
        if n_p % cand == 0 and n_p // cand >= 2:
            tile_m = cand
            break
    return tile_m, tile_k


def _vmem_limit(usage_bytes):
    """Per-call VMEM limit: 2x margin over estimate, floor 8 MiB, cap 32 MiB
    (v7x has only 64 MiB physical VMEM per TensorCore)."""
    return int(min(32 * 1024 * 1024, max(8 * 1024 * 1024, 2 * usage_bytes)))


# -----------------------------------------------------------------------------
# Kernels
# -----------------------------------------------------------------------------

def transform_kernel(h_ref, w_ref, o_ref):
    """HW = H @ W, tiled over node rows (tiny matmul, W resident)."""
    o_ref[...] = jnp.dot(h_ref[...], w_ref[...],
                         preferred_element_type=jnp.float32).astype(o_ref.dtype)


def aggregate_kernel(a_ref, hw_ref, b_ref, o_ref, acc_ref, *, tile_k, relu):
    """out[i] = act( sum_k A[i,k] @ HW[k] + b )

    grid = (node row tiles [parallel], node reduction tiles [arbitrary]).
    HW is VMEM-resident (constant block index); only A tiles stream from HBM.
    """
    k = pl.program_id(1)

    @pl.when(k == 0)
    def _():
        acc_ref[...] = jnp.zeros_like(acc_ref)

    start = pl.multiple_of(k * tile_k, tile_k)
    acc_ref[...] += jnp.dot(a_ref[...], hw_ref[pl.ds(start, tile_k), :],
                            preferred_element_type=jnp.float32)

    @pl.when(k == pl.num_programs(1) - 1)
    def _():
        y = acc_ref[...] + b_ref[...]        # elementwise stays in f32 (v5e-safe)
        if relu:
            y = jnp.maximum(y, 0.0)
        o_ref[...] = y.astype(o_ref.dtype)


def gcn_head_kernel(pool_ref, h_ref, ge_ref, wn_ref, wg_ref, bl_ref,
                    o_ref, acc_ref):
    """global_mean_pool (P @ H) + Linear on concat([pooled, ge]) + log_softmax.
    grid = (node reduction tiles,).  Traffic here (~N*256 B) is negligible next
    to the A stream, so it stays a separate small kernel."""
    k = pl.program_id(0)

    @pl.when(k == 0)
    def _():
        acc_ref[...] = jnp.zeros_like(acc_ref)

    acc_ref[...] += jnp.dot(pool_ref[...], h_ref[...],
                            preferred_element_type=jnp.float32)

    @pl.when(k == pl.num_programs(0) - 1)
    def _():
        pooled = acc_ref[...].astype(jnp.bfloat16)
        # split-weight form of Linear(concat([pooled, ge], dim=1)) -> no concat
        z = (jnp.dot(pooled, wn_ref[...], preferred_element_type=jnp.float32)
             + jnp.dot(ge_ref[...], wg_ref[...], preferred_element_type=jnp.float32)
             + bl_ref[...])                  # padded class lanes carry -1e30 bias
        m = jnp.max(z, axis=-1, keepdims=True)
        lse = jnp.log(jnp.sum(jnp.exp(z - m), axis=-1, keepdims=True)) + m
        o_ref[...] = z - lse


# -----------------------------------------------------------------------------
# pallas_call wrappers
# -----------------------------------------------------------------------------

def _transform(h, w, *, tile_m):
    n_p, f_in = h.shape
    f_out = w.shape[1]
    usage = (2 * tile_m * f_in * 2 + 2 * f_in * f_out * 2
             + 2 * tile_m * f_out * 2)
    return pl.pallas_call(
        transform_kernel,
        out_shape=jax.ShapeDtypeStruct((n_p, f_out), jnp.bfloat16),
        grid_spec=pltpu.PrefetchScalarGridSpec(
            num_scalar_prefetch=0,
            grid=(n_p // tile_m,),
            in_specs=[
                pl.BlockSpec((tile_m, f_in), lambda i: (i, 0)),   # H row tile
                pl.BlockSpec((f_in, f_out), lambda i: (0, 0)),    # W (resident)
            ],
            out_specs=pl.BlockSpec((tile_m, f_out), lambda i: (i, 0)),
        ),
        compiler_params=pltpu.CompilerParams(
            dimension_semantics=("parallel",),
            vmem_limit_bytes=_vmem_limit(usage),
        ),
    )(h, w)


def _aggregate(a, hw, b, *, relu, tile_m, tile_k):
    n_p = a.shape[0]
    f_out = hw.shape[1]
    usage = (2 * tile_m * tile_k * 2       # double-buffered A tiles (bf16)
             + 2 * n_p * f_out * 2         # resident HW (conservative: 2 bufs)
             + tile_m * f_out * 4          # f32 accumulator
             + 2 * tile_m * f_out * 2      # double-buffered output tiles
             + 2 * 8 * f_out * 4)          # bias
    return pl.pallas_call(
        functools.partial(aggregate_kernel, tile_k=tile_k, relu=relu),
        out_shape=jax.ShapeDtypeStruct((n_p, f_out), jnp.bfloat16),
        grid_spec=pltpu.PrefetchScalarGridSpec(
            num_scalar_prefetch=0,
            grid=(n_p // tile_m, n_p // tile_k),
            in_specs=[
                pl.BlockSpec((tile_m, tile_k), lambda i, k: (i, k)),  # A stream
                pl.BlockSpec((n_p, f_out), lambda i, k: (0, 0)),      # HW resident
                pl.BlockSpec((1, f_out), lambda i, k: (0, 0)),        # bias
            ],
            out_specs=pl.BlockSpec((tile_m, f_out), lambda i, k: (i, 0)),
            scratch_shapes=[pltpu.VMEM((tile_m, f_out), jnp.float32)],
        ),
        compiler_params=pltpu.CompilerParams(
            dimension_semantics=("parallel", "arbitrary"),
            vmem_limit_bytes=_vmem_limit(usage),
        ),
    )(a, hw, b)


def _gcn_layer(a, h, w, b, *, relu, tile_m, tile_k):
    """One GCNConv: transform (HW = H @ W) then aggregate (A @ HW + b, act)."""
    hw = _transform(h, w, tile_m=tile_m)
    return _aggregate(a, hw, b, relu=relu, tile_m=tile_m, tile_k=tile_k)


def _gcn_head(pool, h, ge, wn, wg, bl, *, tile_k):
    n_p, hp = h.shape
    bg = pool.shape[0]
    gp = ge.shape[1]
    cp = wn.shape[1]
    usage = (2 * 8 * tile_k * 2 + 2 * tile_k * hp * 2 + 2 * 8 * gp * 2
             + 2 * hp * cp * 2 + 2 * gp * cp * 2 + 8 * hp * 4 + 2 * 8 * cp * 4)
    return pl.pallas_call(
        gcn_head_kernel,
        out_shape=jax.ShapeDtypeStruct((bg, cp), jnp.float32),
        grid_spec=pltpu.PrefetchScalarGridSpec(
            num_scalar_prefetch=0,
            grid=(n_p // tile_k,),
            in_specs=[
                pl.BlockSpec((bg, tile_k), lambda k: (0, k)),  # pool matrix tile
                pl.BlockSpec((tile_k, hp), lambda k: (k, 0)),  # H tile
                pl.BlockSpec((bg, gp), lambda k: (0, 0)),      # graph embedding
                pl.BlockSpec((hp, cp), lambda k: (0, 0)),      # Wl (node part)
                pl.BlockSpec((gp, cp), lambda k: (0, 0)),      # Wl (graph part)
                pl.BlockSpec((1, cp), lambda k: (0, 0)),       # bias (+ class mask)
            ],
            out_specs=pl.BlockSpec((bg, cp), lambda k: (0, 0)),
            scratch_shapes=[pltpu.VMEM((bg, hp), jnp.float32)],
        ),
        compiler_params=pltpu.CompilerParams(
            dimension_semantics=("arbitrary",),
            vmem_limit_bytes=_vmem_limit(usage),
        ),
    )(pool, h, ge, wn, wg, bl)


def gcn_forward(a_norm, x, pool, graph_embedding, params):
    """Full GCN forward. Pads node/lane dims, casts matmul operands to bf16."""
    w1, b1, w2, b2, w3, b3, wl_n, wl_g, bl = params
    n = a_norm.shape[0]
    bg = pool.shape[0]
    c = bl.shape[-1]

    n_p = _round_up(n, LANE)
    f_p = _round_up(x.shape[1], LANE)
    h_p = _round_up(w1.shape[1], LANE)
    g_p = _round_up(graph_embedding.shape[1], LANE)
    c_p = _round_up(c, LANE)

    tile_m, tile_k = _choose_tiles(n_p)

    bf = jnp.bfloat16
    a_p = _pad2(a_norm, n_p, n_p).astype(bf)
    x_p = _pad2(x, n_p, f_p).astype(bf)
    pool_p = _pad2(pool, bg, n_p).astype(bf)
    ge_p = _pad2(graph_embedding, bg, g_p).astype(bf)

    w1_p = _pad2(w1, f_p, h_p).astype(bf)
    w2_p = _pad2(w2, h_p, h_p).astype(bf)
    w3_p = _pad2(w3, h_p, h_p).astype(bf)
    b1_p = _pad2(b1, 1, h_p)
    b2_p = _pad2(b2, 1, h_p)
    b3_p = _pad2(b3, 1, h_p)
    wn_p = _pad2(wl_n, h_p, c_p).astype(bf)
    wg_p = _pad2(wl_g, g_p, c_p).astype(bf)
    # padded class lanes get a large negative bias -> exp() == 0 in log_softmax
    bl_p = jnp.full((1, c_p), NEG_INF, jnp.float32).at[0, :c].set(bl.reshape(-1))

    h = _gcn_layer(a_p, x_p, w1_p, b1_p, relu=True, tile_m=tile_m, tile_k=tile_k)
    h = _gcn_layer(a_p, h, w2_p, b2_p, relu=True, tile_m=tile_m, tile_k=tile_k)
    h = _gcn_layer(a_p, h, w3_p, b3_p, relu=False, tile_m=tile_m, tile_k=tile_k)
    out = _gcn_head(pool_p, h, ge_p, wn_p, wg_p, bl_p, tile_k=tile_k)
    return out[:, :c]


# -------------------- plain-JAX glue (graph preprocessing) --------------------

def build_norm_adj(edge_index, num_nodes):
    """Dense GCN-normalized adjacency: D^-1/2 (A + I) D^-1/2."""
    src, dst = edge_index[0], edge_index[1]
    a = jnp.zeros((num_nodes, num_nodes), jnp.float32)
    a = a.at[dst, src].add(1.0)
    a = a + jnp.eye(num_nodes, dtype=jnp.float32)        # self loops
    deg = jnp.sum(a, axis=1)
    d_inv_sqrt = jnp.where(deg > 0, 1.0 / jnp.sqrt(deg), 0.0)
    return a * d_inv_sqrt[:, None] * d_inv_sqrt[None, :]


def build_pool_matrix(batch, num_graphs):
    """P[g, i] = 1/|graph g| if node i belongs to graph g (global_mean_pool)."""
    one_hot = (batch[None, :] == jnp.arange(num_graphs)[:, None]).astype(jnp.float32)
    counts = jnp.maximum(jnp.sum(one_hot, axis=1, keepdims=True), 1.0)
    return one_hot / counts


def init_params(key, in_feats, hidden, graph_dim, num_classes):
    def glorot(k, shape):
        fan_in = shape[0]
        return (jax.random.uniform(k, shape, jnp.float32, -1.0, 1.0)
                / jnp.sqrt(jnp.float32(fan_in)))

    ks = jax.random.split(key, 8)
    w1 = glorot(ks[0], (in_feats, hidden))
    b1 = jnp.zeros((1, hidden), jnp.float32)
    w2 = glorot(ks[1], (hidden, hidden))
    b2 = jnp.zeros((1, hidden), jnp.float32)
    w3 = glorot(ks[2], (hidden, hidden))
    b3 = jnp.zeros((1, hidden), jnp.float32)
    wl_n = glorot(ks[3], (hidden, num_classes))
    wl_g = glorot(ks[4], (graph_dim, num_classes))
    bl = glorot(ks[5], (1, num_classes))
    return (w1, b1, w2, b2, w3, b3, wl_n, wl_g, bl)


def gcn_reference(a, x, pool, ge, params):
    """Pure-JAX f32 reference for correctness checking."""
    w1, b1, w2, b2, w3, b3, wl_n, wl_g, bl = params
    h = jnp.maximum(a @ (x @ w1) + b1, 0.0)
    h = jnp.maximum(a @ (h @ w2) + b2, 0.0)
    h = a @ (h @ w3) + b3
    pooled = pool @ h
    z = pooled @ wl_n + ge @ wl_g + bl
    return jax.nn.log_softmax(z, axis=-1)


if __name__ == "__main__":
    key = jax.random.PRNGKey(0)

    # Small, module-consistent shapes; large enough that the layer grid has
    # multiple row tiles AND multiple reduction tiles (tile_m=256, tile_k=512).
    NODES_PER_GRAPH = 512
    B = 2                       # graphs in the batch
    N = B * NODES_PER_GRAPH     # total nodes
    IN_FEATS = 2                # GCNConv(2, hidden)
    HIDDEN = 32
    GRAPH_DIM = 64
    NUM_CLASSES = 5

    k_x, k_ge, k_p = jax.random.split(key, 3)

    x = jax.random.normal(k_x, (N, IN_FEATS), jnp.float32)

    # Edge index: a symmetric ring inside each graph (PyG [2, E] convention).
    idx = jnp.arange(NODES_PER_GRAPH, dtype=jnp.int32)
    srcs, dsts = [], []
    for g in range(B):
        off = g * NODES_PER_GRAPH
        a_i = off + idx
        b_i = off + (idx + 1) % NODES_PER_GRAPH
        srcs += [a_i, b_i]
        dsts += [b_i, a_i]
    edge_index = jnp.stack([jnp.concatenate(srcs), jnp.concatenate(dsts)])

    batch = jnp.repeat(jnp.arange(B, dtype=jnp.int32), NODES_PER_GRAPH)
    graph_embedding = jax.random.normal(k_ge, (B, GRAPH_DIM), jnp.float32)
    params = init_params(k_p, IN_FEATS, HIDDEN, GRAPH_DIM, NUM_CLASSES)

    a_norm = build_norm_adj(edge_index, N)     # [N, N]
    pool = build_pool_matrix(batch, B)         # [B, N]

    fwd = jax.jit(gcn_forward)
    out = jax.block_until_ready(fwd(a_norm, x, pool, graph_embedding, params))

    assert out.shape == (B, NUM_CLASSES)
    # log_softmax rows must exponentiate-sum to 1
    row_sums = jnp.sum(jnp.exp(out), axis=1)
    assert jnp.allclose(row_sums, jnp.ones_like(row_sums), atol=1e-3)
    # bf16-matmul kernel vs f32 reference
    ref = gcn_reference(a_norm, x, pool, graph_embedding, params)
    assert jnp.allclose(out, ref, atol=0.1, rtol=0.0)

    print("KERNEL_OK")
</pallas_src>

<mosaic_0001>
module attributes {stable_mosaic.version = 11 : i64} {
  func.func @transform_kernel(%arg0: i32, %arg1: memref<256x128xbf16, #tpu.memory_space<vmem>>, %arg2: memref<128x128xbf16, #tpu.memory_space<vmem>>, %arg3: memref<256x128xbf16, #tpu.memory_space<vmem>>) attributes {dimension_semantics = [#tpu.dimension_semantics<parallel>], iteration_bounds = array<i64: 4>, scalar_prefetch = 0 : i64, scratch_operands = 0 : i64, tpu.core_type = #tpu.core_type<tc>, window_params = [{transform_indices = @transform_0, window_bounds = array<i64: 256, 128>}, {pipeline_mode = #tpu.pipeline_mode<synchronous>, transform_indices = @transform_1, window_bounds = array<i64: 128, 128>}, {transform_indices = @transform_2, window_bounds = array<i64: 256, 128>}]} {
    %c0 = arith.constant 0 : index
    %c0_0 = arith.constant 0 : index
    %0 = vector.load %arg1[%c0, %c0_0] : memref<256x128xbf16, #tpu.memory_space<vmem>>, vector<256x128xbf16>
    %c0_1 = arith.constant 0 : index
    %c0_2 = arith.constant 0 : index
    %1 = vector.load %arg2[%c0_1, %c0_2] : memref<128x128xbf16, #tpu.memory_space<vmem>>, vector<128x128xbf16>
    %cst = arith.constant dense<0.000000e+00> : vector<256x128xf32>
    %2 = tpu.matmul %0, %1, %cst {dimension_numbers = #tpu.dot_dimension_numbers<[1], [0], [0], [1], [0, 0, 1, 1], [], []>} : vector<256x128xbf16>, vector<128x128xbf16>, vector<256x128xf32> -> vector<256x128xf32>
    %3 = arith.truncf %2 : vector<256x128xf32> to vector<256x128xbf16>
    %c0_3 = arith.constant 0 : index
    %c0_4 = arith.constant 0 : index
    %4 = vector.load %arg3[%c0_3, %c0_4] : memref<256x128xbf16, #tpu.memory_space<vmem>>, vector<256x128xbf16>
    tpu.vector_store %arg3[%c0_3, %c0_4], %3 {strides = array<i32>} : memref<256x128xbf16, #tpu.memory_space<vmem>>, vector<256x128xbf16>,
    return
  }
  func.func @transform_0(%arg0: i32) -> (i32, i32) {
    %c0_i32 = arith.constant 0 : i32
    %c0_i32_0 = arith.constant 0 : i32
    return %arg0, %c0_i32 : i32, i32
  }
  func.func @transform_1(%arg0: i32) -> (i32, i32) {
    %c0_i32 = arith.constant 0 : i32
    %c0_i32_0 = arith.constant 0 : i32
    %c0_i32_1 = arith.constant 0 : i32
    return %c0_i32, %c0_i32_0 : i32, i32
  }
  func.func @transform_2(%arg0: i32) -> (i32, i32) {
    %c0_i32 = arith.constant 0 : i32
    %c0_i32_0 = arith.constant 0 : i32
    return %arg0, %c0_i32 : i32, i32
  }
}

module attributes {stable_mosaic.version = 11 : i64} {
  func.func @aggregate_kernel(%arg0: i32, %arg1: i32, %arg2: memref<256x512xbf16, #tpu.memory_space<vmem>>, %arg3: memref<1024x128xbf16, #tpu.memory_space<vmem>>, %arg4: memref<1x128xf32, #tpu.memory_space<vmem>>, %arg5: memref<256x128xbf16, #tpu.memory_space<vmem>>, %arg6: memref<256x128xf32, #tpu.memory_space<vmem>>) attributes {dimension_semantics = [#tpu.dimension_semantics<parallel>, #tpu.dimension_semantics<arbitrary>], iteration_bounds = array<i64: 4, 2>, scalar_prefetch = 0 : i64, scratch_operands = 1 : i64, tpu.core_type = #tpu.core_type<tc>, window_params = [{transform_indices = @transform_0, window_bounds = array<i64: 256, 512>}, {pipeline_mode = #tpu.pipeline_mode<synchronous>, transform_indices = @transform_1, window_bounds = array<i64: 1024, 128>}, {pipeline_mode = #tpu.pipeline_mode<synchronous>, transform_indices = @transform_2, window_bounds = array<i64: 1, 128>}, {transform_indices = @transform_3, window_bounds = array<i64: 256, 128>}]} {
    %c0_i32 = arith.constant 0 : i32
    %0 = arith.cmpi eq, %arg1, %c0_i32 : i32
    %1 = arith.extui %0 : i1 to i32
    %c0_i32_0 = arith.constant 0 : i32
    %2 = arith.cmpi ne, %1, %c0_i32_0 : i32
    scf.if %2 {
      %cst_8 = arith.constant 0.000000e+00 : f32
      %15 = vector.broadcast %cst_8 : f32 to vector<256x128xf32>
      %c0_9 = arith.constant 0 : index
      %c0_10 = arith.constant 0 : index
      %16 = vector.load %arg6[%c0_9, %c0_10] : memref<256x128xf32, #tpu.memory_space<vmem>>, vector<256x128xf32>
      tpu.vector_store %arg6[%c0_9, %c0_10], %15 {strides = array<i32>} : memref<256x128xf32, #tpu.memory_space<vmem>>, vector<256x128xf32>,
    } else {
    }
    %c512_i32 = arith.constant 512 : i32
    %3 = arith.muli %arg1, %c512_i32 : i32
    %4 = tpu.assume_multiple %3, 512 : i32
    %c0 = arith.constant 0 : index
    %c0_1 = arith.constant 0 : index
    %5 = vector.load %arg6[%c0, %c0_1] : memref<256x128xf32, #tpu.memory_space<vmem>>, vector<256x128xf32>
    %c0_2 = arith.constant 0 : index
    %c0_3 = arith.constant 0 : index
    %6 = vector.load %arg2[%c0_2, %c0_3] : memref<256x512xbf16, #tpu.memory_space<vmem>>, vector<256x512xbf16>
    %7 = arith.index_cast %4 : i32 to index
    %c0_4 = arith.constant 0 : index
    %8 = vector.load %arg3[%7, %c0_4] : memref<1024x128xbf16, #tpu.memory_space<vmem>>, vector<512x128xbf16>
    %cst = arith.constant dense<0.000000e+00> : vector<256x128xf32>
    %9 = tpu.matmul %6, %8, %cst {dimension_numbers = #tpu.dot_dimension_numbers<[1], [0], [0], [1], [0, 0, 1, 1], [], []>} : vector<256x512xbf16>, vector<512x128xbf16>, vector<256x128xf32> -> vector<256x128xf32>
    %10 = arith.addf %5, %9 : vector<256x128xf32>
    %c0_5 = arith.constant 0 : index
    %c0_6 = arith.constant 0 : index
    %11 = vector.load %arg6[%c0_5, %c0_6] : memref<256x128xf32, #tpu.memory_space<vmem>>, vector<256x128xf32>
    tpu.vector_store %arg6[%c0_5, %c0_6], %10 {strides = array<i32>} : memref<256x128xf32, #tpu.memory_space<vmem>>, vector<256x128xf32>,
    %c1_i32 = arith.constant 1 : i32
    %12 = arith.cmpi eq, %arg1, %c1_i32 : i32
    %13 = arith.extui %12 : i1 to i32
    %c0_i32_7 = arith.constant 0 : i32
    %14 = arith.cmpi ne, %13, %c0_i32_7 : i32
    scf.if %14 {
      %c0_8 = arith.constant 0 : index
      %c0_9 = arith.constant 0 : index
      %15 = vector.load %arg6[%c0_8, %c0_9] : memref<256x128xf32, #tpu.memory_space<vmem>>, vector<256x128xf32>
      %c0_10 = arith.constant 0 : index
      %c0_11 = arith.constant 0 : index
      %16 = vector.load %arg4[%c0_10, %c0_11] : memref<1x128xf32, #tpu.memory_space<vmem>>, vector<1x128xf32>
      %17 = vector.broadcast %16 : vector<1x128xf32> to vector<256x128xf32>
      %18 = arith.addf %15, %17 : vector<256x128xf32>
      %cst_12 = arith.constant 0.000000e+00 : f32
      %19 = vector.broadcast %cst_12 : f32 to vector<256x128xf32>
      %20 = arith.maximumf %18, %19 : vector<256x128xf32>
      %21 = arith.truncf %20 : vector<256x128xf32> to vector<256x128xbf16>
      %c0_13 = arith.constant 0 : index
      %c0_14 = arith.constant 0 : index
      %22 = vector.load %arg5[%c0_13, %c0_14] : memref<256x128xbf16, #tpu.memory_space<vmem>>, vector<256x128xbf16>
      tpu.vector_store %arg5[%c0_13, %c0_14], %21 {strides = array<i32>} : memref<256x128xbf16, #tpu.memory_space<vmem>>, vector<256x128xbf16>,
    } else {
    }
    return
  }
  func.func @transform_0(%arg0: i32, %arg1: i32) -> (i32, i32) {
    %c0_i32 = arith.constant 0 : i32
    return %arg0, %arg1 : i32, i32
  }
  func.func @transform_1(%arg0: i32, %arg1: i32) -> (i32, i32) {
    %c0_i32 = arith.constant 0 : i32
    %c0_i32_0 = arith.constant 0 : i32
    %c0_i32_1 = arith.constant 0 : i32
    return %c0_i32, %c0_i32_0 : i32, i32
  }
  func.func @transform_2(%arg0: i32, %arg1: i32) -> (i32, i32) {
    %c0_i32 = arith.constant 0 : i32
    %c0_i32_0 = arith.constant 0 : i32
    %c0_i32_1 = arith.constant 0 : i32
    return %c0_i32, %c0_i32_0 : i32, i32
  }
  func.func @transform_3(%arg0: i32, %arg1: i32) -> (i32, i32) {
    %c0_i32 = arith.constant 0 : i32
    %c0_i32_0 = arith.constant 0 : i32
    return %arg0, %c0_i32 : i32, i32
  }
}

module attributes {stable_mosaic.version = 11 : i64} {
  func.func @aggregate_kernel(%arg0: i32, %arg1: i32, %arg2: memref<256x512xbf16, #tpu.memory_space<vmem>>, %arg3: memref<1024x128xbf16, #tpu.memory_space<vmem>>, %arg4: memref<1x128xf32, #tpu.memory_space<vmem>>, %arg5: memref<256x128xbf16, #tpu.memory_space<vmem>>, %arg6: memref<256x128xf32, #tpu.memory_space<vmem>>) attributes {dimension_semantics = [#tpu.dimension_semantics<parallel>, #tpu.dimension_semantics<arbitrary>], iteration_bounds = array<i64: 4, 2>, scalar_prefetch = 0 : i64, scratch_operands = 1 : i64, tpu.core_type = #tpu.core_type<tc>, window_params = [{transform_indices = @transform_0, window_bounds = array<i64: 256, 512>}, {pipeline_mode = #tpu.pipeline_mode<synchronous>, transform_indices = @transform_1, window_bounds = array<i64: 1024, 128>}, {pipeline_mode = #tpu.pipeline_mode<synchronous>, transform_indices = @transform_2, window_bounds = array<i64: 1, 128>}, {transform_indices = @transform_3, window_bounds = array<i64: 256, 128>}]} {
    %c0_i32 = arith.constant 0 : i32
    %0 = arith.cmpi eq, %arg1, %c0_i32 : i32
    %1 = arith.extui %0 : i1 to i32
    %c0_i32_0 = arith.constant 0 : i32
    %2 = arith.cmpi ne, %1, %c0_i32_0 : i32
    scf.if %2 {
      %cst_8 = arith.constant 0.000000e+00 : f32
      %15 = vector.broadcast %cst_8 : f32 to vector<256x128xf32>
      %c0_9 = arith.constant 0 : index
      %c0_10 = arith.constant 0 : index
      %16 = vector.load %arg6[%c0_9, %c0_10] : memref<256x128xf32, #tpu.memory_space<vmem>>, vector<256x128xf32>
      tpu.vector_store %arg6[%c0_9, %c0_10], %15 {strides = array<i32>} : memref<256x128xf32, #tpu.memory_space<vmem>>, vector<256x128xf32>,
    } else {
    }
    %c512_i32 = arith.constant 512 : i32
    %3 = arith.muli %arg1, %c512_i32 : i32
    %4 = tpu.assume_multiple %3, 512 : i32
    %c0 = arith.constant 0 : index
    %c0_1 = arith.constant 0 : index
    %5 = vector.load %arg6[%c0, %c0_1] : memref<256x128xf32, #tpu.memory_space<vmem>>, vector<256x128xf32>
    %c0_2 = arith.constant 0 : index
    %c0_3 = arith.constant 0 : index
    %6 = vector.load %arg2[%c0_2, %c0_3] : memref<256x512xbf16, #tpu.memory_space<vmem>>, vector<256x512xbf16>
    %7 = arith.index_cast %4 : i32 to index
    %c0_4 = arith.constant 0 : index
    %8 = vector.load %arg3[%7, %c0_4] : memref<1024x128xbf16, #tpu.memory_space<vmem>>, vector<512x128xbf16>
    %cst = arith.constant dense<0.000000e+00> : vector<256x128xf32>
    %9 = tpu.matmul %6, %8, %cst {dimension_numbers = #tpu.dot_dimension_numbers<[1], [0], [0], [1], [0, 0, 1, 1], [], []>} : vector<256x512xbf16>, vector<512x128xbf16>, vector<256x128xf32> -> vector<256x128xf32>
    %10 = arith.addf %5, %9 : vector<256x128xf32>
    %c0_5 = arith.constant 0 : index
    %c0_6 = arith.constant 0 : index
    %11 = vector.load %arg6[%c0_5, %c0_6] : memref<256x128xf32, #tpu.memory_space<vmem>>, vector<256x128xf32>
    tpu.vector_store %arg6[%c0_5, %c0_6], %10 {strides = array<i32>} : memref<256x128xf32, #tpu.memory_space<vmem>>, vector<256x128xf32>,
    %c1_i32 = arith.constant 1 : i32
    %12 = arith.cmpi eq, %arg1, %c1_i32 : i32
    %13 = arith.extui %12 : i1 to i32
    %c0_i32_7 = arith.constant 0 : i32
    %14 = arith.cmpi ne, %13, %c0_i32_7 : i32
    scf.if %14 {
      %c0_8 = arith.constant 0 : index
      %c0_9 = arith.constant 0 : index
      %15 = vector.load %arg6[%c0_8, %c0_9] : memref<256x128xf32, #tpu.memory_space<vmem>>, vector<256x128xf32>
      %c0_10 = arith.constant 0 : index
      %c0_11 = arith.constant 0 : index
      %16 = vector.load %arg4[%c0_10, %c0_11] : memref<1x128xf32, #tpu.memory_space<vmem>>, vector<1x128xf32>
      %17 = vector.broadcast %16 : vector<1x128xf32> to vector<256x128xf32>
      %18 = arith.addf %15, %17 : vector<256x128xf32>
      %19 = arith.truncf %18 : vector<256x128xf32> to vector<256x128xbf16>
      %c0_12 = arith.constant 0 : index
      %c0_13 = arith.constant 0 : index
      %20 = vector.load %arg5[%c0_12, %c0_13] : memref<256x128xbf16, #tpu.memory_space<vmem>>, vector<256x128xbf16>
      tpu.vector_store %arg5[%c0_12, %c0_13], %19 {strides = array<i32>} : memref<256x128xbf16, #tpu.memory_space<vmem>>, vector<256x128xbf16>,
    } else {
    }
    return
  }
  func.func @transform_0(%arg0: i32, %arg1: i32) -> (i32, i32) {
    %c0_i32 = arith.constant 0 : i32
    return %arg0, %arg1 : i32, i32
  }
  func.func @transform_1(%arg0: i32, %arg1: i32) -> (i32, i32) {
    %c0_i32 = arith.constant 0 : i32
    %c0_i32_0 = arith.constant 0 : i32
    %c0_i32_1 = arith.constant 0 : i32
    return %c0_i32, %c0_i32_0 : i32, i32
  }
  func.func @transform_2(%arg0: i32, %arg1: i32) -> (i32, i32) {
    %c0_i32 = arith.constant 0 : i32
    %c0_i32_0 = arith.constant 0 : i32
    %c0_i32_1 = arith.constant 0 : i32
    return %c0_i32, %c0_i32_0 : i32, i32
  }
  func.func @transform_3(%arg0: i32, %arg1: i32) -> (i32, i32) {
    %c0_i32 = arith.constant 0 : i32
    %c0_i32_0 = arith.constant 0 : i32
    return %arg0, %c0_i32 : i32, i32
  }
}

module attributes {stable_mosaic.version = 11 : i64} {
  func.func @gcn_head_kernel(%arg0: i32, %arg1: memref<2x512xbf16, #tpu.memory_space<vmem>>, %arg2: memref<512x128xbf16, #tpu.memory_space<vmem>>, %arg3: memref<2x128xbf16, #tpu.memory_space<vmem>>, %arg4: memref<128x128xbf16, #tpu.memory_space<vmem>>, %arg5: memref<128x128xbf16, #tpu.memory_space<vmem>>, %arg6: memref<1x128xf32, #tpu.memory_space<vmem>>, %arg7: memref<2x128xf32, #tpu.memory_space<vmem>>, %arg8: memref<2x128xf32, #tpu.memory_space<vmem>>) attributes {dimension_semantics = [#tpu.dimension_semantics<arbitrary>], iteration_bounds = array<i64: 2>, scalar_prefetch = 0 : i64, scratch_operands = 1 : i64, tpu.core_type = #tpu.core_type<tc>, window_params = [{transform_indices = @transform_0, window_bounds = array<i64: 2, 512>}, {transform_indices = @transform_1, window_bounds = array<i64: 512, 128>}, {pipeline_mode = #tpu.pipeline_mode<synchronous>, transform_indices = @transform_2, window_bounds = array<i64: 2, 128>}, {pipeline_mode = #tpu.pipeline_mode<synchronous>, transform_indices = @transform_3, window_bounds = array<i64: 128, 128>}, {pipeline_mode = #tpu.pipeline_mode<synchronous>, transform_indices = @transform_4, window_bounds = array<i64: 128, 128>}, {pipeline_mode = #tpu.pipeline_mode<synchronous>, transform_indices = @transform_5, window_bounds = array<i64: 1, 128>}, {pipeline_mode = #tpu.pipeline_mode<synchronous>, transform_indices = @transform_6, window_bounds = array<i64: 2, 128>}]} {
    %c0_i32 = arith.constant 0 : i32
    %0 = arith.cmpi eq, %arg0, %c0_i32 : i32
    %1 = arith.extui %0 : i1 to i32
    %c0_i32_0 = arith.constant 0 : i32
    %2 = arith.cmpi ne, %1, %c0_i32_0 : i32
    scf.if %2 {
      %cst_9 = arith.constant 0.000000e+00 : f32
      %12 = vector.broadcast %cst_9 : f32 to vector<2x128xf32>
      %c0_10 = arith.constant 0 : index
      %c0_11 = arith.constant 0 : index
      %13 = vector.load %arg8[%c0_10, %c0_11] : memref<2x128xf32, #tpu.memory_space<vmem>>, vector<2x128xf32>
      tpu.vector_store %arg8[%c0_10, %c0_11], %12 {strides = array<i32>} : memref<2x128xf32, #tpu.memory_space<vmem>>, vector<2x128xf32>,
    } else {
    }
    %c0 = arith.constant 0 : index
    %c0_1 = arith.constant 0 : index
    %3 = vector.load %arg8[%c0, %c0_1] : memref<2x128xf32, #tpu.memory_space<vmem>>, vector<2x128xf32>
    %c0_2 = arith.constant 0 : index
    %c0_3 = arith.constant 0 : index
    %4 = vector.load %arg1[%c0_2, %c0_3] : memref<2x512xbf16, #tpu.memory_space<vmem>>, vector<2x512xbf16>
    %c0_4 = arith.constant 0 : index
    %c0_5 = arith.constant 0 : index
    %5 = vector.load %arg2[%c0_4, %c0_5] : memref<512x128xbf16, #tpu.memory_space<vmem>>, vector<512x128xbf16>
    %cst = arith.constant dense<0.000000e+00> : vector<2x128xf32>
    %6 = tpu.matmul %4, %5, %cst {dimension_numbers = #tpu.dot_dimension_numbers<[1], [0], [0], [1], [0, 0, 1, 1], [], []>} : vector<2x512xbf16>, vector<512x128xbf16>, vector<2x128xf32> -> vector<2x128xf32>
    %7 = arith.addf %3, %6 : vector<2x128xf32>
    %c0_6 = arith.constant 0 : index
    %c0_7 = arith.constant 0 : index
    %8 = vector.load %arg8[%c0_6, %c0_7] : memref<2x128xf32, #tpu.memory_space<vmem>>, vector<2x128xf32>
    tpu.vector_store %arg8[%c0_6, %c0_7], %7 {strides = array<i32>} : memref<2x128xf32, #tpu.memory_space<vmem>>, vector<2x128xf32>,
    %c1_i32 = arith.constant 1 : i32
    %9 = arith.cmpi eq, %arg0, %c1_i32 : i32
    %10 = arith.extui %9 : i1 to i32
    %c0_i32_8 = arith.constant 0 : i32
    %11 = arith.cmpi ne, %10, %c0_i32_8 : i32
    scf.if %11 {
      %c0_9 = arith.constant 0 : index
      %c0_10 = arith.constant 0 : index
      %12 = vector.load %arg8[%c0_9, %c0_10] : memref<2x128xf32, #tpu.memory_space<vmem>>, vector<2x128xf32>
      %13 = arith.truncf %12 : vector<2x128xf32> to vector<2x128xbf16>
      %c0_11 = arith.constant 0 : index
      %c0_12 = arith.constant 0 : index
      %14 = vector.load %arg4[%c0_11, %c0_12] : memref<128x128xbf16, #tpu.memory_space<vmem>>, vector<128x128xbf16>
      %cst_13 = arith.constant dense<0.000000e+00> : vector<2x128xf32>
      %15 = tpu.matmul %13, %14, %cst_13 {dimension_numbers = #tpu.dot_dimension_numbers<[1], [0], [0], [1], [0, 0, 1, 1], [], []>} : vector<2x128xbf16>, vector<128x128xbf16>, vector<2x128xf32> -> vector<2x128xf32>
      %c0_14 = arith.constant 0 : index
      %c0_15 = arith.constant 0 : index
      %16 = vector.load %arg3[%c0_14, %c0_15] : memref<2x128xbf16, #tpu.memory_space<vmem>>, vector<2x128xbf16>
      %c0_16 = arith.constant 0 : index
      %c0_17 = arith.constant 0 : index
      %17 = vector.load %arg5[%c0_16, %c0_17] : memref<128x128xbf16, #tpu.memory_space<vmem>>, vector<128x128xbf16>
      %cst_18 = arith.constant dense<0.000000e+00> : vector<2x128xf32>
      %18 = tpu.matmul %16, %17, %cst_18 {dimension_numbers = #tpu.dot_dimension_numbers<[1], [0], [0], [1], [0, 0, 1, 1], [], []>} : vector<2x128xbf16>, vector<128x128xbf16>, vector<2x128xf32> -> vector<2x128xf32>
      %19 = arith.addf %15, %18 : vector<2x128xf32>
      %c0_19 = arith.constant 0 : index
      %c0_20 = arith.constant 0 : index
      %20 = vector.load %arg6[%c0_19, %c0_20] : memref<1x128xf32, #tpu.memory_space<vmem>>, vector<1x128xf32>
      %21 = vector.broadcast %20 : vector<1x128xf32> to vector<2x128xf32>
      %22 = arith.addf %19, %21 : vector<2x128xf32>
      %cst_21 = arith.constant dense<0xFF800000> : vector<2xf32>
      %23 = vector.multi_reduction <maximumf>, %22, %cst_21 [1] : vector<2x128xf32> to vector<2xf32>
      %24 = vector.shape_cast %23 : vector<2xf32> to vector<2x1xf32>
      %25 = vector.broadcast %24 : vector<2x1xf32> to vector<2x128xf32>
      %26 = arith.subf %22, %25 : vector<2x128xf32>
      %27 = math.exp %26 : vector<2x128xf32>
      %cst_22 = arith.constant dense<0.000000e+00> : vector<2xf32>
      %28 = vector.multi_reduction <add>, %27, %cst_22 [1] : vector<2x128xf32> to vector<2xf32>
      %29 = vector.shape_cast %28 : vector<2xf32> to vector<2x1xf32>
      %30 = math.log %29 : vector<2x1xf32>
      %31 = arith.addf %30, %24 : vector<2x1xf32>
      %32 = vector.broadcast %31 : vector<2x1xf32> to vector<2x128xf32>
      %33 = arith.subf %22, %32 : vector<2x128xf32>
      %c0_23 = arith.constant 0 : index
      %c0_24 = arith.constant 0 : index
      %34 = vector.load %arg7[%c0_23, %c0_24] : memref<2x128xf32, #tpu.memory_space<vmem>>, vector<2x128xf32>
      tpu.vector_store %arg7[%c0_23, %c0_24], %33 {strides = array<i32>} : memref<2x128xf32, #tpu.memory_space<vmem>>, vector<2x128xf32>,
    } else {
    }
    return
  }
  func.func @transform_0(%arg0: i32) -> (i32, i32) {
    %c0_i32 = arith.constant 0 : i32
    %c0_i32_0 = arith.constant 0 : i32
    return %c0_i32, %arg0 : i32, i32
  }
  func.func @transform_1(%arg0: i32) -> (i32, i32) {
    %c0_i32 = arith.constant 0 : i32
    %c0_i32_0 = arith.constant 0 : i32
    return %arg0, %c0_i32 : i32, i32
  }
  func.func @transform_2(%arg0: i32) -> (i32, i32) {
    %c0_i32 = arith.constant 0 : i32
    %c0_i32_0 = arith.constant 0 : i32
    %c0_i32_1 = arith.constant 0 : i32
    return %c0_i32, %c0_i32_0 : i32, i32
  }
  func.func @transform_3(%arg0: i32) -> (i32, i32) {
    %c0_i32 = arith.constant 0 : i32
    %c0_i32_0 = arith.constant 0 : i32
    %c0_i32_1 = arith.constant 0 : i32
    return %c0_i32, %c0_i32_0 : i32, i32
  }
  func.func @transform_4(%arg0: i32) -> (i32, i32) {
    %c0_i32 = arith.constant 0 : i32
    %c0_i32_0 = arith.constant 0 : i32
    %c0_i32_1 = arith.constant 0 : i32
    return %c0_i32, %c0_i32_0 : i32, i32
  }
  func.func @transform_5(%arg0: i32) -> (i32, i32) {
    %c0_i32 = arith.constant 0 : i32
    %c0_i32_0 = arith.constant 0 : i32
    %c0_i32_1 = arith.constant 0 : i32
    return %c0_i32, %c0_i32_0 : i32, i32
  }
  func.func @transform_6(%arg0: i32) -> (i32, i32) {
    %c0_i32 = arith.constant 0 : i32
    %c0_i32_0 = arith.constant 0 : i32
    %c0_i32_1 = arith.constant 0 : i32
    return %c0_i32, %c0_i32_0 : i32, i32
  }
}

</mosaic_0001>

<bundles_post_ra>
// kernel: gcn_forward.7
= control target key start
LH: loop header
LB: loop body
LE: loop exit
PB: predicated region body
PF: predicated region fallthrough
CT: control target
= control target key end

     0   :  { %s829_s9 = smov 0   ;;  %s913_s0 = inlined_call_operand.vmem [shape: bf16[1024,128], index: 0, kind: input, shape index: {}]   ;;  %s914_s1 = inlined_call_operand.vmem [shape: bf16[128,128], index: 1, kind: input, shape index: {}]   ;;  %s915_s2 = inlined_call_operand.vmem [shape: bf16[1024,128], index: 2, kind: output, shape index: {}]  }
   0x1 LB: > { %s548_s10 = sadd.s32 4294967295, %s812_s9   ;;  %p552_p0 = scmp.ge.s32.totalorder %s812_s9, 1  ;;  %s812_s9 = sphi %s829_s9, %s12_s9  }
   0x2   : > { %p113_p1 = scmp.lt.s32.totalorder %s812_s9, 5 }
   0x4   : > { %p114_p2 = pnand %p552_p0, %p113_p1 }
   0x5   : > { %s553_s19 = sshll.u32 (!%p114_p2), %s548_s10, 5 }
   0x6   : > { %117 = sbr.rel (%p114_p2) target bundleno = 236 (0xec), region = 28  ;;  %p136_p3 = scmp.lt.s32.totalorder (!%p114_p2), %s553_s19, 127 }
   0xb   : > { %v678_v0 = vld [vmem:[%s914_s1 + $0x38] sm:$0xff]  ;;  %v677_v1 = vld [vmem:[%s914_s1 + $0x30] sm:$0xff]  ;;  %v676_v2 = vld [vmem:[%s914_s1 + $0x28] sm:$0xff]  ;;  %s917_s19 = smov (!%p136_p3, %s553_s19), 127 }
   0xc   : > { %339 = vmatpush.bf16.msra.mxu0 %v678_v0  ;;  %774 = vmatpush.bf16.msra.mxu1 %v678_v0  ;;  %v675_v3 = vld [vmem:[%s914_s1 + $0x20] sm:$0xff]  ;;  %v674_v4 = vld [vmem:[%s914_s1 + $0x18] sm:$0xff]  ;;  %v673_v5 = vld [vmem:[%s914_s1 + $0x10] sm:$0xff]  ;;  %s554_s26 = sshll.u32 %s917_s19, 2 }
   0xd   : > { %775 = vmatpush.bf16.msra.mxu2 %v678_v0  ;;  %776 = vmatpush.bf16.msra.mxu3 %v678_v0  ;;  %v672_v6 = vld [vmem:[%s914_s1 + $0x8] sm:$0xff]  ;;  %v671_v7 = vld [vmem:[%s914_s1] sm:$0xff]  ;;  %s869_s3 = scalar_lea.vmem %s913_s0, %s554_s26  ;;  %s892_s6 = scalar_lea.vmem %s915_s2, %s554_s26 }
   0xe   : > { %v655_v8 = vld [vmem:[%s869_s3] sm:$0xff]  ;;  %v656_v12 = vld [vmem:[%s869_s3 + $0x8] sm:$0xff]  ;;  %v657_v16 = vld [vmem:[%s869_s3 + $0x10] sm:$0xff] }
   0xf   : > { %v659_v9 = vld [vmem:[%s869_s3 + $0x20] sm:$0xff]  ;;  %v660_v13 = vld [vmem:[%s869_s3 + $0x28] sm:$0xff]  ;;  %v661_v17 = vld [vmem:[%s869_s3 + $0x30] sm:$0xff] }
  0x10   : > { %340 = vmatpush.bf16.msra.mxu0 %v677_v1  ;;  %777 = vmatpush.bf16.msra.mxu1 %v677_v1  ;;  %v663_v10 = vld [vmem:[%s869_s3 + $0x40] sm:$0xff]  ;;  %v664_v14 = vld [vmem:[%s869_s3 + $0x48] sm:$0xff]  ;;  %v665_v18 = vld [vmem:[%s869_s3 + $0x50] sm:$0xff] }
  0x11   : > { %778 = vmatpush.bf16.msra.mxu2 %v677_v1  ;;  %779 = vmatpush.bf16.msra.mxu3 %v677_v1  ;;  %v667_v11 = vld [vmem:[%s869_s3 + $0x60] sm:$0xff]  ;;  %v668_v15 = vld [vmem:[%s869_s3 + $0x68] sm:$0xff]  ;;  %v669_v19 = vld [vmem:[%s869_s3 + $0x70] sm:$0xff] }
  0x12   : > { %v658_v20 = vld [vmem:[%s869_s3 + $0x18] sm:$0xff] }
  0x13   : > { %v662_v21 = vld [vmem:[%s869_s3 + $0x38] sm:$0xff] }
  0x14   : > { %341 = vmatpush.bf16.msra.mxu0 %v676_v2  ;;  %780 = vmatpush.bf16.msra.mxu1 %v676_v2  ;;  %v666_v22 = vld [vmem:[%s869_s3 + $0x58] sm:$0xff] }
  0x15   : > { %781 = vmatpush.bf16.msra.mxu2 %v676_v2  ;;  %782 = vmatpush.bf16.msra.mxu3 %v676_v2  ;;  %v670_v23 = vld [vmem:[%s869_s3 + $0x78] sm:$0xff] }
  0x18   : > { %342 = vmatpush.bf16.msra.mxu0 %v675_v3  ;;  %783 = vmatpush.bf16.msra.mxu1 %v675_v3 }
  0x19   : > { %784 = vmatpush.bf16.msra.mxu2 %v675_v3  ;;  %785 = vmatpush.bf16.msra.mxu3 %v675_v3 }
  0x1c   : > { %343 = vmatpush.bf16.msra.mxu0 %v674_v4  ;;  %786 = vmatpush.bf16.msra.mxu1 %v674_v4 }
  0x1d   : > { %787 = vmatpush.bf16.msra.mxu2 %v674_v4  ;;  %788 = vmatpush.bf16.msra.mxu3 %v674_v4 }
  0x20   : > { %344 = vmatpush.bf16.msra.mxu0 %v673_v5  ;;  %789 = vmatpush.bf16.msra.mxu1 %v673_v5 }
  0x21   : > { %790 = vmatpush.bf16.msra.mxu2 %v673_v5  ;;  %791 = vmatpush.bf16.msra.mxu3 %v673_v5 }
  0x24   : > { %345 = vmatpush.bf16.msra.mxu0 %v672_v6  ;;  %792 = vmatpush.bf16.msra.mxu1 %v672_v6 }
  0x25   : > { %793 = vmatpush.bf16.msra.mxu2 %v672_v6  ;;  %794 = vmatpush.bf16.msra.mxu3 %v672_v6 }
  0x28   : > { %346 = vmatpush.bf16.msra.mxu0 %v671_v7  ;;  %795 = vmatpush.bf16.msra.mxu1 %v671_v7 }
  0x29   : > { %796 = vmatpush.bf16.msra.mxu2 %v671_v7  ;;  %797 = vmatpush.bf16.msra.mxu3 %v671_v7 }
  0x2b   : > { %347 = vmatmul.bf16.vlgmr.msra.gmra.mxu0 %v655_v8  ;;  %367 = vmatmul.bf16.vlgmr.msra.gmra.mxu1 %v659_v9 }
  0x2c   : > { %387 = vmatmul.bf16.vlgmr.msra.gmra.mxu2 %v663_v10  ;;  %407 = vmatmul.bf16.vlgmr.msra.gmra.mxu3 %v667_v11 }
  0x3b   : > { %352 = vmatmul.bf16.gmra.mxu0 %v656_v12  ;;  %372 = vmatmul.bf16.gmra.mxu1 %v660_v13 }
  0x3c   : > { %392 = vmatmul.bf16.gmra.mxu2 %v664_v14  ;;  %412 = vmatmul.bf16.gmra.mxu3 %v668_v15 }
  0x4b   : > { %357 = vmatmul.bf16.gmra.mxu0 %v657_v16  ;;  %377 = vmatmul.bf16.gmra.mxu1 %v661_v17 }
  0x4c   : > { %397 = vmatmul.bf16.gmra.mxu2 %v665_v18  ;;  %417 = vmatmul.bf16.gmra.mxu3 %v669_v19 }
  0x5b   : > { %362 = vmatmul.bf16.gmra.mxu0 %v658_v20  ;;  %382 = vmatmul.bf16.gmra.mxu1 %v662_v21 }
  0x5c   : > { %402 = vmatmul.bf16.gmra.mxu2 %v666_v22  ;;  %422 = vmatmul.bf16.gmra.mxu3 %v670_v23 }
  0xa8   : > { %v348_v24 = vpop.f32.mrf.mxu0  ;;  %v368_v25 = vpop.f32.mrf.mxu1 }
  0xaf   : > { %v388_v26 = vpop.f32.mrf.mxu2  ;;  %v408_v27 = vpop.f32.mrf.mxu3 }
  0xb0   : > { %v350_v28 = vpop.f32.mrf.mxu0  ;;  %v370_v29 = vpop.f32.mrf.mxu1 }
  0xb1   : > { %v682_v30 = vpack.c.bf16 %v350_v28, %v348_v24  ;;  %v702_v31 = vpack.c.bf16 %v370_v29, %v368_v25 }
  0xb3   : > { %683 = vst [vmem:[%s892_s6] sm:$0xff] %v682_v30  }
  0xb4   : > { %762 = vst [vmem:[%s892_s6 + $0x20] sm:$0xff] %v702_v31  }
  0xb7   : > { %v390_v32 = vpop.f32.mrf.mxu2  ;;  %v410_v33 = vpop.f32.mrf.mxu3 }
  0xb8   : > { %v722_v34 = vpack.c.bf16 %v390_v32, %v388_v26  ;;  %v742_v35 = vpack.c.bf16 %v410_v33, %v408_v27  ;;  %v353_v36 = vpop.f32.mrf.mxu0  ;;  %v373_v37 = vpop.f32.mrf.mxu1 }
  0xba   : > { %766 = vst [vmem:[%s892_s6 + $0x40] sm:$0xff] %v722_v34  }
  0xbb   : > { %770 = vst [vmem:[%s892_s6 + $0x60] sm:$0xff] %v742_v35  }
  0xbf   : > { %v393_v38 = vpop.f32.mrf.mxu2  ;;  %v413_v39 = vpop.f32.mrf.mxu3 }
  0xc0   : > { %v355_v40 = vpop.f32.mrf.mxu0  ;;  %v375_v41 = vpop.f32.mrf.mxu1 }
  0xc1   : > { %v687_v42 = vpack.c.bf16 %v355_v40, %v353_v36  ;;  %v707_v43 = vpack.c.bf16 %v375_v41, %v373_v37 }
  0xc3   : > { %759 = vst [vmem:[%s892_s6 + $0x8] sm:$0xff] %v687_v42  }
  0xc4   : > { %763 = vst [vmem:[%s892_s6 + $0x28] sm:$0xff] %v707_v43  }
  0xc7   : > { %v395_v44 = vpop.f32.mrf.mxu2  ;;  %v415_v45 = vpop.f32.mrf.mxu3 }
  0xc8   : > { %v727_v46 = vpack.c.bf16 %v395_v44, %v393_v38  ;;  %v747_v47 = vpack.c.bf16 %v415_v45, %v413_v39  ;;  %v358_v48 = vpop.f32.mrf.mxu0  ;;  %v378_v49 = vpop.f32.mrf.mxu1 }
  0xca   : > { %767 = vst [vmem:[%s892_s6 + $0x48] sm:$0xff] %v727_v46  }
  0xcb   : > { %771 = vst [vmem:[%s892_s6 + $0x68] sm:$0xff] %v747_v47  }
  0xcf   : > { %v398_v50 = vpop.f32.mrf.mxu2  ;;  %v418_v51 = vpop.f32.mrf.mxu3 }
  0xd0   : > { %v360_v52 = vpop.f32.mrf.mxu0  ;;  %v380_v53 = vpop.f32.mrf.mxu1 }
  0xd1   : > { %v692_v54 = vpack.c.bf16 %v360_v52, %v358_v48  ;;  %v712_v55 = vpack.c.bf16 %v380_v53, %v378_v49 }
  0xd3   : > { %760 = vst [vmem:[%s892_s6 + $0x10] sm:$0xff] %v692_v54  }
  0xd4   : > { %764 = vst [vmem:[%s892_s6 + $0x30] sm:$0xff] %v712_v55  }
  0xd7   : > { %v400_v56 = vpop.f32.mrf.mxu2  ;;  %v420_v57 = vpop.f32.mrf.mxu3 }
  0xd8   : > { %v732_v58 = vpack.c.bf16 %v400_v56, %v398_v50  ;;  %v752_v59 = vpack.c.bf16 %v420_v57, %v418_v51  ;;  %v363_v60 = vpop.f32.mrf.mxu0  ;;  %v383_v61 = vpop.f32.mrf.mxu1 }
  0xda   : > { %768 = vst [vmem:[%s892_s6 + $0x50] sm:$0xff] %v732_v58  }
  0xdb   : > { %772 = vst [vmem:[%s892_s6 + $0x70] sm:$0xff] %v752_v59  }
  0xdf   : > { %v403_v62 = vpop.f32.mrf.mxu2  ;;  %v423_v63 = vpop.f32.mrf.mxu3 }
  0xe0   : > { %v365_v0 = vpop.f32.mrf.mxu0  ;;  %v385_v1 = vpop.f32.mrf.mxu1 }
  0xe1   : > { %v697_v2 = vpack.c.bf16 %v365_v0, %v363_v60  ;;  %v717_v3 = vpack.c.bf16 %v385_v1, %v383_v61 }
  0xe3   : > { %761 = vst [vmem:[%s892_s6 + $0x18] sm:$0xff] %v697_v2  }
  0xe4   : > { %765 = vst [vmem:[%s892_s6 + $0x38] sm:$0xff] %v717_v3  }
  0xe7   : > { %v405_v4 = vpop.f32.mrf.mxu2  ;;  %v425_v5 = vpop.f32.mrf.mxu3 }
  0xe8   : > { %v737_v6 = vpack.c.bf16 %v405_v4, %v403_v62  ;;  %v757_v7 = vpack.c.bf16 %v425_v5, %v423_v63 }
  0xea   : > { %769 = vst [vmem:[%s892_s6 + $0x58] sm:$0xff] %v737_v6  }
  0xeb   : > { %773 = vst [vmem:[%s892_s6 + $0x78] sm:$0xff] %v757_v7  }
  0xec PF: > { %s12_s9 = sadd.s32 1, %s812_s9  }
  0xed   : > { %p9_p4 = scmp.ge.s32.totalorder %s12_s9, 6  }
  0xef   :  { %11 = sbr.rel (!%p9_p4) target bundleno = 1 (0x1), region = 58 }

// kernel: gcn_forward.12
= control target key start
LH: loop header
LB: loop body
LE: loop exit
PB: predicated region body
PF: predicated region fallthrough
CT: control target
= control target key end

     0   :  { %s2415_s12 = smov 0   ;;  %s2417_s13 = smov 0   ;;  %s2860_s0 = inlined_call_operand.vmem [shape: bf16[1024,1024], index: 0, kind: input, shape index: {}]   ;;  %s2861_s1 = inlined_call_operand.vmem [shape: bf16[1024,128], index: 1, kind: input, shape index: {}]   ;;  %s2862_s2 = inlined_call_operand.vmem [shape: f32[1,128], index: 2, kind: input, shape index: {}]   ;;  %s2863_s3 = inlined_call_operand.vmem [shape: bf16[1024,128], index: 3, kind: output, shape index: {}]  }
   0x1   :  { %s2419_s14 = smov 0   ;;  %s2421_s15 = smov 0  }
   0x2   :  { %s2423_s16 = smov 0   ;;  %s2425_s17 = smov 0  }
   0x3   :  { %s2427_s18 = smov 0  }
   0x4 LB: > { %s22_s19 = sadd.s32 1, %s2384_s16  ;;  %s25_s20 = sadd.s32 1, %s2388_s17  ;;  %s2392_s18 = sphi %s2427_s18, %s13_s18   ;;  %s2388_s17 = sphi %s2425_s17, %s2869_s17   ;;  %s2384_s16 = sphi %s2423_s16, %s2868_s16   ;;  %s2380_s15 = sphi %s2421_s15, %s2867_s15   ;;  %s2376_s14 = sphi %s2419_s14, %s2866_s14   ;;  %s2372_s13 = sphi %s2417_s13, %s2865_s13   ;;  %s2368_s12 = sphi %s2415_s12, %s2864_s12  }
   0x5   : > { %p23_p0 = scmp.ge.s32.totalorder %s22_s19, 2  ;;  %p41_p1 = scmp.ne.s32.totalorder %s2372_s13, %s2368_s12 }
   0x6   : > { %p42_p2 = scmp.eq.s32.totalorder %s2392_s18, 0  ;;  %s34_s24 = sadd.s32 1, %s2372_s13 }
   0x7   : > { %s2871_s19 = smov (%p23_p0, %s22_s19), 0  ;;  %s2873_s20 = smov (!%p23_p0, %s25_s20), %s2388_s17 }
   0x8   : > { %p43_p3 = por %p42_p2, %p41_p1  ;;  %p27_p4 = scmp.ge.s32.totalorder %s2873_s20, 4 }
   0x9   : > { %s30_s21 = ssub.s32 %s2384_s16, %s2871_s19  ;;  %p1688_p6 = scmp.ge.s32.totalorder %s2392_s18, 8 }
   0xa   : > { %s2875_s20 = smov (%p27_p4, %s2873_s20), 0 }
   0xb   : > { %s29_s22 = ssub.s32 %s2388_s17, %s2875_s20  ;;  %141 = sbr.rel (%p1688_p6) target bundleno = 87 (0x57), region = 24 }
   0xc   : > { %s31_s23 = sor.u32 %s30_s21, %s29_s22 }
   0xd   : > { %p32_p5 = scmp.eq.s32.totalorder %s31_s23, 0 }
   0xf   : > { %s2466_s25 = scalar_select %p32_p5, %s2372_s13, %s34_s24  }
  0x10   : > { %144 = sbr.rel (!%p43_p3) target bundleno = 87 (0x57), region = 28  ;;  %s146_s26 = sand.u32 (%p43_p3), 1, %s2372_s13  }
  0x11   : > { %s1691_s27 = sshll.u32 (%p43_p3), %s2384_s16, 2  ;;  %s1689_s28 = sshll.u32 (%p43_p3), %s146_s26, 9 }
  0x12   : > { %s2088_s29 = sshll.u32 (%p43_p3), %s2388_s17, 8  ;;  %s2480_s8 = scalar_lea.vmem (%p43_p3), [#allocation3], %s1689_s28 }
  0x13   : > { %s152_s30 = sadd.s32 (%p43_p3), %s2088_s29, %s1691_s27 }
  0x14   : > { %s1693_s4 = sshll.u32 (%p43_p3), %s152_s30, 2 }
  0x15   : > { %s2475_s7 = scalar_lea.vmem %s2860_s0, %s1693_s4 }
  0x16   : > { %v167_v0 = vld [vmem:[%s2475_s7] sm:$0xff]  ;;  %v169_v1 = vld [vmem:[%s2475_s7 + $0x8] sm:$0xff] }
  0x17   : > { %v171_v2 = vld [vmem:[%s2475_s7 + $0x20] sm:$0xff]  ;;  %168 = vst [vmem:[%s2480_s8] sm:$0xff] %v167_v0  ;;  %v173_v3 = vld [vmem:[%s2475_s7 + $0x28] sm:$0xff] }
  0x18   : > { %170 = vst [vmem:[%s2480_s8 + $0x8] sm:$0xff] %v169_v1  ;;  %v175_v4 = vld [vmem:[%s2475_s7 + $0x40] sm:$0xff]  ;;  %v177_v5 = vld [vmem:[%s2475_s7 + $0x48] sm:$0xff] }
  0x19   : > { %172 = vst [vmem:[%s2480_s8 + $0x10] sm:$0xff] %v171_v2  ;;  %v179_v6 = vld [vmem:[%s2475_s7 + $0x60] sm:$0xff]  ;;  %v181_v7 = vld [vmem:[%s2475_s7 + $0x68] sm:$0xff] }
  0x1a   : > { %174 = vst [vmem:[%s2480_s8 + $0x18] sm:$0xff] %v173_v3  ;;  %v183_v8 = vld [vmem:[%s2475_s7 + $0x80] sm:$0xff]  ;;  %v185_v9 = vld [vmem:[%s2475_s7 + $0x88] sm:$0xff] }
  0x1b   : > { %176 = vst [vmem:[%s2480_s8 + $0x20] sm:$0xff] %v175_v4  ;;  %v187_v10 = vld [vmem:[%s2475_s7 + $0xa0] sm:$0xff]  ;;  %v189_v11 = vld [vmem:[%s2475_s7 + $0xa8] sm:$0xff] }
  0x1c   : > { %178 = vst [vmem:[%s2480_s8 + $0x28] sm:$0xff] %v177_v5  ;;  %v191_v12 = vld [vmem:[%s2475_s7 + $0xc0] sm:$0xff]  ;;  %v193_v13 = vld [vmem:[%s2475_s7 + $0xc8] sm:$0xff] }
  0x1d   : > { %180 = vst [vmem:[%s2480_s8 + $0x30] sm:$0xff] %v179_v6  ;;  %v195_v14 = vld [vmem:[%s2475_s7 + $0xe0] sm:$0xff]  ;;  %v197_v15 = vld [vmem:[%s2475_s7 + $0xe8] sm:$0xff] }
  0x1e   : > { %182 = vst [vmem:[%s2480_s8 + $0x38] sm:$0xff] %v181_v7  ;;  %v199_v16 = vld [vmem:[%s2475_s7 + $0x100] sm:$0xff]  ;;  %v201_v17 = vld [vmem:[%s2475_s7 + $0x108] sm:$0xff] }
  0x1f   : > { %184 = vst [vmem:[%s2480_s8 + $0x40] sm:$0xff] %v183_v8  ;;  %v203_v18 = vld [vmem:[%s2475_s7 + $0x120] sm:$0xff]  ;;  %v205_v19 = vld [vmem:[%s2475_s7 + $0x128] sm:$0xff] }
  0x20   : > { %186 = vst [vmem:[%s2480_s8 + $0x48] sm:$0xff] %v185_v9  ;;  %v207_v20 = vld [vmem:[%s2475_s7 + $0x140] sm:$0xff]  ;;  %v209_v21 = vld [vmem:[%s2475_s7 + $0x148] sm:$0xff] }
  0x21   : > { %188 = vst [vmem:[%s2480_s8 + $0x50] sm:$0xff] %v187_v10  ;;  %v211_v22 = vld [vmem:[%s2475_s7 + $0x160] sm:$0xff]  ;;  %v213_v23 = vld [vmem:[%s2475_s7 + $0x168] sm:$0xff] }
  0x22   : > { %190 = vst [vmem:[%s2480_s8 + $0x58] sm:$0xff] %v189_v11  ;;  %v215_v24 = vld [vmem:[%s2475_s7 + $0x180] sm:$0xff]  ;;  %v217_v25 = vld [vmem:[%s2475_s7 + $0x188] sm:$0xff] }
  0x23   : > { %192 = vst [vmem:[%s2480_s8 + $0x60] sm:$0xff] %v191_v12  ;;  %v219_v26 = vld [vmem:[%s2475_s7 + $0x1a0] sm:$0xff]  ;;  %v221_v27 = vld [vmem:[%s2475_s7 + $0x1a8] sm:$0xff] }
  0x24   : > { %194 = vst [vmem:[%s2480_s8 + $0x68] sm:$0xff] %v193_v13  ;;  %v223_v28 = vld [vmem:[%s2475_s7 + $0x1c0] sm:$0xff]  ;;  %v225_v29 = vld [vmem:[%s2475_s7 + $0x1c8] sm:$0xff] }
  0x25   : > { %196 = vst [vmem:[%s2480_s8 + $0x70] sm:$0xff] %v195_v14  ;;  %v227_v30 = vld [vmem:[%s2475_s7 + $0x1e0] sm:$0xff]  ;;  %v229_v31 = vld [vmem:[%s2475_s7 + $0x1e8] sm:$0xff] }
  0x26   : > { %198 = vst [vmem:[%s2480_s8 + $0x78] sm:$0xff] %v197_v15  ;;  %v231_v32 = vld [vmem:[%s2475_s7 + $0x200] sm:$0xff]  ;;  %v233_v33 = vld [vmem:[%s2475_s7 + $0x208] sm:$0xff] }
  0x27   : > { %200 = vst [vmem:[%s2480_s8 + $0x80] sm:$0xff] %v199_v16  ;;  %v235_v34 = vld [vmem:[%s2475_s7 + $0x220] sm:$0xff]  ;;  %v237_v35 = vld [vmem:[%s2475_s7 + $0x228] sm:$0xff] }
  0x28   : > { %202 = vst [vmem:[%s2480_s8 + $0x88] sm:$0xff] %v201_v17  ;;  %v239_v36 = vld [vmem:[%s2475_s7 + $0x240] sm:$0xff]  ;;  %v241_v37 = vld [vmem:[%s2475_s7 + $0x248] sm:$0xff] }
  0x29   : > { %204 = vst [vmem:[%s2480_s8 + $0x90] sm:$0xff] %v203_v18  ;;  %v243_v38 = vld [vmem:[%s2475_s7 + $0x260] sm:$0xff]  ;;  %v245_v39 = vld [vmem:[%s2475_s7 + $0x268] sm:$0xff] }
  0x2a   : > { %206 = vst [vmem:[%s2480_s8 + $0x98] sm:$0xff] %v205_v19  ;;  %v247_v40 = vld [vmem:[%s2475_s7 + $0x280] sm:$0xff]  ;;  %v249_v41 = vld [vmem:[%s2475_s7 + $0x288] sm:$0xff] }
  0x2b   : > { %208 = vst [vmem:[%s2480_s8 + $0xa0] sm:$0xff] %v207_v20  ;;  %v251_v42 = vld [vmem:[%s2475_s7 + $0x2a0] sm:$0xff]  ;;  %v253_v43 = vld [vmem:[%s2475_s7 + $0x2a8] sm:$0xff] }
  0x2c   : > { %210 = vst [vmem:[%s2480_s8 + $0xa8] sm:$0xff] %v209_v21  ;;  %v255_v44 = vld [vmem:[%s2475_s7 + $0x2c0] sm:$0xff]  ;;  %v257_v45 = vld [vmem:[%s2475_s7 + $0x2c8] sm:$0xff] }
  0x2d   : > { %212 = vst [vmem:[%s2480_s8 + $0xb0] sm:$0xff] %v211_v22  ;;  %v259_v46 = vld [vmem:[%s2475_s7 + $0x2e0] sm:$0xff]  ;;  %v261_v47 = vld [vmem:[%s2475_s7 + $0x2e8] sm:$0xff] }
  0x2e   : > { %214 = vst [vmem:[%s2480_s8 + $0xb8] sm:$0xff] %v213_v23  ;;  %v263_v48 = vld [vmem:[%s2475_s7 + $0x300] sm:$0xff]  ;;  %v265_v49 = vld [vmem:[%s2475_s7 + $0x308] sm:$0xff] }
  0x2f   : > { %216 = vst [vmem:[%s2480_s8 + $0xc0] sm:$0xff] %v215_v24  ;;  %v267_v50 = vld [vmem:[%s2475_s7 + $0x320] sm:$0xff]  ;;  %v269_v51 = vld [vmem:[%s2475_s7 + $0x328] sm:$0xff] }
  0x30   : > { %218 = vst [vmem:[%s2480_s8 + $0xc8] sm:$0xff] %v217_v25  ;;  %v271_v52 = vld [vmem:[%s2475_s7 + $0x340] sm:$0xff]  ;;  %v273_v53 = vld [vmem:[%s2475_s7 + $0x348] sm:$0xff] }
  0x31   : > { %220 = vst [vmem:[%s2480_s8 + $0xd0] sm:$0xff] %v219_v26  ;;  %v275_v54 = vld [vmem:[%s2475_s7 + $0x360] sm:$0xff]  ;;  %v277_v55 = vld [vmem:[%s2475_s7 + $0x368] sm:$0xff] }
  0x32   : > { %222 = vst [vmem:[%s2480_s8 + $0xd8] sm:$0xff] %v221_v27  ;;  %v279_v56 = vld [vmem:[%s2475_s7 + $0x380] sm:$0xff]  ;;  %v281_v57 = vld [vmem:[%s2475_s7 + $0x388] sm:$0xff] }
  0x33   : > { %224 = vst [vmem:[%s2480_s8 + $0xe0] sm:$0xff] %v223_v28  ;;  %v283_v58 = vld [vmem:[%s2475_s7 + $0x3a0] sm:$0xff]  ;;  %v285_v59 = vld [vmem:[%s2475_s7 + $0x3a8] sm:$0xff] }
  0x34   : > { %226 = vst [vmem:[%s2480_s8 + $0xe8] sm:$0xff] %v225_v29  ;;  %v287_v60 = vld [vmem:[%s2475_s7 + $0x3c0] sm:$0xff]  ;;  %v289_v61 = vld [vmem:[%s2475_s7 + $0x3c8] sm:$0xff] }
  0x35   : > { %228 = vst [vmem:[%s2480_s8 + $0xf0] sm:$0xff] %v227_v30  ;;  %v291_v62 = vld [vmem:[%s2475_s7 + $0x3e0] sm:$0xff]  ;;  %v293_v63 = vld [vmem:[%s2475_s7 + $0x3e8] sm:$0xff] }
  0x36   : > { %230 = vst [vmem:[%s2480_s8 + $0xf8] sm:$0xff] %v229_v31 }
  0x37   : > { %232 = vst [vmem:[%s2480_s8 + $0x100] sm:$0xff] %v231_v32 }
  0x38   : > { %234 = vst [vmem:[%s2480_s8 + $0x108] sm:$0xff] %v233_v33 }
  0x39   : > { %236 = vst [vmem:[%s2480_s8 + $0x110] sm:$0xff] %v235_v34 }
  0x3a   : > { %238 = vst [vmem:[%s2480_s8 + $0x118] sm:$0xff] %v237_v35 }
  0x3b   : > { %240 = vst [vmem:[%s2480_s8 + $0x120] sm:$0xff] %v239_v36 }
  0x3c   : > { %242 = vst [vmem:[%s2480_s8 + $0x128] sm:$0xff] %v241_v37 }
  0x3d   : > { %244 = vst [vmem:[%s2480_s8 + $0x130] sm:$0xff] %v243_v38 }
  0x3e   : > { %246 = vst [vmem:[%s2480_s8 + $0x138] sm:$0xff] %v245_v39 }
  0x3f   : > { %248 = vst [vmem:[%s2480_s8 + $0x140] sm:$0xff] %v247_v40 }
  0x40   : > { %250 = vst [vmem:[%s2480_s8 + $0x148] sm:$0xff] %v249_v41 }
  0x41   : > { %252 = vst [vmem:[%s2480_s8 + $0x150] sm:$0xff] %v251_v42 }
  0x42   : > { %254 = vst [vmem:[%s2480_s8 + $0x158] sm:$0xff] %v253_v43 }
  0x43   : > { %256 = vst [vmem:[%s2480_s8 + $0x160] sm:$0xff] %v255_v44 }
  0x44   : > { %258 = vst [vmem:[%s2480_s8 + $0x168] sm:$0xff] %v257_v45 }
  0x45   : > { %260 = vst [vmem:[%s2480_s8 + $0x170] sm:$0xff] %v259_v46 }
  0x46   : > { %262 = vst [vmem:[%s2480_s8 + $0x178] sm:$0xff] %v261_v47 }
  0x47   : > { %264 = vst [vmem:[%s2480_s8 + $0x180] sm:$0xff] %v263_v48 }
  0x48   : > { %266 = vst [vmem:[%s2480_s8 + $0x188] sm:$0xff] %v265_v49 }
  0x49   : > { %268 = vst [vmem:[%s2480_s8 + $0x190] sm:$0xff] %v267_v50 }
  0x4a   : > { %270 = vst [vmem:[%s2480_s8 + $0x198] sm:$0xff] %v269_v51 }
  0x4b   : > { %272 = vst [vmem:[%s2480_s8 + $0x1a0] sm:$0xff] %v271_v52 }
  0x4c   : > { %274 = vst [vmem:[%s2480_s8 + $0x1a8] sm:$0xff] %v273_v53 }
  0x4d   : > { %276 = vst [vmem:[%s2480_s8 + $0x1b0] sm:$0xff] %v275_v54 }
  0x4e   : > { %278 = vst [vmem:[%s2480_s8 + $0x1b8] sm:$0xff] %v277_v55 }
  0x4f   : > { %280 = vst [vmem:[%s2480_s8 + $0x1c0] sm:$0xff] %v279_v56 }
  0x50   : > { %282 = vst [vmem:[%s2480_s8 + $0x1c8] sm:$0xff] %v281_v57 }
  0x51   : > { %284 = vst [vmem:[%s2480_s8 + $0x1d0] sm:$0xff] %v283_v58 }
  0x52   : > { %286 = vst [vmem:[%s2480_s8 + $0x1d8] sm:$0xff] %v285_v59 }
  0x53   : > { %288 = vst [vmem:[%s2480_s8 + $0x1e0] sm:$0xff] %v287_v60 }
  0x54   : > { %290 = vst [vmem:[%s2480_s8 + $0x1e8] sm:$0xff] %v289_v61 }
  0x55   : > { %292 = vst [vmem:[%s2480_s8 + $0x1f0] sm:$0xff] %v291_v62 }
  0x56   : > { %294 = vst [vmem:[%s2480_s8 + $0x1f8] sm:$0xff] %v293_v63 }
  0x57 PF: > { %p1694_p7 = scmp.ge.s32.totalorder %s2392_s18, 1  ;;  %p299_p8 = scmp.lt.s32.totalorder %s2392_s18, 9 }
  0x59   : > { %p300_p9 = pnand %p1694_p7, %p299_p8 }
  0x5a   : > { %s306_s9 = sand.u32 (!%p300_p9), 1, %s2368_s12   ;;  %s1696_s10 = sshll.u32 (!%p300_p9), %s2380_s15, 5 }
  0x5b   : > { %303 = sbr.rel (%p300_p9) target bundleno = 581 (0x245), region = 51  ;;  %s1695_s11 = sshll.u32 (!%p300_p9), %s306_s9, 9 }
  0x5c   : > { %p332_p10 = scmp.lt.s32.totalorder (!%p300_p9), %s1696_s10, 127  ;;  %s2616_s26 = scalar_lea.vmem (!%p300_p9), [#allocation3], %s1695_s11 }
  0x5d   : > { %p1698_p11 = scmp.ne.s32.totalorder (!%p300_p9), %s2376_s14, 0 }
  0x60   : > { %s2877_s10 = smov (!%p332_p10, %s1696_s10), 127  ;;  %340 = sbr.rel (%p1698_p11) target bundleno = 134 (0x86), region = 59 }
  0x61   : > { %s1697_s21 = sshll.u32 %s2877_s10, 2 }
  0x62   : > { %s2614_s24 = scalar_lea.vmem %s2863_s3, %s1697_s21 }
  0x65   : > { %v2394_v0 = vmov 0.0  }
  0x66   : > { %341 = vst [vmem:[#allocation2 + $0xb0] sm:$0xff] %v2394_v0 }
  0x67   : > { %342 = vst [vmem:[#allocation2] sm:$0xff] %v2394_v0 }
  0x68   : > { %343 = vst [vmem:[#allocation2 + $0xd8] sm:$0xff] %v2394_v0 }
  0x69   : > { %344 = vst [vmem:[#allocation2 + $0x18] sm:$0xff] %v2394_v0 }
  0x6a   : > { %345 = vst [vmem:[#allocation2 + $0x50] sm:$0xff] %v2394_v0 }
  0x6b   : > { %346 = vst [vmem:[#allocation2 + $0x68] sm:$0xff] %v2394_v0 }
  0x6c   : > { %347 = vst [vmem:[#allocation2 + $0x30] sm:$0xff] %v2394_v0 }
  0x6d   : > { %348 = vst [vmem:[#allocation2 + $0x48] sm:$0xff] %v2394_v0 }
  0x6e   : > { %349 = vst [vmem:[#allocation2 + $0x80] sm:$0xff] %v2394_v0 }
  0x6f   : > { %350 = vst [vmem:[#allocation2 + $0x88] sm:$0xff] %v2394_v0 }
  0x70   : > { %351 = vst [vmem:[#allocation2 + $0xe8] sm:$0xff] %v2394_v0 }
  0x71   : > { %352 = vst [vmem:[#allocation2 + $0xb8] sm:$0xff] %v2394_v0 }
  0x72   : > { %353 = vst [vmem:[#allocation2 + $0x60] sm:$0xff] %v2394_v0 }
  0x73   : > { %354 = vst [vmem:[#allocation2 + $0xf0] sm:$0xff] %v2394_v0 }
  0x74   : > { %355 = vst [vmem:[#allocation2 + $0x8] sm:$0xff] %v2394_v0 }
  0x75   : > { %356 = vst [vmem:[#allocation2 + $0x78] sm:$0xff] %v2394_v0 }
  0x76   : > { %357 = vst [vmem:[#allocation2 + $0x38] sm:$0xff] %v2394_v0 }
  0x77   : > { %358 = vst [vmem:[#allocation2 + $0x58] sm:$0xff] %v2394_v0 }
  0x78   : > { %359 = vst [vmem:[#allocation2 + $0x40] sm:$0xff] %v2394_v0 }
  0x79   : > { %360 = vst [vmem:[#allocation2 + $0xc8] sm:$0xff] %v2394_v0 }
  0x7a   : > { %361 = vst [vmem:[#allocation2 + $0xe0] sm:$0xff] %v2394_v0 }
  0x7b   : > { %362 = vst [vmem:[#allocation2 + $0x90] sm:$0xff] %v2394_v0 }
  0x7c   : > { %363 = vst [vmem:[#allocation2 + $0x70] sm:$0xff] %v2394_v0 }
  0x7d   : > { %364 = vst [vmem:[#allocation2 + $0xc0] sm:$0xff] %v2394_v0 }
  0x7e   : > { %365 = vst [vmem:[#allocation2 + $0xa8] sm:$0xff] %v2394_v0 }
  0x7f   : > { %366 = vst [vmem:[#allocation2 + $0xd0] sm:$0xff] %v2394_v0 }
  0x80   : > { %367 = vst [vmem:[#allocation2 + $0x10] sm:$0xff] %v2394_v0 }
  0x81   : > { %368 = vst [vmem:[#allocation2 + $0x28] sm:$0xff] %v2394_v0 }
  0x82   : > { %369 = vst [vmem:[#allocation2 + $0xa0] sm:$0xff] %v2394_v0 }
  0x83   : > { %370 = vst [vmem:[#allocation2 + $0xf8] sm:$0xff] %v2394_v0 }
  0x84   : > { %371 = vst [vmem:[#allocation2 + $0x20] sm:$0xff] %v2394_v0 }
  0x85   : > { %372 = vst [vmem:[#allocation2 + $0x98] sm:$0xff] %v2394_v0 }
  0x86 PF: > { %s1699_s12 = sshll.u32 %s2376_s14, 9  ;;  %v1703_v29 = vld [vmem:[%s2616_s26] sm:$0xf]  ;;  %v2091_v30 = vld [vmem:[%s2616_s26 + $0xc] sm:$0xf0]  ;;  %p2085_p12 = scmp.ne.s32.totalorder %s2376_s14, 1 }
  0x87   : > { %s470_s15 = sshra.s32 %s1699_s12, 3  ;;  %v2089_v31 = vld [vmem:[%s2616_s26 + $0x4] sm:$0xf]  ;;  %v1705_v36 = vld [vmem:[%s2616_s26 + $0x10] sm:$0xf0]  ;;  %v1704_v41 = vor.u32 %v2091_v30, %v1703_v29 }
  0x88   : > { %s1700_s27 = sshll.u32 %s470_s15, 2  ;;  %v1711_v37 = vld [vmem:[%s2616_s26 + $0x8] sm:$0xf]  ;;  %v2092_v38 = vld [vmem:[%s2616_s26 + $0x14] sm:$0xf0]  ;;  %v1708_v42 = vor.u32 %v2089_v31, %v1705_v36 }
  0x89   : > { %s2623_s30 = scalar_lea.vmem %s2861_s1, %s1700_s27  ;;  %v2090_v39 = vld [vmem:[%s2616_s26 + $0xc] sm:$0xf]  ;;  %v1713_v40 = vld [vmem:[%s2616_s26 + $0x18] sm:$0xf0]  ;;  %v1712_v43 = vor.u32 %v2092_v38, %v1711_v37  ;;  %v1719_v45 = vld [vmem:[%s2616_s26 + $0x20] sm:$0xf] }
  0x8a   : > { %v2160_v1 = vld [vmem:[%s2623_s30 + $0x38] sm:$0xff]  ;;  %v2159_v5 = vld [vmem:[%s2623_s30 + $0x30] sm:$0xff]  ;;  %v2158_v9 = vld [vmem:[%s2623_s30 + $0x28] sm:$0xff]  ;;  %v1716_v44 = vor.u32 %v2090_v39, %v1713_v40 }
  0x8b   : > { %v2168_v2 = vld [vmem:[%s2623_s30 + $0x78] sm:$0xff]  ;;  %1050 = vmatpush.bf16.msra.mxu0 %v2160_v1  ;;  %v2167_v6 = vld [vmem:[%s2623_s30 + $0x70] sm:$0xff]  ;;  %v2166_v10 = vld [vmem:[%s2623_s30 + $0x68] sm:$0xff] }
  0x8c   : > { %v2176_v3 = vld [vmem:[%s2623_s30 + $0xb8] sm:$0xff]  ;;  %1139 = vmatpush.bf16.msra.mxu1 %v2168_v2  ;;  %v2175_v7 = vld [vmem:[%s2623_s30 + $0xb0] sm:$0xff]  ;;  %v2174_v11 = vld [vmem:[%s2623_s30 + $0xa8] sm:$0xff] }
  0x8d   : > { %v2184_v4 = vld [vmem:[%s2623_s30 + $0xf8] sm:$0xff]  ;;  %1228 = vmatpush.bf16.msra.mxu2 %v2176_v3  ;;  %v2183_v8 = vld [vmem:[%s2623_s30 + $0xf0] sm:$0xff]  ;;  %v2182_v12 = vld [vmem:[%s2623_s30 + $0xe8] sm:$0xff] }
  0x8e   : > { %1317 = vmatpush.bf16.msra.mxu3 %v2184_v4  ;;  %v2157_v13 = vld [vmem:[%s2623_s30 + $0x20] sm:$0xff]  ;;  %v2156_v17 = vld [vmem:[%s2623_s30 + $0x18] sm:$0xff]  ;;  %v2155_v21 = vld [vmem:[%s2623_s30 + $0x10] sm:$0xff] }
  0x8f   : > { %1051 = vmatpush.bf16.msra.mxu0 %v2159_v5  ;;  %v2165_v14 = vld [vmem:[%s2623_s30 + $0x60] sm:$0xff]  ;;  %v2164_v18 = vld [vmem:[%s2623_s30 + $0x58] sm:$0xff]  ;;  %v2163_v22 = vld [vmem:[%s2623_s30 + $0x50] sm:$0xff] }
  0x90   : > { %1140 = vmatpush.bf16.msra.mxu1 %v2167_v6  ;;  %v2173_v15 = vld [vmem:[%s2623_s30 + $0xa0] sm:$0xff]  ;;  %v2172_v19 = vld [vmem:[%s2623_s30 + $0x98] sm:$0xff]  ;;  %v2171_v23 = vld [vmem:[%s2623_s30 + $0x90] sm:$0xff] }
  0x91   : > { %1229 = vmatpush.bf16.msra.mxu2 %v2175_v7  ;;  %v2181_v16 = vld [vmem:[%s2623_s30 + $0xe0] sm:$0xff]  ;;  %v2180_v20 = vld [vmem:[%s2623_s30 + $0xd8] sm:$0xff]  ;;  %v2179_v24 = vld [vmem:[%s2623_s30 + $0xd0] sm:$0xff] }
  0x92   : > { %1318 = vmatpush.bf16.msra.mxu3 %v2183_v8  ;;  %v2154_v25 = vld [vmem:[%s2623_s30 + $0x8] sm:$0xff]  ;;  %v2153_v32 = vld [vmem:[%s2623_s30] sm:$0xff]  ;;  %v2095_v46 = vld [vmem:[%s2616_s26 + $0x2c] sm:$0xf0] }
  0x93   : > { %1052 = vmatpush.bf16.msra.mxu0 %v2158_v9  ;;  %v2162_v26 = vld [vmem:[%s2623_s30 + $0x48] sm:$0xff]  ;;  %v2161_v33 = vld [vmem:[%s2623_s30 + $0x40] sm:$0xff]  ;;  %v1721_v48 = vld [vmem:[%s2616_s26 + $0x30] sm:$0xf0]  ;;  %v1720_v53 = vor.u32 %v2095_v46, %v1719_v45 }
  0x94   : > { %1141 = vmatpush.bf16.msra.mxu1 %v2166_v10  ;;  %v2170_v27 = vld [vmem:[%s2623_s30 + $0x88] sm:$0xff]  ;;  %v2169_v34 = vld [vmem:[%s2623_s30 + $0x80] sm:$0xff]  ;;  %v2096_v50 = vld [vmem:[%s2616_s26 + $0x34] sm:$0xf0] }
  0x95   : > { %1230 = vmatpush.bf16.msra.mxu2 %v2174_v11  ;;  %v2178_v28 = vld [vmem:[%s2623_s30 + $0xc8] sm:$0xff]  ;;  %v2177_v35 = vld [vmem:[%s2623_s30 + $0xc0] sm:$0xff]  ;;  %v1729_v52 = vld [vmem:[%s2616_s26 + $0x38] sm:$0xf0] }
  0x96   : > { %1319 = vmatpush.bf16.msra.mxu3 %v2182_v12  ;;  %v2093_v47 = vld [vmem:[%s2616_s26 + $0x24] sm:$0xf]  ;;  %v1727_v49 = vld [vmem:[%s2616_s26 + $0x28] sm:$0xf]  ;;  %v2094_v51 = vld [vmem:[%s2616_s26 + $0x2c] sm:$0xf] }
  0x97   : > { %1053 = vmatpush.bf16.msra.mxu0 %v2157_v13  ;;  %v1724_v54 = vor.u32 %v2093_v47, %v1721_v48  ;;  %v1728_v55 = vor.u32 %v2096_v50, %v1727_v49  ;;  %v1732_v56 = vor.u32 %v2094_v51, %v1729_v52  ;;  %v1735_v57 = vld [vmem:[%s2616_s26 + $0x40] sm:$0xf]  ;;  %v2099_v58 = vld [vmem:[%s2616_s26 + $0x4c] sm:$0xf0]  ;;  %v2097_v59 = vld [vmem:[%s2616_s26 + $0x44] sm:$0xf] }
  0x98   : > { %1142 = vmatpush.bf16.msra.mxu1 %v2165_v14  ;;  %v1737_v60 = vld [vmem:[%s2616_s26 + $0x50] sm:$0xf0]  ;;  %v1743_v61 = vld [vmem:[%s2616_s26 + $0x48] sm:$0xf]  ;;  %v2100_v62 = vld [vmem:[%s2616_s26 + $0x54] sm:$0xf0]  ;;  %v1736_v1 = vor.u32 %v2099_v58, %v1735_v57 }
  0x99   : > { %1231 = vmatpush.bf16.msra.mxu2 %v2173_v15  ;;  %v2098_v63 = vld [vmem:[%s2616_s26 + $0x4c] sm:$0xf]  ;;  %v1745_v0 = vld [vmem:[%s2616_s26 + $0x58] sm:$0xf0]  ;;  %v1740_v2 = vor.u32 %v2097_v59, %v1737_v60  ;;  %v1744_v3 = vor.u32 %v2100_v62, %v1743_v61  ;;  %v1751_v5 = vld [vmem:[%s2616_s26 + $0x60] sm:$0xf] }
  0x9a   : > { %1320 = vmatpush.bf16.msra.mxu3 %v2181_v16  ;;  %v1748_v4 = vor.u32 %v2098_v63, %v1745_v0  ;;  %v2103_v6 = vld [vmem:[%s2616_s26 + $0x6c] sm:$0xf0]  ;;  %v2101_v7 = vld [vmem:[%s2616_s26 + $0x64] sm:$0xf]  ;;  %v1753_v8 = vld [vmem:[%s2616_s26 + $0x70] sm:$0xf0] }
  0x9b   : > { %1054 = vmatpush.bf16.msra.mxu0 %v2156_v17  ;;  %v1759_v9 = vld [vmem:[%s2616_s26 + $0x68] sm:$0xf]  ;;  %v2104_v10 = vld [vmem:[%s2616_s26 + $0x74] sm:$0xf0]  ;;  %v2102_v11 = vld [vmem:[%s2616_s26 + $0x6c] sm:$0xf]  ;;  %v1752_v13 = vor.u32 %v2103_v6, %v1751_v5  ;;  %v1756_v14 = vor.u32 %v2101_v7, %v1753_v8 }
  0x9c   : > { %1143 = vmatpush.bf16.msra.mxu1 %v2164_v18  ;;  %v1761_v12 = vld [vmem:[%s2616_s26 + $0x78] sm:$0xf0]  ;;  %v1760_v15 = vor.u32 %v2104_v10, %v1759_v9  ;;  %v1767_v17 = vld [vmem:[%s2616_s26 + $0x80] sm:$0xf]  ;;  %v2107_v18 = vld [vmem:[%s2616_s26 + $0x8c] sm:$0xf0] }
  0x9d   : > { %1232 = vmatpush.bf16.msra.mxu2 %v2172_v19  ;;  %v1764_v16 = vor.u32 %v2102_v11, %v1761_v12  ;;  %v2105_v19 = vld [vmem:[%s2616_s26 + $0x84] sm:$0xf]  ;;  %v1783_v29 = vld [vmem:[%s2616_s26 + $0xa0] sm:$0xf]  ;;  %v2111_v30 = vld [vmem:[%s2616_s26 + $0xac] sm:$0xf0] }
  0x9e   : > { %1321 = vmatpush.bf16.msra.mxu3 %v2180_v20  ;;  %v1769_v20 = vld [vmem:[%s2616_s26 + $0x90] sm:$0xf0]  ;;  %v2109_v31 = vld [vmem:[%s2616_s26 + $0xa4] sm:$0xf]  ;;  %v1793_v36 = vld [vmem:[%s2616_s26 + $0xb8] sm:$0xf0]  ;;  %v1784_v37 = vor.u32 %v2111_v30, %v1783_v29 }
  0x9f   : > { %1055 = vmatpush.bf16.msra.mxu0 %v2155_v21  ;;  %v1775_v21 = vld [vmem:[%s2616_s26 + $0x88] sm:$0xf]  ;;  %v2116_v46 = vld [vmem:[%s2616_s26 + $0xd4] sm:$0xf0]  ;;  %v2114_v47 = vld [vmem:[%s2616_s26 + $0xcc] sm:$0xf] }
  0xa0   : > { %1144 = vmatpush.bf16.msra.mxu1 %v2163_v22  ;;  %v2108_v22 = vld [vmem:[%s2616_s26 + $0x94] sm:$0xf0]  ;;  %v1807_v45 = vld [vmem:[%s2616_s26 + $0xc8] sm:$0xf]  ;;  %v1809_v48 = vld [vmem:[%s2616_s26 + $0xd8] sm:$0xf0] }
  0xa1   : > { %1233 = vmatpush.bf16.msra.mxu2 %v2171_v23  ;;  %v2106_v23 = vld [vmem:[%s2616_s26 + $0x8c] sm:$0xf]  ;;  %v1808_v51 = vor.u32 %v2116_v46, %v1807_v45  ;;  %v1812_v52 = vor.u32 %v2114_v47, %v1809_v48  ;;  %v1823_v57 = vld [vmem:[%s2616_s26 + $0xe8] sm:$0xf]  ;;  %v2120_v58 = vld [vmem:[%s2616_s26 + $0xf4] sm:$0xf0] }
  0xa2   : > { %1322 = vmatpush.bf16.msra.mxu3 %v2179_v24  ;;  %v1777_v24 = vld [vmem:[%s2616_s26 + $0x98] sm:$0xf0]  ;;  %v2118_v59 = vld [vmem:[%s2616_s26 + $0xec] sm:$0xf]  ;;  %v1824_v63 = vor.u32 %v2120_v58, %v1823_v57  ;;  %v1839_v5 = vld [vmem:[%s2616_s26 + $0x108] sm:$0xf] }
  0xa3   : > { %1056 = vmatpush.bf16.msra.mxu0 %v2154_v25  ;;  %v1768_v25 = vor.u32 %v2107_v18, %v1767_v17  ;;  %v1825_v60 = vld [vmem:[%s2616_s26 + $0xf8] sm:$0xf0]  ;;  %v2124_v6 = vld [vmem:[%s2616_s26 + $0x114] sm:$0xf0]  ;;  %v2122_v7 = vld [vmem:[%s2616_s26 + $0x10c] sm:$0xf] }
  0xa4   : > { %1145 = vmatpush.bf16.msra.mxu1 %v2162_v26  ;;  %v1772_v26 = vor.u32 %v2105_v19, %v1769_v20  ;;  %v1828_v0 = vor.u32 %v2118_v59, %v1825_v60  ;;  %v1841_v8 = vld [vmem:[%s2616_s26 + $0x118] sm:$0xf0]  ;;  %v2128_v29 = vld [vmem:[%s2616_s26 + $0x134] sm:$0xf0]  ;;  %v2126_v30 = vld [vmem:[%s2616_s26 + $0x12c] sm:$0xf] }
  0xa5   : > { %1234 = vmatpush.bf16.msra.mxu2 %v2170_v27  ;;  %v1776_v27 = vor.u32 %v2108_v22, %v1775_v21  ;;  %v374_v21 = vld [vmem:[#allocation2 + $0xb0] sm:$0xff]  ;;  %v1871_v58 = vld [vmem:[%s2616_s26 + $0x148] sm:$0xf]  ;;  %v2132_v59 = vld [vmem:[%s2616_s26 + $0x154] sm:$0xf0] }
  0xa6   : > { %1323 = vmatpush.bf16.msra.mxu3 %v2178_v28  ;;  %v1780_v28 = vor.u32 %v2106_v23, %v1777_v24  ;;  %v1847_v23 = vld [vmem:[%s2616_s26 + $0x120] sm:$0xf]  ;;  %v2127_v24 = vld [vmem:[%s2616_s26 + $0x12c] sm:$0xf0]  ;;  %v1865_v57 = vld [vmem:[%s2616_s26 + $0x150] sm:$0xf0] }
  0xa7   : > { %1057 = vmatpush.bf16.msra.mxu0 %v2153_v32  ;;  %v1785_v32 = vld [vmem:[%s2616_s26 + $0xb0] sm:$0xf0]  ;;  %v2130_v60 = vld [vmem:[%s2616_s26 + $0x14c] sm:$0xf] }
  0xa8   : > { %1146 = vmatpush.bf16.msra.mxu1 %v2161_v33  ;;  %v1791_v33 = vld [vmem:[%s2616_s26 + $0xa8] sm:$0xf]  ;;  %v1788_v38 = vor.u32 %v2109_v31, %v1785_v32  ;;  %v1857_v31 = vld [vmem:[%s2616_s26 + $0x138] sm:$0xf0] }
  0xa9   : > { %1235 = vmatpush.bf16.msra.mxu2 %v2169_v34  ;;  %v2112_v34 = vld [vmem:[%s2616_s26 + $0xb4] sm:$0xf0] }
  0xaa   : > { %1324 = vmatpush.bf16.msra.mxu3 %v2177_v35  ;;  %1058 = vmatmul.bf16.vlgmr.msra.gmra.mxu0 %v1704_v41  ;;  %v2110_v35 = vld [vmem:[%s2616_s26 + $0xac] sm:$0xf]  ;;  %v1792_v39 = vor.u32 %v2112_v34, %v1791_v33  ;;  %v1799_v41 = vld [vmem:[%s2616_s26 + $0xc0] sm:$0xf] }
  0xab   : > { %1147 = vmatmul.bf16.vlgmr.msra.gmra.mxu1 %v1708_v42  ;;  %v1796_v40 = vor.u32 %v2110_v35, %v1793_v36  ;;  %v2115_v42 = vld [vmem:[%s2616_s26 + $0xcc] sm:$0xf0]  ;;  %v1848_v35 = vor.u32 %v2127_v24, %v1847_v23  ;;  %v1881_v23 = vld [vmem:[%s2616_s26 + $0x170] sm:$0xf0]  ;;  %v1887_v24 = vld [vmem:[%s2616_s26 + $0x168] sm:$0xf] }
  0xac   : > { %1236 = vmatmul.bf16.vlgmr.msra.gmra.mxu2 %v1712_v43  ;;  %v2113_v43 = vld [vmem:[%s2616_s26 + $0xc4] sm:$0xf]  ;;  %v1800_v49 = vor.u32 %v2115_v42, %v1799_v41  ;;  %v1860_v41 = vor.u32 %v2126_v30, %v1857_v31 }
  0xad   : > { %1325 = vmatmul.bf16.vlgmr.msra.gmra.mxu3 %v1716_v44  ;;  %v1801_v44 = vld [vmem:[%s2616_s26 + $0xd0] sm:$0xf0]  ;;  %v375_v42 = vld [vmem:[#allocation2] sm:$0xff] }
  0xae   : > { %v1804_v50 = vor.u32 %v2113_v43, %v1801_v44 }
  0xba   : > { %1063 = vmatmul.bf16.gmra.mxu0 %v1720_v53  ;;  %v1815_v53 = vld [vmem:[%s2616_s26 + $0xe0] sm:$0xf] }
  0xbb   : > { %1152 = vmatmul.bf16.gmra.mxu1 %v1724_v54  ;;  %v2119_v54 = vld [vmem:[%s2616_s26 + $0xec] sm:$0xf0] }
  0xbc   : > { %1241 = vmatmul.bf16.gmra.mxu2 %v1728_v55  ;;  %v2117_v55 = vld [vmem:[%s2616_s26 + $0xe4] sm:$0xf]  ;;  %v1816_v61 = vor.u32 %v2119_v54, %v1815_v53  ;;  %v1863_v53 = vld [vmem:[%s2616_s26 + $0x140] sm:$0xf]  ;;  %v2131_v54 = vld [vmem:[%s2616_s26 + $0x14c] sm:$0xf0] }
  0xbd   : > { %1330 = vmatmul.bf16.gmra.mxu3 %v1732_v56  ;;  %v1817_v56 = vld [vmem:[%s2616_s26 + $0xf0] sm:$0xf0] }
  0xbe   : > { %v1820_v62 = vor.u32 %v2117_v55, %v1817_v56  ;;  %v2129_v56 = vld [vmem:[%s2616_s26 + $0x144] sm:$0xf] }
  0xca   : > { %1068 = vmatmul.bf16.gmra.mxu0 %v1736_v1  ;;  %v1831_v1 = vld [vmem:[%s2616_s26 + $0x100] sm:$0xf] }
  0xcb   : > { %1157 = vmatmul.bf16.gmra.mxu1 %v1740_v2  ;;  %v2123_v2 = vld [vmem:[%s2616_s26 + $0x10c] sm:$0xf0] }
  0xcc   : > { %1246 = vmatmul.bf16.gmra.mxu2 %v1744_v3  ;;  %v2121_v3 = vld [vmem:[%s2616_s26 + $0x104] sm:$0xf]  ;;  %v1832_v9 = vor.u32 %v2123_v2, %v1831_v1  ;;  %v1864_v1 = vor.u32 %v2131_v54, %v1863_v53  ;;  %v1868_v2 = vor.u32 %v2129_v56, %v1865_v57  ;;  %v1897_v53 = vld [vmem:[%s2616_s26 + $0x190] sm:$0xf0]  ;;  %v1903_v54 = vld [vmem:[%s2616_s26 + $0x188] sm:$0xf] }
  0xcd   : > { %1335 = vmatmul.bf16.gmra.mxu3 %v1748_v4  ;;  %v1833_v4 = vld [vmem:[%s2616_s26 + $0x110] sm:$0xf0]  ;;  %v2138_v56 = vld [vmem:[%s2616_s26 + $0x18c] sm:$0xf]  ;;  %v1905_v57 = vld [vmem:[%s2616_s26 + $0x198] sm:$0xf0] }
  0xce   : > { %v1836_v10 = vor.u32 %v2121_v3, %v1833_v4 }
  0xda   : > { %1073 = vmatmul.bf16.gmra.mxu0 %v1752_v13  ;;  %v1840_v13 = vor.u32 %v2124_v6, %v1839_v5  ;;  %v1872_v6 = vor.u32 %v2132_v59, %v1871_v58 }
  0xdb   : > { %1162 = vmatmul.bf16.gmra.mxu1 %v1756_v14  ;;  %v1844_v14 = vor.u32 %v2122_v7, %v1841_v8  ;;  %v377_v8 = vld [vmem:[#allocation2 + $0x18] sm:$0xff] }
  0xdc   : > { %1251 = vmatmul.bf16.gmra.mxu2 %v1760_v15 }
  0xdd   : > { %1340 = vmatmul.bf16.gmra.mxu3 %v1764_v16 }
  0xea   : > { %1078 = vmatmul.bf16.gmra.mxu0 %v1768_v25 }
  0xeb   : > { %1167 = vmatmul.bf16.gmra.mxu1 %v1772_v26  ;;  %v2125_v26 = vld [vmem:[%s2616_s26 + $0x124] sm:$0xf] }
  0xec   : > { %1256 = vmatmul.bf16.gmra.mxu2 %v1776_v27  ;;  %v1849_v27 = vld [vmem:[%s2616_s26 + $0x130] sm:$0xf0] }
  0xed   : > { %1345 = vmatmul.bf16.gmra.mxu3 %v1780_v28  ;;  %v1855_v28 = vld [vmem:[%s2616_s26 + $0x128] sm:$0xf]  ;;  %v1852_v36 = vor.u32 %v2125_v26, %v1849_v27  ;;  %v2134_v26 = vld [vmem:[%s2616_s26 + $0x16c] sm:$0xf]  ;;  %v1889_v27 = vld [vmem:[%s2616_s26 + $0x178] sm:$0xf0] }
  0xfa   : > { %1083 = vmatmul.bf16.gmra.mxu0 %v1784_v37 }
  0xfb   : > { %1172 = vmatmul.bf16.gmra.mxu1 %v1788_v38 }
  0xfc   : > { %1261 = vmatmul.bf16.gmra.mxu2 %v1792_v39 }
  0xfd   : > { %1350 = vmatmul.bf16.gmra.mxu3 %v1796_v40  ;;  %v1856_v40 = vor.u32 %v2128_v29, %v1855_v28 }
 0x10a   : > { %1088 = vmatmul.bf16.gmra.mxu0 %v1800_v49 }
 0x10b   : > { %1177 = vmatmul.bf16.gmra.mxu1 %v1804_v50 }
 0x10c   : > { %1266 = vmatmul.bf16.gmra.mxu2 %v1808_v51  ;;  %v376_v51 = vld [vmem:[#allocation2 + $0xd8] sm:$0xff] }
 0x10d   : > { %1355 = vmatmul.bf16.gmra.mxu3 %v1812_v52 }
 0x11a   : > { %1093 = vmatmul.bf16.gmra.mxu0 %v1816_v61  ;;  %v1873_v61 = vld [vmem:[%s2616_s26 + $0x158] sm:$0xf0] }
 0x11b   : > { %1182 = vmatmul.bf16.gmra.mxu1 %v1820_v62  ;;  %v1876_v7 = vor.u32 %v2130_v60, %v1873_v61 }
 0x11c   : > { %1271 = vmatmul.bf16.gmra.mxu2 %v1824_v63 }
 0x11d   : > { %1360 = vmatmul.bf16.gmra.mxu3 %v1828_v0 }
 0x127   : > { %v1059_v11 = vpop.f32.mrf.mxu0 }
 0x128   : > { %v1148_v12 = vpop.f32.mrf.mxu1 }
 0x129   : > { %v1149_v15 = vadd.f32 %v1148_v12, %v1059_v11 }
 0x12a   : > { %1098 = vmatmul.bf16.gmra.mxu0 %v1832_v9 }
 0x12b   : > { %1187 = vmatmul.bf16.gmra.mxu1 %v1836_v10 }
 0x12c   : > { %1276 = vmatmul.bf16.gmra.mxu2 %v1840_v13 }
 0x12d   : > { %1365 = vmatmul.bf16.gmra.mxu3 %v1844_v14 }
 0x12f   : > { %v1237_v16 = vpop.f32.mrf.mxu2  ;;  %v1061_v19 = vpop.f32.mrf.mxu0 }
 0x130   : > { %v1326_v17 = vpop.f32.mrf.mxu3  ;;  %v1238_v18 = vadd.f32 %v1237_v16, %v1149_v15  ;;  %v1150_v20 = vpop.f32.mrf.mxu1 }
 0x131   : > { %v1151_v32 = vadd.f32 %v1150_v20, %v1061_v19  ;;  %v1879_v19 = vld [vmem:[%s2616_s26 + $0x160] sm:$0xf]  ;;  %v2135_v20 = vld [vmem:[%s2616_s26 + $0x16c] sm:$0xf0] }
 0x132   : > { %v1327_v22 = vadd.f32 %v1326_v17, %v1238_v18  ;;  %v378_v17 = vld [vmem:[#allocation2 + $0x50] sm:$0xff]  ;;  %v1880_v31 = vor.u32 %v2135_v20, %v1879_v19  ;;  %v1919_v20 = vld [vmem:[%s2616_s26 + $0x1a8] sm:$0xf] }
 0x133   : > { %v1913_v19 = vld [vmem:[%s2616_s26 + $0x1b0] sm:$0xf0] }
 0x134   : > { %v1406_v25 = vadd.f32 %v1327_v22, %v374_v21  ;;  %v2133_v22 = vld [vmem:[%s2616_s26 + $0x164] sm:$0xf] }
 0x136   : > { %1438 = vst [vmem:[#allocation2 + $0xb0] sm:$0xff] %v1406_v25  ;;  %v2136_v25 = vld [vmem:[%s2616_s26 + $0x174] sm:$0xf0] }
 0x137   : > { %v1239_v33 = vpop.f32.mrf.mxu2  ;;  %v1064_v38 = vpop.f32.mrf.mxu0 }
 0x138   : > { %v1328_v34 = vpop.f32.mrf.mxu3  ;;  %v1240_v37 = vadd.f32 %v1239_v33, %v1151_v32  ;;  %v1153_v39 = vpop.f32.mrf.mxu1  ;;  %v1884_v32 = vor.u32 %v2133_v22, %v1881_v23  ;;  %v2142_v22 = vld [vmem:[%s2616_s26 + $0x1ac] sm:$0xf]  ;;  %v1921_v23 = vld [vmem:[%s2616_s26 + $0x1b8] sm:$0xf0] }
 0x139   : > { %v1154_v45 = vadd.f32 %v1153_v39, %v1064_v38  ;;  %v379_v38 = vld [vmem:[#allocation2 + $0x68] sm:$0xff] }
 0x13a   : > { %v1329_v43 = vadd.f32 %v1328_v34, %v1240_v37  ;;  %1103 = vmatmul.bf16.gmra.mxu0 %v1848_v35  ;;  %v1892_v37 = vor.u32 %v2134_v26, %v1889_v27 }
 0x13b   : > { %1192 = vmatmul.bf16.gmra.mxu1 %v1852_v36  ;;  %v1888_v36 = vor.u32 %v2136_v25, %v1887_v24 }
 0x13c   : > { %v1407_v44 = vadd.f32 %v1329_v43, %v375_v42  ;;  %1281 = vmatmul.bf16.gmra.mxu2 %v1856_v40 }
 0x13d   : > { %1370 = vmatmul.bf16.gmra.mxu3 %v1860_v41 }
 0x13e   : > { %1439 = vst [vmem:[#allocation2] sm:$0xff] %v1407_v44 }
 0x13f   : > { %v1242_v46 = vpop.f32.mrf.mxu2  ;;  %v1066_v49 = vpop.f32.mrf.mxu0 }
 0x140   : > { %v1331_v47 = vpop.f32.mrf.mxu3  ;;  %v1243_v48 = vadd.f32 %v1242_v46, %v1154_v45  ;;  %v1155_v50 = vpop.f32.mrf.mxu1 }
 0x141   : > { %v1156_v62 = vadd.f32 %v1155_v50, %v1066_v49  ;;  %v1895_v49 = vld [vmem:[%s2616_s26 + $0x180] sm:$0xf]  ;;  %v2139_v50 = vld [vmem:[%s2616_s26 + $0x18c] sm:$0xf0] }
 0x142   : > { %v1332_v52 = vadd.f32 %v1331_v47, %v1243_v48  ;;  %v380_v47 = vld [vmem:[#allocation2 + $0x30] sm:$0xff]  ;;  %v1896_v61 = vor.u32 %v2139_v50, %v1895_v49  ;;  %v1935_v50 = vld [vmem:[%s2616_s26 + $0x1c8] sm:$0xf] }
 0x143   : > { %v1929_v49 = vld [vmem:[%s2616_s26 + $0x1d0] sm:$0xf0] }
 0x144   : > { %v1408_v55 = vadd.f32 %v1332_v52, %v376_v51  ;;  %v2137_v52 = vld [vmem:[%s2616_s26 + $0x184] sm:$0xf] }
 0x146   : > { %1440 = vst [vmem:[#allocation2 + $0xd8] sm:$0xff] %v1408_v55  ;;  %v2140_v55 = vld [vmem:[%s2616_s26 + $0x194] sm:$0xf0] }
 0x147   : > { %v1244_v63 = vpop.f32.mrf.mxu2  ;;  %v1069_v4 = vpop.f32.mrf.mxu0 }
 0x148   : > { %v1333_v0 = vpop.f32.mrf.mxu3  ;;  %v1245_v3 = vadd.f32 %v1244_v63, %v1156_v62  ;;  %v1158_v5 = vpop.f32.mrf.mxu1  ;;  %v1900_v62 = vor.u32 %v2137_v52, %v1897_v53  ;;  %v2146_v52 = vld [vmem:[%s2616_s26 + $0x1cc] sm:$0xf]  ;;  %v1937_v53 = vld [vmem:[%s2616_s26 + $0x1d8] sm:$0xf0] }
 0x149   : > { %v1159_v11 = vadd.f32 %v1158_v5, %v1069_v4  ;;  %v381_v4 = vld [vmem:[#allocation2 + $0x48] sm:$0xff] }
 0x14a   : > { %v1334_v9 = vadd.f32 %v1333_v0, %v1245_v3  ;;  %1108 = vmatmul.bf16.gmra.mxu0 %v1864_v1  ;;  %v1908_v3 = vor.u32 %v2138_v56, %v1905_v57 }
 0x14b   : > { %1197 = vmatmul.bf16.gmra.mxu1 %v1868_v2  ;;  %v1904_v2 = vor.u32 %v2140_v55, %v1903_v54 }
 0x14c   : > { %v1409_v10 = vadd.f32 %v1334_v9, %v377_v8  ;;  %1286 = vmatmul.bf16.gmra.mxu2 %v1872_v6 }
 0x14d   : > { %1375 = vmatmul.bf16.gmra.mxu3 %v1876_v7 }
 0x14e   : > { %1441 = vst [vmem:[#allocation2 + $0x18] sm:$0xff] %v1409_v10 }
 0x14f   : > { %v1247_v12 = vpop.f32.mrf.mxu2  ;;  %v1071_v15 = vpop.f32.mrf.mxu0 }
 0x150   : > { %v1336_v13 = vpop.f32.mrf.mxu3  ;;  %v1248_v14 = vadd.f32 %v1247_v12, %v1159_v11  ;;  %v1160_v16 = vpop.f32.mrf.mxu1 }
 0x151   : > { %v1161_v28 = vadd.f32 %v1160_v16, %v1071_v15  ;;  %v1911_v15 = vld [vmem:[%s2616_s26 + $0x1a0] sm:$0xf]  ;;  %v2143_v16 = vld [vmem:[%s2616_s26 + $0x1ac] sm:$0xf0] }
 0x152   : > { %v1337_v18 = vadd.f32 %v1336_v13, %v1248_v14  ;;  %v382_v13 = vld [vmem:[#allocation2 + $0x80] sm:$0xff]  ;;  %v1912_v27 = vor.u32 %v2143_v16, %v1911_v15  ;;  %v1945_v15 = vld [vmem:[%s2616_s26 + $0x1f0] sm:$0xf0]  ;;  %v1951_v16 = vld [vmem:[%s2616_s26 + $0x1e8] sm:$0xf] }
 0x154   : > { %v1410_v21 = vadd.f32 %v1337_v18, %v378_v17  ;;  %v2141_v18 = vld [vmem:[%s2616_s26 + $0x1a4] sm:$0xf] }
 0x156   : > { %1442 = vst [vmem:[#allocation2 + $0x50] sm:$0xff] %v1410_v21  ;;  %v2144_v21 = vld [vmem:[%s2616_s26 + $0x1b4] sm:$0xf0] }
 0x157   : > { %v1249_v29 = vpop.f32.mrf.mxu2  ;;  %v1074_v34 = vpop.f32.mrf.mxu0 }
 0x158   : > { %v1338_v30 = vpop.f32.mrf.mxu3  ;;  %v1250_v33 = vadd.f32 %v1249_v29, %v1161_v28  ;;  %v1163_v35 = vpop.f32.mrf.mxu1  ;;  %v1916_v28 = vor.u32 %v2141_v18, %v1913_v19  ;;  %v2150_v18 = vld [vmem:[%s2616_s26 + $0x1ec] sm:$0xf]  ;;  %v1953_v19 = vld [vmem:[%s2616_s26 + $0x1f8] sm:$0xf0] }
 0x159   : > { %v1164_v41 = vadd.f32 %v1163_v35, %v1074_v34  ;;  %v383_v34 = vld [vmem:[#allocation2 + $0x88] sm:$0xff] }
 0x15a   : > { %v1339_v39 = vadd.f32 %v1338_v30, %v1250_v33  ;;  %1113 = vmatmul.bf16.gmra.mxu0 %v1880_v31  ;;  %v1924_v33 = vor.u32 %v2142_v22, %v1921_v23 }
 0x15b   : > { %1202 = vmatmul.bf16.gmra.mxu1 %v1884_v32  ;;  %v1920_v32 = vor.u32 %v2144_v21, %v1919_v20 }
 0x15c   : > { %v1411_v40 = vadd.f32 %v1339_v39, %v379_v38  ;;  %1291 = vmatmul.bf16.gmra.mxu2 %v1888_v36 }
 0x15d   : > { %1380 = vmatmul.bf16.gmra.mxu3 %v1892_v37 }
 0x15e   : > { %1443 = vst [vmem:[#allocation2 + $0x68] sm:$0xff] %v1411_v40 }
 0x15f   : > { %v1252_v42 = vpop.f32.mrf.mxu2  ;;  %v1076_v45 = vpop.f32.mrf.mxu0 }
 0x160   : > { %v1341_v43 = vpop.f32.mrf.mxu3  ;;  %v1253_v44 = vadd.f32 %v1252_v42, %v1164_v41  ;;  %v1165_v46 = vpop.f32.mrf.mxu1 }
 0x161   : > { %v1166_v58 = vadd.f32 %v1165_v46, %v1076_v45  ;;  %v1927_v45 = vld [vmem:[%s2616_s26 + $0x1c0] sm:$0xf]  ;;  %v2147_v46 = vld [vmem:[%s2616_s26 + $0x1cc] sm:$0xf0] }
 0x162   : > { %v1342_v48 = vadd.f32 %v1341_v43, %v1253_v44  ;;  %v384_v43 = vld [vmem:[#allocation2 + $0xe8] sm:$0xff]  ;;  %v1928_v57 = vor.u32 %v2147_v46, %v1927_v45 }
 0x164   : > { %v1412_v51 = vadd.f32 %v1342_v48, %v380_v47  ;;  %v2145_v48 = vld [vmem:[%s2616_s26 + $0x1c4] sm:$0xf] }
 0x166   : > { %1444 = vst [vmem:[#allocation2 + $0x30] sm:$0xff] %v1412_v51  ;;  %v2148_v51 = vld [vmem:[%s2616_s26 + $0x1d4] sm:$0xf0] }
 0x167   : > { %v1254_v59 = vpop.f32.mrf.mxu2  ;;  %v1079_v0 = vpop.f32.mrf.mxu0 }
 0x168   : > { %v1343_v60 = vpop.f32.mrf.mxu3  ;;  %v1255_v63 = vadd.f32 %v1254_v59, %v1166_v58  ;;  %v1168_v1 = vpop.f32.mrf.mxu1  ;;  %v1932_v58 = vor.u32 %v2145_v48, %v1929_v49  ;;  %v389_v48 = vld [vmem:[#allocation2 + $0x78] sm:$0xff] }
 0x169   : > { %v1169_v7 = vadd.f32 %v1168_v1, %v1079_v0  ;;  %v385_v0 = vld [vmem:[#allocation2 + $0xb8] sm:$0xff] }
 0x16a   : > { %v1344_v5 = vadd.f32 %v1343_v60, %v1255_v63  ;;  %1118 = vmatmul.bf16.gmra.mxu0 %v1896_v61  ;;  %v1940_v63 = vor.u32 %v2146_v52, %v1937_v53 }
 0x16b   : > { %1207 = vmatmul.bf16.gmra.mxu1 %v1900_v62  ;;  %v1936_v62 = vor.u32 %v2148_v51, %v1935_v50 }
 0x16c   : > { %v1413_v6 = vadd.f32 %v1344_v5, %v381_v4  ;;  %1296 = vmatmul.bf16.gmra.mxu2 %v1904_v2 }
 0x16d   : > { %1385 = vmatmul.bf16.gmra.mxu3 %v1908_v3 }
 0x16e   : > { %1445 = vst [vmem:[#allocation2 + $0x48] sm:$0xff] %v1413_v6 }
 0x16f   : > { %v1257_v8 = vpop.f32.mrf.mxu2  ;;  %v1081_v11 = vpop.f32.mrf.mxu0 }
 0x170   : > { %v1346_v9 = vpop.f32.mrf.mxu3  ;;  %v1258_v10 = vadd.f32 %v1257_v8, %v1169_v7  ;;  %v1170_v12 = vpop.f32.mrf.mxu1 }
 0x171   : > { %v1171_v24 = vadd.f32 %v1170_v12, %v1081_v11  ;;  %v1943_v11 = vld [vmem:[%s2616_s26 + $0x1e0] sm:$0xf]  ;;  %v2151_v12 = vld [vmem:[%s2616_s26 + $0x1ec] sm:$0xf0] }
 0x172   : > { %v1347_v14 = vadd.f32 %v1346_v9, %v1258_v10  ;;  %v386_v9 = vld [vmem:[#allocation2 + $0x60] sm:$0xff]  ;;  %v1944_v23 = vor.u32 %v2151_v12, %v1943_v11 }
 0x173   : > { %v392_v11 = vld [vmem:[#allocation2 + $0x40] sm:$0xff] }
 0x174   : > { %v1414_v17 = vadd.f32 %v1347_v14, %v382_v13  ;;  %v2149_v14 = vld [vmem:[%s2616_s26 + $0x1e4] sm:$0xf] }
 0x176   : > { %1446 = vst [vmem:[#allocation2 + $0x80] sm:$0xff] %v1414_v17  ;;  %v2152_v17 = vld [vmem:[%s2616_s26 + $0x1f4] sm:$0xf0] }
 0x177   : > { %v1259_v25 = vpop.f32.mrf.mxu2  ;;  %v1084_v30 = vpop.f32.mrf.mxu0 }
 0x178   : > { %v1348_v26 = vpop.f32.mrf.mxu3  ;;  %v1260_v29 = vadd.f32 %v1259_v25, %v1171_v24  ;;  %v1173_v31 = vpop.f32.mrf.mxu1  ;;  %v1948_v24 = vor.u32 %v2149_v14, %v1945_v15 }
 0x179   : > { %v1174_v37 = vadd.f32 %v1173_v31, %v1084_v30  ;;  %v387_v30 = vld [vmem:[#allocation2 + $0xf0] sm:$0xff] }
 0x17a   : > { %v1349_v35 = vadd.f32 %v1348_v26, %v1260_v29  ;;  %1123 = vmatmul.bf16.gmra.mxu0 %v1912_v27  ;;  %v1956_v29 = vor.u32 %v2150_v18, %v1953_v19 }
 0x17b   : > { %1212 = vmatmul.bf16.gmra.mxu1 %v1916_v28  ;;  %v1952_v28 = vor.u32 %v2152_v17, %v1951_v16 }
 0x17c   : > { %v1415_v36 = vadd.f32 %v1349_v35, %v383_v34  ;;  %1301 = vmatmul.bf16.gmra.mxu2 %v1920_v32 }
 0x17d   : > { %1390 = vmatmul.bf16.gmra.mxu3 %v1924_v33 }
 0x17e   : > { %1447 = vst [vmem:[#allocation2 + $0x88] sm:$0xff] %v1415_v36 }
 0x17f   : > { %v1262_v38 = vpop.f32.mrf.mxu2  ;;  %v1086_v41 = vpop.f32.mrf.mxu0 }
 0x180   : > { %v1351_v39 = vpop.f32.mrf.mxu3  ;;  %v1263_v40 = vadd.f32 %v1262_v38, %v1174_v37  ;;  %v1175_v42 = vpop.f32.mrf.mxu1 }
 0x181   : > { %v1176_v54 = vadd.f32 %v1175_v42, %v1086_v41 }
 0x182   : > { %v1352_v44 = vadd.f32 %v1351_v39, %v1263_v40  ;;  %v388_v39 = vld [vmem:[#allocation2 + $0x8] sm:$0xff] }
 0x184   : > { %v1416_v47 = vadd.f32 %v1352_v44, %v384_v43 }
 0x186   : > { %1448 = vst [vmem:[#allocation2 + $0xe8] sm:$0xff] %v1416_v47 }
 0x187   : > { %v1264_v55 = vpop.f32.mrf.mxu2  ;;  %v1089_v60 = vpop.f32.mrf.mxu0 }
 0x188   : > { %v1353_v56 = vpop.f32.mrf.mxu3  ;;  %v1265_v59 = vadd.f32 %v1264_v55, %v1176_v54  ;;  %v1178_v61 = vpop.f32.mrf.mxu1 }
 0x189   : > { %v1179_v3 = vadd.f32 %v1178_v61, %v1089_v60 }
 0x18a   : > { %v1354_v1 = vadd.f32 %v1353_v56, %v1265_v59  ;;  %1128 = vmatmul.bf16.gmra.mxu0 %v1928_v57  ;;  %v390_v57 = vld [vmem:[#allocation2 + $0x38] sm:$0xff] }
 0x18b   : > { %1217 = vmatmul.bf16.gmra.mxu1 %v1932_v58 }
 0x18c   : > { %v1417_v2 = vadd.f32 %v1354_v1, %v385_v0  ;;  %1306 = vmatmul.bf16.gmra.mxu2 %v1936_v62 }
 0x18d   : > { %1395 = vmatmul.bf16.gmra.mxu3 %v1940_v63 }
 0x18e   : > { %1449 = vst [vmem:[#allocation2 + $0xb8] sm:$0xff] %v1417_v2  ;;  %v391_v2 = vld [vmem:[#allocation2 + $0x58] sm:$0xff] }
 0x18f   : > { %v1267_v4 = vpop.f32.mrf.mxu2  ;;  %v1091_v7 = vpop.f32.mrf.mxu0 }
 0x190   : > { %v1356_v5 = vpop.f32.mrf.mxu3  ;;  %v1268_v6 = vadd.f32 %v1267_v4, %v1179_v3  ;;  %v1180_v8 = vpop.f32.mrf.mxu1 }
 0x191   : > { %v1181_v20 = vadd.f32 %v1180_v8, %v1091_v7 }
 0x192   : > { %v1357_v10 = vadd.f32 %v1356_v5, %v1268_v6 }
 0x194   : > { %v1418_v13 = vadd.f32 %v1357_v10, %v386_v9 }
 0x196   : > { %1450 = vst [vmem:[#allocation2 + $0x60] sm:$0xff] %v1418_v13 }
 0x197   : > { %v1269_v21 = vpop.f32.mrf.mxu2  ;;  %v1094_v26 = vpop.f32.mrf.mxu0 }
 0x198   : > { %v1358_v22 = vpop.f32.mrf.mxu3  ;;  %v1270_v25 = vadd.f32 %v1269_v21, %v1181_v20  ;;  %v1183_v27 = vpop.f32.mrf.mxu1  ;;  %v393_v20 = vld [vmem:[#allocation2 + $0xc8] sm:$0xff] }
 0x199   : > { %v1184_v33 = vadd.f32 %v1183_v27, %v1094_v26 }
 0x19a   : > { %v1359_v31 = vadd.f32 %v1358_v22, %v1270_v25  ;;  %1133 = vmatmul.bf16.gmra.mxu0 %v1944_v23 }
 0x19b   : > { %1222 = vmatmul.bf16.gmra.mxu1 %v1948_v24 }
 0x19c   : > { %v1419_v32 = vadd.f32 %v1359_v31, %v387_v30  ;;  %1311 = vmatmul.bf16.gmra.mxu2 %v1952_v28 }
 0x19d   : > { %1400 = vmatmul.bf16.gmra.mxu3 %v1956_v29  ;;  %v394_v29 = vld [vmem:[#allocation2 + $0xe0] sm:$0xff] }
 0x19e   : > { %1451 = vst [vmem:[#allocation2 + $0xf0] sm:$0xff] %v1419_v32 }
 0x19f   : > { %v1272_v34 = vpop.f32.mrf.mxu2  ;;  %v1096_v37 = vpop.f32.mrf.mxu0 }
 0x1a0   : > { %v1361_v35 = vpop.f32.mrf.mxu3  ;;  %v1273_v36 = vadd.f32 %v1272_v34, %v1184_v33  ;;  %v1185_v38 = vpop.f32.mrf.mxu1 }
 0x1a1   : > { %v1186_v42 = vadd.f32 %v1185_v38, %v1096_v37  ;;  %v395_v38 = vld [vmem:[#allocation2 + $0x90] sm:$0xff] }
 0x1a2   : > { %v1362_v40 = vadd.f32 %v1361_v35, %v1273_v36 }
 0x1a4   : > { %v1420_v41 = vadd.f32 %v1362_v40, %v388_v39 }
 0x1a6   : > { %1452 = vst [vmem:[#allocation2 + $0x8] sm:$0xff] %v1420_v41 }
 0x1a7   : > { %v1274_v43 = vpop.f32.mrf.mxu2  ;;  %v1099_v46 = vpop.f32.mrf.mxu0 }
 0x1a8   : > { %v1363_v44 = vpop.f32.mrf.mxu3  ;;  %v1275_v45 = vadd.f32 %v1274_v43, %v1186_v42  ;;  %v1188_v47 = vpop.f32.mrf.mxu1 }
 0x1a9   : > { %v1189_v51 = vadd.f32 %v1188_v47, %v1099_v46  ;;  %v396_v47 = vld [vmem:[#allocation2 + $0x70] sm:$0xff] }
 0x1aa   : > { %v1364_v49 = vadd.f32 %v1363_v44, %v1275_v45 }
 0x1ac   : > { %v1421_v50 = vadd.f32 %v1364_v49, %v389_v48 }
 0x1ae   : > { %1453 = vst [vmem:[#allocation2 + $0x78] sm:$0xff] %v1421_v50 }
 0x1af   : > { %v1277_v52 = vpop.f32.mrf.mxu2  ;;  %v1101_v55 = vpop.f32.mrf.mxu0 }
 0x1b0   : > { %v1366_v53 = vpop.f32.mrf.mxu3  ;;  %v1278_v54 = vadd.f32 %v1277_v52, %v1189_v51  ;;  %v1190_v56 = vpop.f32.mrf.mxu1 }
 0x1b1   : > { %v1191_v60 = vadd.f32 %v1190_v56, %v1101_v55  ;;  %v397_v56 = vld [vmem:[#allocation2 + $0xc0] sm:$0xff] }
 0x1b2   : > { %v1367_v58 = vadd.f32 %v1366_v53, %v1278_v54 }
 0x1b4   : > { %v1422_v59 = vadd.f32 %v1367_v58, %v390_v57 }
 0x1b6   : > { %1454 = vst [vmem:[#allocation2 + $0x38] sm:$0xff] %v1422_v59 }
 0x1b7   : > { %v1279_v61 = vpop.f32.mrf.mxu2  ;;  %v1104_v0 = vpop.f32.mrf.mxu0 }
 0x1b8   : > { %v1368_v62 = vpop.f32.mrf.mxu3  ;;  %v1280_v63 = vadd.f32 %v1279_v61, %v1191_v60  ;;  %v1193_v1 = vpop.f32.mrf.mxu1 }
 0x1b9   : > { %v1194_v5 = vadd.f32 %v1193_v1, %v1104_v0  ;;  %v398_v1 = vld [vmem:[#allocation2 + $0xa8] sm:$0xff] }
 0x1ba   : > { %v1369_v3 = vadd.f32 %v1368_v62, %v1280_v63 }
 0x1bc   : > { %v1423_v4 = vadd.f32 %v1369_v3, %v391_v2 }
 0x1be   : > { %1455 = vst [vmem:[#allocation2 + $0x58] sm:$0xff] %v1423_v4 }
 0x1bf   : > { %v1282_v6 = vpop.f32.mrf.mxu2  ;;  %v1106_v9 = vpop.f32.mrf.mxu0 }
 0x1c0   : > { %v1371_v7 = vpop.f32.mrf.mxu3  ;;  %v1283_v8 = vadd.f32 %v1282_v6, %v1194_v5  ;;  %v1195_v10 = vpop.f32.mrf.mxu1 }
 0x1c1   : > { %v1196_v14 = vadd.f32 %v1195_v10, %v1106_v9  ;;  %v399_v10 = vld [vmem:[#allocation2 + $0xd0] sm:$0xff] }
 0x1c2   : > { %v1372_v12 = vadd.f32 %v1371_v7, %v1283_v8 }
 0x1c4   : > { %v1424_v13 = vadd.f32 %v1372_v12, %v392_v11 }
 0x1c6   : > { %1456 = vst [vmem:[#allocation2 + $0x40] sm:$0xff] %v1424_v13 }
 0x1c7   : > { %v1284_v15 = vpop.f32.mrf.mxu2  ;;  %v1109_v18 = vpop.f32.mrf.mxu0 }
 0x1c8   : > { %v1373_v16 = vpop.f32.mrf.mxu3  ;;  %v1285_v17 = vadd.f32 %v1284_v15, %v1196_v14  ;;  %v1198_v19 = vpop.f32.mrf.mxu1 }
 0x1c9   : > { %v1199_v23 = vadd.f32 %v1198_v19, %v1109_v18  ;;  %v400_v19 = vld [vmem:[#allocation2 + $0x10] sm:$0xff] }
 0x1ca   : > { %v1374_v21 = vadd.f32 %v1373_v16, %v1285_v17 }
 0x1cc   : > { %v1425_v22 = vadd.f32 %v1374_v21, %v393_v20 }
 0x1ce   : > { %1457 = vst [vmem:[#allocation2 + $0xc8] sm:$0xff] %v1425_v22 }
 0x1cf   : > { %v1287_v24 = vpop.f32.mrf.mxu2  ;;  %v1111_v27 = vpop.f32.mrf.mxu0 }
 0x1d0   : > { %v1376_v25 = vpop.f32.mrf.mxu3  ;;  %v1288_v26 = vadd.f32 %v1287_v24, %v1199_v23  ;;  %v1200_v28 = vpop.f32.mrf.mxu1 }
 0x1d1   : > { %v1201_v32 = vadd.f32 %v1200_v28, %v1111_v27  ;;  %v401_v28 = vld [vmem:[#allocation2 + $0x28] sm:$0xff] }
 0x1d2   : > { %v1377_v30 = vadd.f32 %v1376_v25, %v1288_v26 }
 0x1d4   : > { %v1426_v31 = vadd.f32 %v1377_v30, %v394_v29 }
 0x1d6   : > { %1458 = vst [vmem:[#allocation2 + $0xe0] sm:$0xff] %v1426_v31 }
 0x1d7   : > { %v1289_v33 = vpop.f32.mrf.mxu2  ;;  %v1114_v36 = vpop.f32.mrf.mxu0 }
 0x1d8   : > { %v1378_v34 = vpop.f32.mrf.mxu3  ;;  %v1290_v35 = vadd.f32 %v1289_v33, %v1201_v32  ;;  %v1203_v37 = vpop.f32.mrf.mxu1 }
 0x1d9   : > { %v1204_v41 = vadd.f32 %v1203_v37, %v1114_v36  ;;  %v402_v37 = vld [vmem:[#allocation2 + $0xa0] sm:$0xff] }
 0x1da   : > { %v1379_v39 = vadd.f32 %v1378_v34, %v1290_v35 }
 0x1dc   : > { %v1427_v40 = vadd.f32 %v1379_v39, %v395_v38 }
 0x1de   : > { %1459 = vst [vmem:[#allocation2 + $0x90] sm:$0xff] %v1427_v40 }
 0x1df   : > { %v1292_v42 = vpop.f32.mrf.mxu2  ;;  %v1116_v45 = vpop.f32.mrf.mxu0 }
 0x1e0   : > { %v1381_v43 = vpop.f32.mrf.mxu3  ;;  %v1293_v44 = vadd.f32 %v1292_v42, %v1204_v41  ;;  %v1205_v46 = vpop.f32.mrf.mxu1 }
 0x1e1   : > { %v1206_v50 = vadd.f32 %v1205_v46, %v1116_v45 }
 0x1e2   : > { %v1382_v48 = vadd.f32 %v1381_v43, %v1293_v44  ;;  %v403_v44 = vld [vmem:[#allocation2 + $0xf8] sm:$0xff] }
 0x1e4   : > { %v1428_v49 = vadd.f32 %v1382_v48, %v396_v47 }
 0x1e6   : > { %1460 = vst [vmem:[#allocation2 + $0x70] sm:$0xff] %v1428_v49 }
 0x1e7   : > { %v1294_v51 = vpop.f32.mrf.mxu2  ;;  %v1119_v54 = vpop.f32.mrf.mxu0 }
 0x1e8   : > { %v1383_v52 = vpop.f32.mrf.mxu3  ;;  %v1295_v53 = vadd.f32 %v1294_v51, %v1206_v50  ;;  %v1208_v55 = vpop.f32.mrf.mxu1 }
 0x1e9   : > { %v1209_v59 = vadd.f32 %v1208_v55, %v1119_v54 }
 0x1ea   : > { %v1384_v57 = vadd.f32 %v1383_v52, %v1295_v53  ;;  %v404_v53 = vld [vmem:[#allocation2 + $0x20] sm:$0xff] }
 0x1ec   : > { %v1429_v58 = vadd.f32 %v1384_v57, %v397_v56 }
 0x1ee   : > { %1461 = vst [vmem:[#allocation2 + $0xc0] sm:$0xff] %v1429_v58 }
 0x1ef   : > { %v1297_v60 = vpop.f32.mrf.mxu2  ;;  %v1121_v63 = vpop.f32.mrf.mxu0 }
 0x1f0   : > { %v1386_v61 = vpop.f32.mrf.mxu3  ;;  %v1298_v62 = vadd.f32 %v1297_v60, %v1209_v59  ;;  %v1210_v0 = vpop.f32.mrf.mxu1 }
 0x1f1   : > { %v1211_v4 = vadd.f32 %v1210_v0, %v1121_v63 }
 0x1f2   : > { %v1387_v2 = vadd.f32 %v1386_v61, %v1298_v62  ;;  %v405_v61 = vld [vmem:[#allocation2 + $0x98] sm:$0xff] }
 0x1f4   : > { %v1430_v3 = vadd.f32 %v1387_v2, %v398_v1 }
 0x1f6   : > { %1462 = vst [vmem:[#allocation2 + $0xa8] sm:$0xff] %v1430_v3 }
 0x1f7   : > { %v1299_v5 = vpop.f32.mrf.mxu2  ;;  %v1124_v8 = vpop.f32.mrf.mxu0 }
 0x1f8   : > { %v1388_v6 = vpop.f32.mrf.mxu3  ;;  %v1300_v7 = vadd.f32 %v1299_v5, %v1211_v4  ;;  %v1213_v9 = vpop.f32.mrf.mxu1 }
 0x1f9   : > { %v1214_v13 = vadd.f32 %v1213_v9, %v1124_v8 }
 0x1fa   : > { %v1389_v11 = vadd.f32 %v1388_v6, %v1300_v7 }
 0x1fc   : > { %v1431_v12 = vadd.f32 %v1389_v11, %v399_v10 }
 0x1fe   : > { %1463 = vst [vmem:[#allocation2 + $0xd0] sm:$0xff] %v1431_v12 }
 0x1ff   : > { %v1302_v14 = vpop.f32.mrf.mxu2  ;;  %v1126_v17 = vpop.f32.mrf.mxu0 }
 0x200   : > { %v1391_v15 = vpop.f32.mrf.mxu3  ;;  %v1303_v16 = vadd.f32 %v1302_v14, %v1214_v13  ;;  %v1215_v18 = vpop.f32.mrf.mxu1 }
 0x201   : > { %v1216_v22 = vadd.f32 %v1215_v18, %v1126_v17 }
 0x202   : > { %v1392_v20 = vadd.f32 %v1391_v15, %v1303_v16 }
 0x204   : > { %v1432_v21 = vadd.f32 %v1392_v20, %v400_v19 }
 0x206   : > { %1464 = vst [vmem:[#allocation2 + $0x10] sm:$0xff] %v1432_v21 }
 0x207   : > { %v1304_v23 = vpop.f32.mrf.mxu2  ;;  %v1129_v26 = vpop.f32.mrf.mxu0 }
 0x208   : > { %v1393_v24 = vpop.f32.mrf.mxu3  ;;  %v1305_v25 = vadd.f32 %v1304_v23, %v1216_v22  ;;  %v1218_v27 = vpop.f32.mrf.mxu1 }
 0x209   : > { %v1219_v31 = vadd.f32 %v1218_v27, %v1129_v26 }
 0x20a   : > { %v1394_v29 = vadd.f32 %v1393_v24, %v1305_v25 }
 0x20c   : > { %v1433_v30 = vadd.f32 %v1394_v29, %v401_v28 }
 0x20e   : > { %1465 = vst [vmem:[#allocation2 + $0x28] sm:$0xff] %v1433_v30 }
 0x20f   : > { %v1307_v32 = vpop.f32.mrf.mxu2  ;;  %v1131_v35 = vpop.f32.mrf.mxu0 }
 0x210   : > { %v1396_v33 = vpop.f32.mrf.mxu3  ;;  %v1308_v34 = vadd.f32 %v1307_v32, %v1219_v31  ;;  %v1220_v36 = vpop.f32.mrf.mxu1 }
 0x211   : > { %v1221_v40 = vadd.f32 %v1220_v36, %v1131_v35 }
 0x212   : > { %v1397_v38 = vadd.f32 %v1396_v33, %v1308_v34 }
 0x214   : > { %v1434_v39 = vadd.f32 %v1397_v38, %v402_v37 }
 0x216   : > { %1466 = vst [vmem:[#allocation2 + $0xa0] sm:$0xff] %v1434_v39 }
 0x217   : > { %v1309_v41 = vpop.f32.mrf.mxu2  ;;  %v1134_v45 = vpop.f32.mrf.mxu0 }
 0x218   : > { %v1398_v42 = vpop.f32.mrf.mxu3  ;;  %v1310_v43 = vadd.f32 %v1309_v41, %v1221_v40  ;;  %v1223_v46 = vpop.f32.mrf.mxu1 }
 0x219   : > { %v1224_v49 = vadd.f32 %v1223_v46, %v1134_v45 }
 0x21a   : > { %v1399_v47 = vadd.f32 %v1398_v42, %v1310_v43 }
 0x21c   : > { %v1435_v48 = vadd.f32 %v1399_v47, %v403_v44 }
 0x21e   : > { %1467 = vst [vmem:[#allocation2 + $0xf8] sm:$0xff] %v1435_v48 }
 0x21f   : > { %v1312_v50 = vpop.f32.mrf.mxu2  ;;  %v1136_v55 = vpop.f32.mrf.mxu0 }
 0x220   : > { %v1401_v51 = vpop.f32.mrf.mxu3  ;;  %v1313_v52 = vadd.f32 %v1312_v50, %v1224_v49  ;;  %v1225_v56 = vpop.f32.mrf.mxu1 }
 0x221   : > { %v1226_v58 = vadd.f32 %v1225_v56, %v1136_v55 }
 0x222   : > { %v1402_v54 = vadd.f32 %v1401_v51, %v1313_v52 }
 0x224   : > { %v1436_v57 = vadd.f32 %v1402_v54, %v404_v53 }
 0x226   : > { %1468 = vst [vmem:[#allocation2 + $0x20] sm:$0xff] %v1436_v57 }
 0x227   : > { %v1314_v59 = vpop.f32.mrf.mxu2 }
 0x228   : > { %v1315_v60 = vadd.f32 %v1314_v59, %v1226_v58  ;;  %v1403_v62 = vpop.f32.mrf.mxu3 }
 0x22a   : > { %v1404_v63 = vadd.f32 %v1403_v62, %v1315_v60  ;;  %1473 = sbr.rel (%p2085_p12) target bundleno = 581 (0x245), region = 63 }
 0x22c   : > { %v1437_v0 = vadd.f32 %v1404_v63, %v405_v61 }
 0x22e   : > { %1469 = vst [vmem:[#allocation2 + $0x98] sm:$0xff] %v1437_v0 }
 0x22f   : > { %v1474_v1 = vld [vmem:[#allocation2 + $0xb0] sm:$0xff]  ;;  %v1475_v2 = vld [vmem:[#allocation2] sm:$0xff]  ;;  %v1476_v4 = vld [vmem:[#allocation2 + $0xd8] sm:$0xff] }
 0x230   : > { %v2789_v3 = vld [vmem:[%s2862_s2] ss:$0 sm:$0xff]  ;;  %v1477_v5 = vld [vmem:[#allocation2 + $0x18] sm:$0xff]  ;;  %v1478_v6 = vld [vmem:[#allocation2 + $0x50] sm:$0xff] }
 0x231   : > { %v1479_v7 = vld [vmem:[#allocation2 + $0x68] sm:$0xff]  ;;  %v1480_v8 = vld [vmem:[#allocation2 + $0x30] sm:$0xff]  ;;  %v1510_v9 = vadd.f32 %v2789_v3, %v1474_v1  ;;  %v1511_v10 = vadd.f32 %v2789_v3, %v1475_v2  ;;  %v1512_v11 = vadd.f32 %v2789_v3, %v1476_v4  ;;  %v1513_v12 = vadd.f32 %v2789_v3, %v1477_v5  ;;  %v1482_v14 = vld [vmem:[#allocation2 + $0x80] sm:$0xff] }
 0x232   : > { %v1481_v13 = vld [vmem:[#allocation2 + $0x48] sm:$0xff]  ;;  %v1514_v16 = vadd.f32 %v2789_v3, %v1478_v6  ;;  %v1515_v17 = vadd.f32 %v2789_v3, %v1479_v7  ;;  %v1516_v18 = vadd.f32 %v2789_v3, %v1480_v8  ;;  %v1485_v21 = vld [vmem:[#allocation2 + $0xb8] sm:$0xff]  ;;  %v1486_v22 = vld [vmem:[#allocation2 + $0x60] sm:$0xff]  ;;  %v1518_v25 = vadd.f32 %v2789_v3, %v1482_v14 }
 0x233   : > { %v1483_v15 = vld [vmem:[#allocation2 + $0x88] sm:$0xff]  ;;  %v1517_v19 = vadd.f32 %v2789_v3, %v1481_v13  ;;  %v2188_v23 = vpack.c.bf16 %v1511_v10, %v1510_v9  ;;  %v2193_v24 = vpack.c.bf16 %v1513_v12, %v1512_v11  ;;  %v1487_v27 = vld [vmem:[#allocation2 + $0xf0] sm:$0xff]  ;;  %v1489_v29 = vld [vmem:[#allocation2 + $0x78] sm:$0xff]  ;;  %v1521_v33 = vadd.f32 %v2789_v3, %v1485_v21 }
 0x234   : > { %v1484_v20 = vld [vmem:[#allocation2 + $0xe8] sm:$0xff]  ;;  %v1519_v26 = vadd.f32 %v2789_v3, %v1483_v15  ;;  %v2198_v30 = vpack.c.bf16 %v1515_v17, %v1514_v16  ;;  %v1490_v34 = vld [vmem:[#allocation2 + $0x38] sm:$0xff]  ;;  %v1492_v36 = vld [vmem:[#allocation2 + $0x40] sm:$0xff]  ;;  %v1522_v38 = vadd.f32 %v2789_v3, %v1486_v22  ;;  %v1523_v39 = vadd.f32 %v2789_v3, %v1487_v27 }
 0x235   : > { %v1488_v28 = vld [vmem:[#allocation2 + $0x8] sm:$0xff]  ;;  %v2203_v31 = vpack.c.bf16 %v1517_v19, %v1516_v18  ;;  %v1520_v32 = vadd.f32 %v2789_v3, %v1484_v20  ;;  %v1491_v35 = vld [vmem:[#allocation2 + $0x58] sm:$0xff]  ;;  %2189 = vst [vmem:[%s2614_s24] sm:$0xff] %v2188_v23   ;;  %v1494_v42 = vld [vmem:[#allocation2 + $0xe0] sm:$0xff]  ;;  %v1525_v45 = vadd.f32 %v2789_v3, %v1489_v29  ;;  %v1526_v46 = vadd.f32 %v2789_v3, %v1490_v34 }
 0x236   : > { %v2208_v37 = vpack.c.bf16 %v1519_v26, %v1518_v25  ;;  %v1524_v40 = vadd.f32 %v2789_v3, %v1488_v28  ;;  %v1493_v41 = vld [vmem:[#allocation2 + $0xc8] sm:$0xff]  ;;  %v1495_v43 = vld [vmem:[#allocation2 + $0x90] sm:$0xff]  ;;  %2265 = vst [vmem:[%s2614_s24 + $0x8] sm:$0xff] %v2193_v24   ;;  %v1527_v47 = vadd.f32 %v2789_v3, %v1491_v35  ;;  %v1497_v49 = vld [vmem:[#allocation2 + $0xc0] sm:$0xff]  ;;  %v2218_v51 = vpack.c.bf16 %v1523_v39, %v1522_v38 }
 0x237   : > { %v2213_v44 = vpack.c.bf16 %v1521_v33, %v1520_v32  ;;  %v1496_v48 = vld [vmem:[#allocation2 + $0x70] sm:$0xff]  ;;  %v1498_v50 = vld [vmem:[#allocation2 + $0xa8] sm:$0xff]  ;;  %2266 = vst [vmem:[%s2614_s24 + $0x10] sm:$0xff] %v2198_v30   ;;  %v1528_v52 = vadd.f32 %v2789_v3, %v1492_v36  ;;  %v1529_v53 = vadd.f32 %v2789_v3, %v1493_v41  ;;  %v1530_v54 = vadd.f32 %v2789_v3, %v1494_v42  ;;  %v1502_v61 = vld [vmem:[#allocation2 + $0xa0] sm:$0xff] }
 0x238   : > { %v1499_v55 = vld [vmem:[#allocation2 + $0xd0] sm:$0xff]  ;;  %v1501_v57 = vld [vmem:[#allocation2 + $0x28] sm:$0xff]  ;;  %2267 = vst [vmem:[%s2614_s24 + $0x18] sm:$0xff] %v2203_v31   ;;  %v2223_v58 = vpack.c.bf16 %v1525_v45, %v1524_v40  ;;  %v1531_v59 = vadd.f32 %v2789_v3, %v1495_v43  ;;  %v1532_v60 = vadd.f32 %v2789_v3, %v1496_v48  ;;  %v1503_v62 = vld [vmem:[#allocation2 + $0xf8] sm:$0xff]  ;;  %v2228_v63 = vpack.c.bf16 %v1527_v47, %v1526_v46 }
 0x239   : > { %v1500_v56 = vld [vmem:[#allocation2 + $0x10] sm:$0xff]  ;;  %2268 = vst [vmem:[%s2614_s24 + $0x20] sm:$0xff] %v2208_v37   ;;  %v1533_v0 = vadd.f32 %v2789_v3, %v1497_v49  ;;  %v1534_v1 = vadd.f32 %v2789_v3, %v1498_v50  ;;  %v1535_v2 = vadd.f32 %v2789_v3, %v1499_v55  ;;  %v1504_v4 = vld [vmem:[#allocation2 + $0x20] sm:$0xff]  ;;  %v1505_v5 = vld [vmem:[#allocation2 + $0x98] sm:$0xff]  ;;  %v2233_v6 = vpack.c.bf16 %v1529_v53, %v1528_v52 }
 0x23a   : > { %2269 = vst [vmem:[%s2614_s24 + $0x28] sm:$0xff] %v2213_v44   ;;  %v1536_v7 = vadd.f32 %v2789_v3, %v1500_v56  ;;  %v1537_v8 = vadd.f32 %v2789_v3, %v1501_v57  ;;  %v2238_v9 = vpack.c.bf16 %v1531_v59, %v1530_v54  ;;  %v1538_v10 = vadd.f32 %v2789_v3, %v1502_v61 }
 0x23b   : > { %2270 = vst [vmem:[%s2614_s24 + $0x30] sm:$0xff] %v2218_v51   ;;  %v1539_v11 = vadd.f32 %v2789_v3, %v1503_v62  ;;  %v2243_v12 = vpack.c.bf16 %v1533_v0, %v1532_v60  ;;  %v1540_v13 = vadd.f32 %v2789_v3, %v1504_v4  ;;  %v1541_v14 = vadd.f32 %v2789_v3, %v1505_v5 }
 0x23c   : > { %2271 = vst [vmem:[%s2614_s24 + $0x38] sm:$0xff] %v2223_v58   ;;  %v2248_v15 = vpack.c.bf16 %v1535_v2, %v1534_v1  ;;  %v2253_v16 = vpack.c.bf16 %v1537_v8, %v1536_v7 }
 0x23d   : > { %2272 = vst [vmem:[%s2614_s24 + $0x40] sm:$0xff] %v2228_v63   ;;  %v2258_v17 = vpack.c.bf16 %v1539_v11, %v1538_v10  ;;  %v2263_v18 = vpack.c.bf16 %v1541_v14, %v1540_v13 }
 0x23e   : > { %2273 = vst [vmem:[%s2614_s24 + $0x48] sm:$0xff] %v2233_v6  }
 0x23f   : > { %2274 = vst [vmem:[%s2614_s24 + $0x50] sm:$0xff] %v2238_v9  }
 0x240   : > { %2275 = vst [vmem:[%s2614_s24 + $0x58] sm:$0xff] %v2243_v12  }
 0x241   : > { %2276 = vst [vmem:[%s2614_s24 + $0x60] sm:$0xff] %v2248_v15  }
 0x242   : > { %2277 = vst [vmem:[%s2614_s24 + $0x68] sm:$0xff] %v2253_v16  }
 0x243   : > { %2278 = vst [vmem:[%s2614_s24 + $0x70] sm:$0xff] %v2258_v17  }
 0x244   : > { %2279 = vst [vmem:[%s2614_s24 + $0x78] sm:$0xff] %v2263_v18  }
 0x245 PF: > { %s13_s18 = sadd.s32 1, %s2392_s18   ;;  %s2864_s12 = smov %s2372_s13 }
 0x246   : > { %p10_p13 = scmp.ge.s32.totalorder %s13_s18, 10   ;;  %s2865_s13 = smov %s2466_s25 }
 0x247   : > { %s2866_s14 = smov %s2384_s16  ;;  %s2867_s15 = smov %s2388_s17 }
 0x248   : > { %s2868_s16 = smov %s2871_s19  ;;  %s2869_s17 = smov %s2875_s20 }
 0x249   :  { %12 = sbr.rel (!%p10_p13) target bundleno = 4 (0x4), region = 99 }

// kernel: gcn_forward.8
= control target key start
LH: loop header
LB: loop body
LE: loop exit
PB: predicated region body
PF: predicated region fallthrough
CT: control target
= control target key end

     0   :  { %s2447_s12 = smov 0   ;;  %s2449_s13 = smov 0   ;;  %s2892_s0 = inlined_call_operand.vmem [shape: bf16[1024,1024], index: 0, kind: input, shape index: {}]   ;;  %s2893_s1 = inlined_call_operand.vmem [shape: bf16[1024,128], index: 1, kind: input, shape index: {}]   ;;  %s2894_s2 = inlined_call_operand.vmem [shape: f32[1,128], index: 2, kind: input, shape index: {}]   ;;  %s2895_s3 = inlined_call_operand.vmem [shape: bf16[1024,128], index: 3, kind: output, shape index: {}]  }
   0x1   :  { %s2451_s14 = smov 0   ;;  %s2453_s15 = smov 0  }
   0x2   :  { %s2455_s16 = smov 0   ;;  %s2457_s17 = smov 0  }
   0x3   :  { %s2459_s18 = smov 0  }
   0x4 LB: > { %s22_s19 = sadd.s32 1, %s2416_s16  ;;  %s25_s20 = sadd.s32 1, %s2420_s17  ;;  %s2424_s18 = sphi %s2459_s18, %s13_s18   ;;  %s2420_s17 = sphi %s2457_s17, %s2901_s17   ;;  %s2416_s16 = sphi %s2455_s16, %s2900_s16   ;;  %s2412_s15 = sphi %s2453_s15, %s2899_s15   ;;  %s2408_s14 = sphi %s2451_s14, %s2898_s14   ;;  %s2404_s13 = sphi %s2449_s13, %s2897_s13   ;;  %s2400_s12 = sphi %s2447_s12, %s2896_s12  }
   0x5   : > { %p23_p0 = scmp.ge.s32.totalorder %s22_s19, 2  ;;  %p41_p1 = scmp.ne.s32.totalorder %s2404_s13, %s2400_s12 }
   0x6   : > { %p42_p2 = scmp.eq.s32.totalorder %s2424_s18, 0  ;;  %s34_s24 = sadd.s32 1, %s2404_s13 }
   0x7   : > { %s2903_s19 = smov (%p23_p0, %s22_s19), 0  ;;  %s2905_s20 = smov (!%p23_p0, %s25_s20), %s2420_s17 }
   0x8   : > { %p43_p3 = por %p42_p2, %p41_p1  ;;  %p27_p4 = scmp.ge.s32.totalorder %s2905_s20, 4 }
   0x9   : > { %s30_s21 = ssub.s32 %s2416_s16, %s2903_s19  ;;  %p1720_p6 = scmp.ge.s32.totalorder %s2424_s18, 8 }
   0xa   : > { %s2907_s20 = smov (%p27_p4, %s2905_s20), 0 }
   0xb   : > { %s29_s22 = ssub.s32 %s2420_s17, %s2907_s20  ;;  %141 = sbr.rel (%p1720_p6) target bundleno = 87 (0x57), region = 24 }
   0xc   : > { %s31_s23 = sor.u32 %s30_s21, %s29_s22 }
   0xd   : > { %p32_p5 = scmp.eq.s32.totalorder %s31_s23, 0 }
   0xf   : > { %s2498_s25 = scalar_select %p32_p5, %s2404_s13, %s34_s24  }
  0x10   : > { %144 = sbr.rel (!%p43_p3) target bundleno = 87 (0x57), region = 28  ;;  %s146_s26 = sand.u32 (%p43_p3), 1, %s2404_s13  }
  0x11   : > { %s1723_s27 = sshll.u32 (%p43_p3), %s2416_s16, 2  ;;  %s1721_s28 = sshll.u32 (%p43_p3), %s146_s26, 9 }
  0x12   : > { %s2120_s29 = sshll.u32 (%p43_p3), %s2420_s17, 8  ;;  %s2512_s8 = scalar_lea.vmem (%p43_p3), [#allocation3], %s1721_s28 }
  0x13   : > { %s152_s30 = sadd.s32 (%p43_p3), %s2120_s29, %s1723_s27 }
  0x14   : > { %s1725_s4 = sshll.u32 (%p43_p3), %s152_s30, 2 }
  0x15   : > { %s2507_s7 = scalar_lea.vmem %s2892_s0, %s1725_s4 }
  0x16   : > { %v167_v0 = vld [vmem:[%s2507_s7] sm:$0xff]  ;;  %v169_v1 = vld [vmem:[%s2507_s7 + $0x8] sm:$0xff] }
  0x17   : > { %v171_v2 = vld [vmem:[%s2507_s7 + $0x20] sm:$0xff]  ;;  %168 = vst [vmem:[%s2512_s8] sm:$0xff] %v167_v0  ;;  %v173_v3 = vld [vmem:[%s2507_s7 + $0x28] sm:$0xff] }
  0x18   : > { %170 = vst [vmem:[%s2512_s8 + $0x8] sm:$0xff] %v169_v1  ;;  %v175_v4 = vld [vmem:[%s2507_s7 + $0x40] sm:$0xff]  ;;  %v177_v5 = vld [vmem:[%s2507_s7 + $0x48] sm:$0xff] }
  0x19   : > { %172 = vst [vmem:[%s2512_s8 + $0x10] sm:$0xff] %v171_v2  ;;  %v179_v6 = vld [vmem:[%s2507_s7 + $0x60] sm:$0xff]  ;;  %v181_v7 = vld [vmem:[%s2507_s7 + $0x68] sm:$0xff] }
  0x1a   : > { %174 = vst [vmem:[%s2512_s8 + $0x18] sm:$0xff] %v173_v3  ;;  %v183_v8 = vld [vmem:[%s2507_s7 + $0x80] sm:$0xff]  ;;  %v185_v9 = vld [vmem:[%s2507_s7 + $0x88] sm:$0xff] }
  0x1b   : > { %176 = vst [vmem:[%s2512_s8 + $0x20] sm:$0xff] %v175_v4  ;;  %v187_v10 = vld [vmem:[%s2507_s7 + $0xa0] sm:$0xff]  ;;  %v189_v11 = vld [vmem:[%s2507_s7 + $0xa8] sm:$0xff] }
  0x1c   : > { %178 = vst [vmem:[%s2512_s8 + $0x28] sm:$0xff] %v177_v5  ;;  %v191_v12 = vld [vmem:[%s2507_s7 + $0xc0] sm:$0xff]  ;;  %v193_v13 = vld [vmem:[%s2507_s7 + $0xc8] sm:$0xff] }
  0x1d   : > { %180 = vst [vmem:[%s2512_s8 + $0x30] sm:$0xff] %v179_v6  ;;  %v195_v14 = vld [vmem:[%s2507_s7 + $0xe0] sm:$0xff]  ;;  %v197_v15 = vld [vmem:[%s2507_s7 + $0xe8] sm:$0xff] }
  0x1e   : > { %182 = vst [vmem:[%s2512_s8 + $0x38] sm:$0xff] %v181_v7  ;;  %v199_v16 = vld [vmem:[%s2507_s7 + $0x100] sm:$0xff]  ;;  %v201_v17 = vld [vmem:[%s2507_s7 + $0x108] sm:$0xff] }
  0x1f   : > { %184 = vst [vmem:[%s2512_s8 + $0x40] sm:$0xff] %v183_v8  ;;  %v203_v18 = vld [vmem:[%s2507_s7 + $0x120] sm:$0xff]  ;;  %v205_v19 = vld [vmem:[%s2507_s7 + $0x128] sm:$0xff] }
  0x20   : > { %186 = vst [vmem:[%s2512_s8 + $0x48] sm:$0xff] %v185_v9  ;;  %v207_v20 = vld [vmem:[%s2507_s7 + $0x140] sm:$0xff]  ;;  %v209_v21 = vld [vmem:[%s2507_s7 + $0x148] sm:$0xff] }
  0x21   : > { %188 = vst [vmem:[%s2512_s8 + $0x50] sm:$0xff] %v187_v10  ;;  %v211_v22 = vld [vmem:[%s2507_s7 + $0x160] sm:$0xff]  ;;  %v213_v23 = vld [vmem:[%s2507_s7 + $0x168] sm:$0xff] }
  0x22   : > { %190 = vst [vmem:[%s2512_s8 + $0x58] sm:$0xff] %v189_v11  ;;  %v215_v24 = vld [vmem:[%s2507_s7 + $0x180] sm:$0xff]  ;;  %v217_v25 = vld [vmem:[%s2507_s7 + $0x188] sm:$0xff] }
  0x23   : > { %192 = vst [vmem:[%s2512_s8 + $0x60] sm:$0xff] %v191_v12  ;;  %v219_v26 = vld [vmem:[%s2507_s7 + $0x1a0] sm:$0xff]  ;;  %v221_v27 = vld [vmem:[%s2507_s7 + $0x1a8] sm:$0xff] }
  0x24   : > { %194 = vst [vmem:[%s2512_s8 + $0x68] sm:$0xff] %v193_v13  ;;  %v223_v28 = vld [vmem:[%s2507_s7 + $0x1c0] sm:$0xff]  ;;  %v225_v29 = vld [vmem:[%s2507_s7 + $0x1c8] sm:$0xff] }
  0x25   : > { %196 = vst [vmem:[%s2512_s8 + $0x70] sm:$0xff] %v195_v14  ;;  %v227_v30 = vld [vmem:[%s2507_s7 + $0x1e0] sm:$0xff]  ;;  %v229_v31 = vld [vmem:[%s2507_s7 + $0x1e8] sm:$0xff] }
  0x26   : > { %198 = vst [vmem:[%s2512_s8 + $0x78] sm:$0xff] %v197_v15  ;;  %v231_v32 = vld [vmem:[%s2507_s7 + $0x200] sm:$0xff]  ;;  %v233_v33 = vld [vmem:[%s2507_s7 + $0x208] sm:$0xff] }
  0x27   : > { %200 = vst [vmem:[%s2512_s8 + $0x80] sm:$0xff] %v199_v16  ;;  %v235_v34 = vld [vmem:[%s2507_s7 + $0x220] sm:$0xff]  ;;  %v237_v35 = vld [vmem:[%s2507_s7 + $0x228] sm:$0xff] }
  0x28   : > { %202 = vst [vmem:[%s2512_s8 + $0x88] sm:$0xff] %v201_v17  ;;  %v239_v36 = vld [vmem:[%s2507_s7 + $0x240] sm:$0xff]  ;;  %v241_v37 = vld [vmem:[%s2507_s7 + $0x248] sm:$0xff] }
  0x29   : > { %204 = vst [vmem:[%s2512_s8 + $0x90] sm:$0xff] %v203_v18  ;;  %v243_v38 = vld [vmem:[%s2507_s7 + $0x260] sm:$0xff]  ;;  %v245_v39 = vld [vmem:[%s2507_s7 + $0x268] sm:$0xff] }
  0x2a   : > { %206 = vst [vmem:[%s2512_s8 + $0x98] sm:$0xff] %v205_v19  ;;  %v247_v40 = vld [vmem:[%s2507_s7 + $0x280] sm:$0xff]  ;;  %v249_v41 = vld [vmem:[%s2507_s7 + $0x288] sm:$0xff] }
  0x2b   : > { %208 = vst [vmem:[%s2512_s8 + $0xa0] sm:$0xff] %v207_v20  ;;  %v251_v42 = vld [vmem:[%s2507_s7 + $0x2a0] sm:$0xff]  ;;  %v253_v43 = vld [vmem:[%s2507_s7 + $0x2a8] sm:$0xff] }
  0x2c   : > { %210 = vst [vmem:[%s2512_s8 + $0xa8] sm:$0xff] %v209_v21  ;;  %v255_v44 = vld [vmem:[%s2507_s7 + $0x2c0] sm:$0xff]  ;;  %v257_v45 = vld [vmem:[%s2507_s7 + $0x2c8] sm:$0xff] }
  0x2d   : > { %212 = vst [vmem:[%s2512_s8 + $0xb0] sm:$0xff] %v211_v22  ;;  %v259_v46 = vld [vmem:[%s2507_s7 + $0x2e0] sm:$0xff]  ;;  %v261_v47 = vld [vmem:[%s2507_s7 + $0x2e8] sm:$0xff] }
  0x2e   : > { %214 = vst [vmem:[%s2512_s8 + $0xb8] sm:$0xff] %v213_v23  ;;  %v263_v48 = vld [vmem:[%s2507_s7 + $0x300] sm:$0xff]  ;;  %v265_v49 = vld [vmem:[%s2507_s7 + $0x308] sm:$0xff] }
  0x2f   : > { %216 = vst [vmem:[%s2512_s8 + $0xc0] sm:$0xff] %v215_v24  ;;  %v267_v50 = vld [vmem:[%s2507_s7 + $0x320] sm:$0xff]  ;;  %v269_v51 = vld [vmem:[%s2507_s7 + $0x328] sm:$0xff] }
  0x30   : > { %218 = vst [vmem:[%s2512_s8 + $0xc8] sm:$0xff] %v217_v25  ;;  %v271_v52 = vld [vmem:[%s2507_s7 + $0x340] sm:$0xff]  ;;  %v273_v53 = vld [vmem:[%s2507_s7 + $0x348] sm:$0xff] }
  0x31   : > { %220 = vst [vmem:[%s2512_s8 + $0xd0] sm:$0xff] %v219_v26  ;;  %v275_v54 = vld [vmem:[%s2507_s7 + $0x360] sm:$0xff]  ;;  %v277_v55 = vld [vmem:[%s2507_s7 + $0x368] sm:$0xff] }
  0x32   : > { %222 = vst [vmem:[%s2512_s8 + $0xd8] sm:$0xff] %v221_v27  ;;  %v279_v56 = vld [vmem:[%s2507_s7 + $0x380] sm:$0xff]  ;;  %v281_v57 = vld [vmem:[%s2507_s7 + $0x388] sm:$0xff] }
  0x33   : > { %224 = vst [vmem:[%s2512_s8 + $0xe0] sm:$0xff] %v223_v28  ;;  %v283_v58 = vld [vmem:[%s2507_s7 + $0x3a0] sm:$0xff]  ;;  %v285_v59 = vld [vmem:[%s2507_s7 + $0x3a8] sm:$0xff] }
  0x34   : > { %226 = vst [vmem:[%s2512_s8 + $0xe8] sm:$0xff] %v225_v29  ;;  %v287_v60 = vld [vmem:[%s2507_s7 + $0x3c0] sm:$0xff]  ;;  %v289_v61 = vld [vmem:[%s2507_s7 + $0x3c8] sm:$0xff] }
  0x35   : > { %228 = vst [vmem:[%s2512_s8 + $0xf0] sm:$0xff] %v227_v30  ;;  %v291_v62 = vld [vmem:[%s2507_s7 + $0x3e0] sm:$0xff]  ;;  %v293_v63 = vld [vmem:[%s2507_s7 + $0x3e8] sm:$0xff] }
  0x36   : > { %230 = vst [vmem:[%s2512_s8 + $0xf8] sm:$0xff] %v229_v31 }
  0x37   : > { %232 = vst [vmem:[%s2512_s8 + $0x100] sm:$0xff] %v231_v32 }
  0x38   : > { %234 = vst [vmem:[%s2512_s8 + $0x108] sm:$0xff] %v233_v33 }
  0x39   : > { %236 = vst [vmem:[%s2512_s8 + $0x110] sm:$0xff] %v235_v34 }
  0x3a   : > { %238 = vst [vmem:[%s2512_s8 + $0x118] sm:$0xff] %v237_v35 }
  0x3b   : > { %240 = vst [vmem:[%s2512_s8 + $0x120] sm:$0xff] %v239_v36 }
  0x3c   : > { %242 = vst [vmem:[%s2512_s8 + $0x128] sm:$0xff] %v241_v37 }
  0x3d   : > { %244 = vst [vmem:[%s2512_s8 + $0x130] sm:$0xff] %v243_v38 }
  0x3e   : > { %246 = vst [vmem:[%s2512_s8 + $0x138] sm:$0xff] %v245_v39 }
  0x3f   : > { %248 = vst [vmem:[%s2512_s8 + $0x140] sm:$0xff] %v247_v40 }
  0x40   : > { %250 = vst [vmem:[%s2512_s8 + $0x148] sm:$0xff] %v249_v41 }
  0x41   : > { %252 = vst [vmem:[%s2512_s8 + $0x150] sm:$0xff] %v251_v42 }
  0x42   : > { %254 = vst [vmem:[%s2512_s8 + $0x158] sm:$0xff] %v253_v43 }
  0x43   : > { %256 = vst [vmem:[%s2512_s8 + $0x160] sm:$0xff] %v255_v44 }
  0x44   : > { %258 = vst [vmem:[%s2512_s8 + $0x168] sm:$0xff] %v257_v45 }
  0x45   : > { %260 = vst [vmem:[%s2512_s8 + $0x170] sm:$0xff] %v259_v46 }
  0x46   : > { %262 = vst [vmem:[%s2512_s8 + $0x178] sm:$0xff] %v261_v47 }
  0x47   : > { %264 = vst [vmem:[%s2512_s8 + $0x180] sm:$0xff] %v263_v48 }
  0x48   : > { %266 = vst [vmem:[%s2512_s8 + $0x188] sm:$0xff] %v265_v49 }
  0x49   : > { %268 = vst [vmem:[%s2512_s8 + $0x190] sm:$0xff] %v267_v50 }
  0x4a   : > { %270 = vst [vmem:[%s2512_s8 + $0x198] sm:$0xff] %v269_v51 }
  0x4b   : > { %272 = vst [vmem:[%s2512_s8 + $0x1a0] sm:$0xff] %v271_v52 }
  0x4c   : > { %274 = vst [vmem:[%s2512_s8 + $0x1a8] sm:$0xff] %v273_v53 }
  0x4d   : > { %276 = vst [vmem:[%s2512_s8 + $0x1b0] sm:$0xff] %v275_v54 }
  0x4e   : > { %278 = vst [vmem:[%s2512_s8 + $0x1b8] sm:$0xff] %v277_v55 }
  0x4f   : > { %280 = vst [vmem:[%s2512_s8 + $0x1c0] sm:$0xff] %v279_v56 }
  0x50   : > { %282 = vst [vmem:[%s2512_s8 + $0x1c8] sm:$0xff] %v281_v57 }
  0x51   : > { %284 = vst [vmem:[%s2512_s8 + $0x1d0] sm:$0xff] %v283_v58 }
  0x52   : > { %286 = vst [vmem:[%s2512_s8 + $0x1d8] sm:$0xff] %v285_v59 }
  0x53   : > { %288 = vst [vmem:[%s2512_s8 + $0x1e0] sm:$0xff] %v287_v60 }
  0x54   : > { %290 = vst [vmem:[%s2512_s8 + $0x1e8] sm:$0xff] %v289_v61 }
  0x55   : > { %292 = vst [vmem:[%s2512_s8 + $0x1f0] sm:$0xff] %v291_v62 }
  0x56   : > { %294 = vst [vmem:[%s2512_s8 + $0x1f8] sm:$0xff] %v293_v63 }
  0x57 PF: > { %p1726_p7 = scmp.ge.s32.totalorder %s2424_s18, 1  ;;  %p299_p8 = scmp.lt.s32.totalorder %s2424_s18, 9 }
  0x59   : > { %p300_p9 = pnand %p1726_p7, %p299_p8 }
  0x5a   : > { %s306_s9 = sand.u32 (!%p300_p9), 1, %s2400_s12   ;;  %s1728_s10 = sshll.u32 (!%p300_p9), %s2412_s15, 5 }
  0x5b   : > { %303 = sbr.rel (%p300_p9) target bundleno = 585 (0x249), region = 51  ;;  %s1727_s11 = sshll.u32 (!%p300_p9), %s306_s9, 9 }
  0x5c   : > { %p332_p10 = scmp.lt.s32.totalorder (!%p300_p9), %s1728_s10, 127  ;;  %s2648_s26 = scalar_lea.vmem (!%p300_p9), [#allocation3], %s1727_s11 }
  0x5d   : > { %p1730_p11 = scmp.ne.s32.totalorder (!%p300_p9), %s2408_s14, 0 }
  0x60   : > { %s2909_s10 = smov (!%p332_p10, %s1728_s10), 127  ;;  %340 = sbr.rel (%p1730_p11) target bundleno = 134 (0x86), region = 59 }
  0x61   : > { %s1729_s21 = sshll.u32 %s2909_s10, 2 }
  0x62   : > { %s2646_s24 = scalar_lea.vmem %s2895_s3, %s1729_s21 }
  0x65   : > { %v2426_v0 = vmov 0.0  }
  0x66   : > { %341 = vst [vmem:[#allocation2 + $0xb0] sm:$0xff] %v2426_v0 }
  0x67   : > { %342 = vst [vmem:[#allocation2] sm:$0xff] %v2426_v0 }
  0x68   : > { %343 = vst [vmem:[#allocation2 + $0xd8] sm:$0xff] %v2426_v0 }
  0x69   : > { %344 = vst [vmem:[#allocation2 + $0x18] sm:$0xff] %v2426_v0 }
  0x6a   : > { %345 = vst [vmem:[#allocation2 + $0x50] sm:$0xff] %v2426_v0 }
  0x6b   : > { %346 = vst [vmem:[#allocation2 + $0x68] sm:$0xff] %v2426_v0 }
  0x6c   : > { %347 = vst [vmem:[#allocation2 + $0x30] sm:$0xff] %v2426_v0 }
  0x6d   : > { %348 = vst [vmem:[#allocation2 + $0x48] sm:$0xff] %v2426_v0 }
  0x6e   : > { %349 = vst [vmem:[#allocation2 + $0x80] sm:$0xff] %v2426_v0 }
  0x6f   : > { %350 = vst [vmem:[#allocation2 + $0x88] sm:$0xff] %v2426_v0 }
  0x70   : > { %351 = vst [vmem:[#allocation2 + $0xe8] sm:$0xff] %v2426_v0 }
  0x71   : > { %352 = vst [vmem:[#allocation2 + $0xb8] sm:$0xff] %v2426_v0 }
  0x72   : > { %353 = vst [vmem:[#allocation2 + $0x60] sm:$0xff] %v2426_v0 }
  0x73   : > { %354 = vst [vmem:[#allocation2 + $0xf0] sm:$0xff] %v2426_v0 }
  0x74   : > { %355 = vst [vmem:[#allocation2 + $0x8] sm:$0xff] %v2426_v0 }
  0x75   : > { %356 = vst [vmem:[#allocation2 + $0x78] sm:$0xff] %v2426_v0 }
  0x76   : > { %357 = vst [vmem:[#allocation2 + $0x38] sm:$0xff] %v2426_v0 }
  0x77   : > { %358 = vst [vmem:[#allocation2 + $0x58] sm:$0xff] %v2426_v0 }
  0x78   : > { %359 = vst [vmem:[#allocation2 + $0x40] sm:$0xff] %v2426_v0 }
  0x79   : > { %360 = vst [vmem:[#allocation2 + $0xc8] sm:$0xff] %v2426_v0 }
  0x7a   : > { %361 = vst [vmem:[#allocation2 + $0xe0] sm:$0xff] %v2426_v0 }
  0x7b   : > { %362 = vst [vmem:[#allocation2 + $0x90] sm:$0xff] %v2426_v0 }
  0x7c   : > { %363 = vst [vmem:[#allocation2 + $0x70] sm:$0xff] %v2426_v0 }
  0x7d   : > { %364 = vst [vmem:[#allocation2 + $0xc0] sm:$0xff] %v2426_v0 }
  0x7e   : > { %365 = vst [vmem:[#allocation2 + $0xa8] sm:$0xff] %v2426_v0 }
  0x7f   : > { %366 = vst [vmem:[#allocation2 + $0xd0] sm:$0xff] %v2426_v0 }
  0x80   : > { %367 = vst [vmem:[#allocation2 + $0x10] sm:$0xff] %v2426_v0 }
  0x81   : > { %368 = vst [vmem:[#allocation2 + $0x28] sm:$0xff] %v2426_v0 }
  0x82   : > { %369 = vst [vmem:[#allocation2 + $0xa0] sm:$0xff] %v2426_v0 }
  0x83   : > { %370 = vst [vmem:[#allocation2 + $0xf8] sm:$0xff] %v2426_v0 }
  0x84   : > { %371 = vst [vmem:[#allocation2 + $0x20] sm:$0xff] %v2426_v0 }
  0x85   : > { %372 = vst [vmem:[#allocation2 + $0x98] sm:$0xff] %v2426_v0 }
  0x86 PF: > { %s1731_s12 = sshll.u32 %s2408_s14, 9  ;;  %v1735_v29 = vld [vmem:[%s2648_s26] sm:$0xf]  ;;  %v2123_v30 = vld [vmem:[%s2648_s26 + $0xc] sm:$0xf0]  ;;  %p2117_p12 = scmp.ne.s32.totalorder %s2408_s14, 1 }
  0x87   : > { %s470_s15 = sshra.s32 %s1731_s12, 3  ;;  %v2121_v31 = vld [vmem:[%s2648_s26 + $0x4] sm:$0xf]  ;;  %v1737_v36 = vld [vmem:[%s2648_s26 + $0x10] sm:$0xf0]  ;;  %v1736_v41 = vor.u32 %v2123_v30, %v1735_v29 }
  0x88   : > { %s1732_s27 = sshll.u32 %s470_s15, 2  ;;  %v1743_v37 = vld [vmem:[%s2648_s26 + $0x8] sm:$0xf]  ;;  %v2124_v38 = vld [vmem:[%s2648_s26 + $0x14] sm:$0xf0]  ;;  %v1740_v42 = vor.u32 %v2121_v31, %v1737_v36 }
  0x89   : > { %s2655_s30 = scalar_lea.vmem %s2893_s1, %s1732_s27  ;;  %v2122_v39 = vld [vmem:[%s2648_s26 + $0xc] sm:$0xf]  ;;  %v1745_v40 = vld [vmem:[%s2648_s26 + $0x18] sm:$0xf0]  ;;  %v1744_v43 = vor.u32 %v2124_v38, %v1743_v37  ;;  %v1751_v45 = vld [vmem:[%s2648_s26 + $0x20] sm:$0xf] }
  0x8a   : > { %v2192_v1 = vld [vmem:[%s2655_s30 + $0x38] sm:$0xff]  ;;  %v2191_v5 = vld [vmem:[%s2655_s30 + $0x30] sm:$0xff]  ;;  %v2190_v9 = vld [vmem:[%s2655_s30 + $0x28] sm:$0xff]  ;;  %v1748_v44 = vor.u32 %v2122_v39, %v1745_v40 }
  0x8b   : > { %v2200_v2 = vld [vmem:[%s2655_s30 + $0x78] sm:$0xff]  ;;  %1050 = vmatpush.bf16.msra.mxu0 %v2192_v1  ;;  %v2199_v6 = vld [vmem:[%s2655_s30 + $0x70] sm:$0xff]  ;;  %v2198_v10 = vld [vmem:[%s2655_s30 + $0x68] sm:$0xff] }
  0x8c   : > { %v2208_v3 = vld [vmem:[%s2655_s30 + $0xb8] sm:$0xff]  ;;  %1139 = vmatpush.bf16.msra.mxu1 %v2200_v2  ;;  %v2207_v7 = vld [vmem:[%s2655_s30 + $0xb0] sm:$0xff]  ;;  %v2206_v11 = vld [vmem:[%s2655_s30 + $0xa8] sm:$0xff] }
  0x8d   : > { %v2216_v4 = vld [vmem:[%s2655_s30 + $0xf8] sm:$0xff]  ;;  %1228 = vmatpush.bf16.msra.mxu2 %v2208_v3  ;;  %v2215_v8 = vld [vmem:[%s2655_s30 + $0xf0] sm:$0xff]  ;;  %v2214_v12 = vld [vmem:[%s2655_s30 + $0xe8] sm:$0xff] }
  0x8e   : > { %1317 = vmatpush.bf16.msra.mxu3 %v2216_v4  ;;  %v2189_v13 = vld [vmem:[%s2655_s30 + $0x20] sm:$0xff]  ;;  %v2188_v17 = vld [vmem:[%s2655_s30 + $0x18] sm:$0xff]  ;;  %v2187_v21 = vld [vmem:[%s2655_s30 + $0x10] sm:$0xff] }
  0x8f   : > { %1051 = vmatpush.bf16.msra.mxu0 %v2191_v5  ;;  %v2197_v14 = vld [vmem:[%s2655_s30 + $0x60] sm:$0xff]  ;;  %v2196_v18 = vld [vmem:[%s2655_s30 + $0x58] sm:$0xff]  ;;  %v2195_v22 = vld [vmem:[%s2655_s30 + $0x50] sm:$0xff] }
  0x90   : > { %1140 = vmatpush.bf16.msra.mxu1 %v2199_v6  ;;  %v2205_v15 = vld [vmem:[%s2655_s30 + $0xa0] sm:$0xff]  ;;  %v2204_v19 = vld [vmem:[%s2655_s30 + $0x98] sm:$0xff]  ;;  %v2203_v23 = vld [vmem:[%s2655_s30 + $0x90] sm:$0xff] }
  0x91   : > { %1229 = vmatpush.bf16.msra.mxu2 %v2207_v7  ;;  %v2213_v16 = vld [vmem:[%s2655_s30 + $0xe0] sm:$0xff]  ;;  %v2212_v20 = vld [vmem:[%s2655_s30 + $0xd8] sm:$0xff]  ;;  %v2211_v24 = vld [vmem:[%s2655_s30 + $0xd0] sm:$0xff] }
  0x92   : > { %1318 = vmatpush.bf16.msra.mxu3 %v2215_v8  ;;  %v2186_v25 = vld [vmem:[%s2655_s30 + $0x8] sm:$0xff]  ;;  %v2185_v32 = vld [vmem:[%s2655_s30] sm:$0xff]  ;;  %v2127_v46 = vld [vmem:[%s2648_s26 + $0x2c] sm:$0xf0] }
  0x93   : > { %1052 = vmatpush.bf16.msra.mxu0 %v2190_v9  ;;  %v2194_v26 = vld [vmem:[%s2655_s30 + $0x48] sm:$0xff]  ;;  %v2193_v33 = vld [vmem:[%s2655_s30 + $0x40] sm:$0xff]  ;;  %v1753_v48 = vld [vmem:[%s2648_s26 + $0x30] sm:$0xf0]  ;;  %v1752_v53 = vor.u32 %v2127_v46, %v1751_v45 }
  0x94   : > { %1141 = vmatpush.bf16.msra.mxu1 %v2198_v10  ;;  %v2202_v27 = vld [vmem:[%s2655_s30 + $0x88] sm:$0xff]  ;;  %v2201_v34 = vld [vmem:[%s2655_s30 + $0x80] sm:$0xff]  ;;  %v2128_v50 = vld [vmem:[%s2648_s26 + $0x34] sm:$0xf0] }
  0x95   : > { %1230 = vmatpush.bf16.msra.mxu2 %v2206_v11  ;;  %v2210_v28 = vld [vmem:[%s2655_s30 + $0xc8] sm:$0xff]  ;;  %v2209_v35 = vld [vmem:[%s2655_s30 + $0xc0] sm:$0xff]  ;;  %v1761_v52 = vld [vmem:[%s2648_s26 + $0x38] sm:$0xf0] }
  0x96   : > { %1319 = vmatpush.bf16.msra.mxu3 %v2214_v12  ;;  %v2125_v47 = vld [vmem:[%s2648_s26 + $0x24] sm:$0xf]  ;;  %v1759_v49 = vld [vmem:[%s2648_s26 + $0x28] sm:$0xf]  ;;  %v2126_v51 = vld [vmem:[%s2648_s26 + $0x2c] sm:$0xf] }
  0x97   : > { %1053 = vmatpush.bf16.msra.mxu0 %v2189_v13  ;;  %v1756_v54 = vor.u32 %v2125_v47, %v1753_v48  ;;  %v1760_v55 = vor.u32 %v2128_v50, %v1759_v49  ;;  %v1764_v56 = vor.u32 %v2126_v51, %v1761_v52  ;;  %v1767_v57 = vld [vmem:[%s2648_s26 + $0x40] sm:$0xf]  ;;  %v2131_v58 = vld [vmem:[%s2648_s26 + $0x4c] sm:$0xf0]  ;;  %v2129_v59 = vld [vmem:[%s2648_s26 + $0x44] sm:$0xf] }
  0x98   : > { %1142 = vmatpush.bf16.msra.mxu1 %v2197_v14  ;;  %v1769_v60 = vld [vmem:[%s2648_s26 + $0x50] sm:$0xf0]  ;;  %v1775_v61 = vld [vmem:[%s2648_s26 + $0x48] sm:$0xf]  ;;  %v2132_v62 = vld [vmem:[%s2648_s26 + $0x54] sm:$0xf0]  ;;  %v1768_v1 = vor.u32 %v2131_v58, %v1767_v57 }
  0x99   : > { %1231 = vmatpush.bf16.msra.mxu2 %v2205_v15  ;;  %v2130_v63 = vld [vmem:[%s2648_s26 + $0x4c] sm:$0xf]  ;;  %v1777_v0 = vld [vmem:[%s2648_s26 + $0x58] sm:$0xf0]  ;;  %v1772_v2 = vor.u32 %v2129_v59, %v1769_v60  ;;  %v1776_v3 = vor.u32 %v2132_v62, %v1775_v61  ;;  %v1783_v5 = vld [vmem:[%s2648_s26 + $0x60] sm:$0xf] }
  0x9a   : > { %1320 = vmatpush.bf16.msra.mxu3 %v2213_v16  ;;  %v1780_v4 = vor.u32 %v2130_v63, %v1777_v0  ;;  %v2135_v6 = vld [vmem:[%s2648_s26 + $0x6c] sm:$0xf0]  ;;  %v2133_v7 = vld [vmem:[%s2648_s26 + $0x64] sm:$0xf]  ;;  %v1785_v8 = vld [vmem:[%s2648_s26 + $0x70] sm:$0xf0] }
  0x9b   : > { %1054 = vmatpush.bf16.msra.mxu0 %v2188_v17  ;;  %v1791_v9 = vld [vmem:[%s2648_s26 + $0x68] sm:$0xf]  ;;  %v2136_v10 = vld [vmem:[%s2648_s26 + $0x74] sm:$0xf0]  ;;  %v2134_v11 = vld [vmem:[%s2648_s26 + $0x6c] sm:$0xf]  ;;  %v1784_v13 = vor.u32 %v2135_v6, %v1783_v5  ;;  %v1788_v14 = vor.u32 %v2133_v7, %v1785_v8 }
  0x9c   : > { %1143 = vmatpush.bf16.msra.mxu1 %v2196_v18  ;;  %v1793_v12 = vld [vmem:[%s2648_s26 + $0x78] sm:$0xf0]  ;;  %v1792_v15 = vor.u32 %v2136_v10, %v1791_v9  ;;  %v1799_v17 = vld [vmem:[%s2648_s26 + $0x80] sm:$0xf]  ;;  %v2139_v18 = vld [vmem:[%s2648_s26 + $0x8c] sm:$0xf0] }
  0x9d   : > { %1232 = vmatpush.bf16.msra.mxu2 %v2204_v19  ;;  %v1796_v16 = vor.u32 %v2134_v11, %v1793_v12  ;;  %v2137_v19 = vld [vmem:[%s2648_s26 + $0x84] sm:$0xf]  ;;  %v1815_v29 = vld [vmem:[%s2648_s26 + $0xa0] sm:$0xf]  ;;  %v2143_v30 = vld [vmem:[%s2648_s26 + $0xac] sm:$0xf0] }
  0x9e   : > { %1321 = vmatpush.bf16.msra.mxu3 %v2212_v20  ;;  %v1801_v20 = vld [vmem:[%s2648_s26 + $0x90] sm:$0xf0]  ;;  %v2141_v31 = vld [vmem:[%s2648_s26 + $0xa4] sm:$0xf]  ;;  %v1825_v36 = vld [vmem:[%s2648_s26 + $0xb8] sm:$0xf0]  ;;  %v1816_v37 = vor.u32 %v2143_v30, %v1815_v29 }
  0x9f   : > { %1055 = vmatpush.bf16.msra.mxu0 %v2187_v21  ;;  %v1807_v21 = vld [vmem:[%s2648_s26 + $0x88] sm:$0xf]  ;;  %v2148_v46 = vld [vmem:[%s2648_s26 + $0xd4] sm:$0xf0]  ;;  %v2146_v47 = vld [vmem:[%s2648_s26 + $0xcc] sm:$0xf] }
  0xa0   : > { %1144 = vmatpush.bf16.msra.mxu1 %v2195_v22  ;;  %v2140_v22 = vld [vmem:[%s2648_s26 + $0x94] sm:$0xf0]  ;;  %v1839_v45 = vld [vmem:[%s2648_s26 + $0xc8] sm:$0xf]  ;;  %v1841_v48 = vld [vmem:[%s2648_s26 + $0xd8] sm:$0xf0] }
  0xa1   : > { %1233 = vmatpush.bf16.msra.mxu2 %v2203_v23  ;;  %v2138_v23 = vld [vmem:[%s2648_s26 + $0x8c] sm:$0xf]  ;;  %v1840_v51 = vor.u32 %v2148_v46, %v1839_v45  ;;  %v1844_v52 = vor.u32 %v2146_v47, %v1841_v48  ;;  %v1855_v57 = vld [vmem:[%s2648_s26 + $0xe8] sm:$0xf]  ;;  %v2152_v58 = vld [vmem:[%s2648_s26 + $0xf4] sm:$0xf0] }
  0xa2   : > { %1322 = vmatpush.bf16.msra.mxu3 %v2211_v24  ;;  %v1809_v24 = vld [vmem:[%s2648_s26 + $0x98] sm:$0xf0]  ;;  %v2150_v59 = vld [vmem:[%s2648_s26 + $0xec] sm:$0xf]  ;;  %v1856_v63 = vor.u32 %v2152_v58, %v1855_v57  ;;  %v1871_v5 = vld [vmem:[%s2648_s26 + $0x108] sm:$0xf] }
  0xa3   : > { %1056 = vmatpush.bf16.msra.mxu0 %v2186_v25  ;;  %v1800_v25 = vor.u32 %v2139_v18, %v1799_v17  ;;  %v1857_v60 = vld [vmem:[%s2648_s26 + $0xf8] sm:$0xf0]  ;;  %v2156_v6 = vld [vmem:[%s2648_s26 + $0x114] sm:$0xf0]  ;;  %v2154_v7 = vld [vmem:[%s2648_s26 + $0x10c] sm:$0xf] }
  0xa4   : > { %1145 = vmatpush.bf16.msra.mxu1 %v2194_v26  ;;  %v1804_v26 = vor.u32 %v2137_v19, %v1801_v20  ;;  %v1860_v0 = vor.u32 %v2150_v59, %v1857_v60  ;;  %v1873_v8 = vld [vmem:[%s2648_s26 + $0x118] sm:$0xf0]  ;;  %v2160_v29 = vld [vmem:[%s2648_s26 + $0x134] sm:$0xf0]  ;;  %v2158_v30 = vld [vmem:[%s2648_s26 + $0x12c] sm:$0xf] }
  0xa5   : > { %1234 = vmatpush.bf16.msra.mxu2 %v2202_v27  ;;  %v1808_v27 = vor.u32 %v2140_v22, %v1807_v21  ;;  %v374_v21 = vld [vmem:[#allocation2 + $0xb0] sm:$0xff]  ;;  %v1903_v58 = vld [vmem:[%s2648_s26 + $0x148] sm:$0xf]  ;;  %v2164_v59 = vld [vmem:[%s2648_s26 + $0x154] sm:$0xf0] }
  0xa6   : > { %1323 = vmatpush.bf16.msra.mxu3 %v2210_v28  ;;  %v1812_v28 = vor.u32 %v2138_v23, %v1809_v24  ;;  %v1879_v23 = vld [vmem:[%s2648_s26 + $0x120] sm:$0xf]  ;;  %v2159_v24 = vld [vmem:[%s2648_s26 + $0x12c] sm:$0xf0]  ;;  %v1897_v57 = vld [vmem:[%s2648_s26 + $0x150] sm:$0xf0] }
  0xa7   : > { %1057 = vmatpush.bf16.msra.mxu0 %v2185_v32  ;;  %v1817_v32 = vld [vmem:[%s2648_s26 + $0xb0] sm:$0xf0]  ;;  %v2162_v60 = vld [vmem:[%s2648_s26 + $0x14c] sm:$0xf] }
  0xa8   : > { %1146 = vmatpush.bf16.msra.mxu1 %v2193_v33  ;;  %v1823_v33 = vld [vmem:[%s2648_s26 + $0xa8] sm:$0xf]  ;;  %v1820_v38 = vor.u32 %v2141_v31, %v1817_v32  ;;  %v1889_v31 = vld [vmem:[%s2648_s26 + $0x138] sm:$0xf0] }
  0xa9   : > { %1235 = vmatpush.bf16.msra.mxu2 %v2201_v34  ;;  %v2144_v34 = vld [vmem:[%s2648_s26 + $0xb4] sm:$0xf0] }
  0xaa   : > { %1324 = vmatpush.bf16.msra.mxu3 %v2209_v35  ;;  %1058 = vmatmul.bf16.vlgmr.msra.gmra.mxu0 %v1736_v41  ;;  %v2142_v35 = vld [vmem:[%s2648_s26 + $0xac] sm:$0xf]  ;;  %v1824_v39 = vor.u32 %v2144_v34, %v1823_v33  ;;  %v1831_v41 = vld [vmem:[%s2648_s26 + $0xc0] sm:$0xf] }
  0xab   : > { %1147 = vmatmul.bf16.vlgmr.msra.gmra.mxu1 %v1740_v42  ;;  %v1828_v40 = vor.u32 %v2142_v35, %v1825_v36  ;;  %v2147_v42 = vld [vmem:[%s2648_s26 + $0xcc] sm:$0xf0]  ;;  %v1880_v35 = vor.u32 %v2159_v24, %v1879_v23  ;;  %v1913_v23 = vld [vmem:[%s2648_s26 + $0x170] sm:$0xf0]  ;;  %v1919_v24 = vld [vmem:[%s2648_s26 + $0x168] sm:$0xf] }
  0xac   : > { %1236 = vmatmul.bf16.vlgmr.msra.gmra.mxu2 %v1744_v43  ;;  %v2145_v43 = vld [vmem:[%s2648_s26 + $0xc4] sm:$0xf]  ;;  %v1832_v49 = vor.u32 %v2147_v42, %v1831_v41  ;;  %v1892_v41 = vor.u32 %v2158_v30, %v1889_v31 }
  0xad   : > { %1325 = vmatmul.bf16.vlgmr.msra.gmra.mxu3 %v1748_v44  ;;  %v1833_v44 = vld [vmem:[%s2648_s26 + $0xd0] sm:$0xf0]  ;;  %v375_v42 = vld [vmem:[#allocation2] sm:$0xff] }
  0xae   : > { %v1836_v50 = vor.u32 %v2145_v43, %v1833_v44 }
  0xba   : > { %1063 = vmatmul.bf16.gmra.mxu0 %v1752_v53  ;;  %v1847_v53 = vld [vmem:[%s2648_s26 + $0xe0] sm:$0xf] }
  0xbb   : > { %1152 = vmatmul.bf16.gmra.mxu1 %v1756_v54  ;;  %v2151_v54 = vld [vmem:[%s2648_s26 + $0xec] sm:$0xf0] }
  0xbc   : > { %1241 = vmatmul.bf16.gmra.mxu2 %v1760_v55  ;;  %v2149_v55 = vld [vmem:[%s2648_s26 + $0xe4] sm:$0xf]  ;;  %v1848_v61 = vor.u32 %v2151_v54, %v1847_v53  ;;  %v1895_v53 = vld [vmem:[%s2648_s26 + $0x140] sm:$0xf]  ;;  %v2163_v54 = vld [vmem:[%s2648_s26 + $0x14c] sm:$0xf0] }
  0xbd   : > { %1330 = vmatmul.bf16.gmra.mxu3 %v1764_v56  ;;  %v1849_v56 = vld [vmem:[%s2648_s26 + $0xf0] sm:$0xf0] }
  0xbe   : > { %v1852_v62 = vor.u32 %v2149_v55, %v1849_v56  ;;  %v2161_v56 = vld [vmem:[%s2648_s26 + $0x144] sm:$0xf] }
  0xca   : > { %1068 = vmatmul.bf16.gmra.mxu0 %v1768_v1  ;;  %v1863_v1 = vld [vmem:[%s2648_s26 + $0x100] sm:$0xf] }
  0xcb   : > { %1157 = vmatmul.bf16.gmra.mxu1 %v1772_v2  ;;  %v2155_v2 = vld [vmem:[%s2648_s26 + $0x10c] sm:$0xf0] }
  0xcc   : > { %1246 = vmatmul.bf16.gmra.mxu2 %v1776_v3  ;;  %v2153_v3 = vld [vmem:[%s2648_s26 + $0x104] sm:$0xf]  ;;  %v1864_v9 = vor.u32 %v2155_v2, %v1863_v1  ;;  %v1896_v1 = vor.u32 %v2163_v54, %v1895_v53  ;;  %v1900_v2 = vor.u32 %v2161_v56, %v1897_v57  ;;  %v1929_v53 = vld [vmem:[%s2648_s26 + $0x190] sm:$0xf0]  ;;  %v1935_v54 = vld [vmem:[%s2648_s26 + $0x188] sm:$0xf] }
  0xcd   : > { %1335 = vmatmul.bf16.gmra.mxu3 %v1780_v4  ;;  %v1865_v4 = vld [vmem:[%s2648_s26 + $0x110] sm:$0xf0]  ;;  %v2170_v56 = vld [vmem:[%s2648_s26 + $0x18c] sm:$0xf]  ;;  %v1937_v57 = vld [vmem:[%s2648_s26 + $0x198] sm:$0xf0] }
  0xce   : > { %v1868_v10 = vor.u32 %v2153_v3, %v1865_v4 }
  0xda   : > { %1073 = vmatmul.bf16.gmra.mxu0 %v1784_v13  ;;  %v1872_v13 = vor.u32 %v2156_v6, %v1871_v5  ;;  %v1904_v6 = vor.u32 %v2164_v59, %v1903_v58 }
  0xdb   : > { %1162 = vmatmul.bf16.gmra.mxu1 %v1788_v14  ;;  %v1876_v14 = vor.u32 %v2154_v7, %v1873_v8  ;;  %v377_v8 = vld [vmem:[#allocation2 + $0x18] sm:$0xff] }
  0xdc   : > { %1251 = vmatmul.bf16.gmra.mxu2 %v1792_v15 }
  0xdd   : > { %1340 = vmatmul.bf16.gmra.mxu3 %v1796_v16 }
  0xea   : > { %1078 = vmatmul.bf16.gmra.mxu0 %v1800_v25 }
  0xeb   : > { %1167 = vmatmul.bf16.gmra.mxu1 %v1804_v26  ;;  %v2157_v26 = vld [vmem:[%s2648_s26 + $0x124] sm:$0xf] }
  0xec   : > { %1256 = vmatmul.bf16.gmra.mxu2 %v1808_v27  ;;  %v1881_v27 = vld [vmem:[%s2648_s26 + $0x130] sm:$0xf0] }
  0xed   : > { %1345 = vmatmul.bf16.gmra.mxu3 %v1812_v28  ;;  %v1887_v28 = vld [vmem:[%s2648_s26 + $0x128] sm:$0xf]  ;;  %v1884_v36 = vor.u32 %v2157_v26, %v1881_v27  ;;  %v2166_v26 = vld [vmem:[%s2648_s26 + $0x16c] sm:$0xf]  ;;  %v1921_v27 = vld [vmem:[%s2648_s26 + $0x178] sm:$0xf0] }
  0xfa   : > { %1083 = vmatmul.bf16.gmra.mxu0 %v1816_v37 }
  0xfb   : > { %1172 = vmatmul.bf16.gmra.mxu1 %v1820_v38 }
  0xfc   : > { %1261 = vmatmul.bf16.gmra.mxu2 %v1824_v39 }
  0xfd   : > { %1350 = vmatmul.bf16.gmra.mxu3 %v1828_v40  ;;  %v1888_v40 = vor.u32 %v2160_v29, %v1887_v28 }
 0x10a   : > { %1088 = vmatmul.bf16.gmra.mxu0 %v1832_v49 }
 0x10b   : > { %1177 = vmatmul.bf16.gmra.mxu1 %v1836_v50 }
 0x10c   : > { %1266 = vmatmul.bf16.gmra.mxu2 %v1840_v51  ;;  %v376_v51 = vld [vmem:[#allocation2 + $0xd8] sm:$0xff] }
 0x10d   : > { %1355 = vmatmul.bf16.gmra.mxu3 %v1844_v52 }
 0x11a   : > { %1093 = vmatmul.bf16.gmra.mxu0 %v1848_v61  ;;  %v1905_v61 = vld [vmem:[%s2648_s26 + $0x158] sm:$0xf0] }
 0x11b   : > { %1182 = vmatmul.bf16.gmra.mxu1 %v1852_v62  ;;  %v1908_v7 = vor.u32 %v2162_v60, %v1905_v61 }
 0x11c   : > { %1271 = vmatmul.bf16.gmra.mxu2 %v1856_v63 }
 0x11d   : > { %1360 = vmatmul.bf16.gmra.mxu3 %v1860_v0 }
 0x127   : > { %v1059_v11 = vpop.f32.mrf.mxu0 }
 0x128   : > { %v1148_v12 = vpop.f32.mrf.mxu1 }
 0x129   : > { %v1149_v15 = vadd.f32 %v1148_v12, %v1059_v11 }
 0x12a   : > { %1098 = vmatmul.bf16.gmra.mxu0 %v1864_v9 }
 0x12b   : > { %1187 = vmatmul.bf16.gmra.mxu1 %v1868_v10 }
 0x12c   : > { %1276 = vmatmul.bf16.gmra.mxu2 %v1872_v13 }
 0x12d   : > { %1365 = vmatmul.bf16.gmra.mxu3 %v1876_v14 }
 0x12f   : > { %v1237_v16 = vpop.f32.mrf.mxu2  ;;  %v1061_v19 = vpop.f32.mrf.mxu0 }
 0x130   : > { %v1326_v17 = vpop.f32.mrf.mxu3  ;;  %v1238_v18 = vadd.f32 %v1237_v16, %v1149_v15  ;;  %v1150_v20 = vpop.f32.mrf.mxu1 }
 0x131   : > { %v1151_v32 = vadd.f32 %v1150_v20, %v1061_v19  ;;  %v1911_v19 = vld [vmem:[%s2648_s26 + $0x160] sm:$0xf]  ;;  %v2167_v20 = vld [vmem:[%s2648_s26 + $0x16c] sm:$0xf0] }
 0x132   : > { %v1327_v22 = vadd.f32 %v1326_v17, %v1238_v18  ;;  %v378_v17 = vld [vmem:[#allocation2 + $0x50] sm:$0xff]  ;;  %v1912_v31 = vor.u32 %v2167_v20, %v1911_v19  ;;  %v1951_v20 = vld [vmem:[%s2648_s26 + $0x1a8] sm:$0xf] }
 0x133   : > { %v1945_v19 = vld [vmem:[%s2648_s26 + $0x1b0] sm:$0xf0] }
 0x134   : > { %v1406_v25 = vadd.f32 %v1327_v22, %v374_v21  ;;  %v2165_v22 = vld [vmem:[%s2648_s26 + $0x164] sm:$0xf] }
 0x136   : > { %1438 = vst [vmem:[#allocation2 + $0xb0] sm:$0xff] %v1406_v25  ;;  %v2168_v25 = vld [vmem:[%s2648_s26 + $0x174] sm:$0xf0] }
 0x137   : > { %v1239_v33 = vpop.f32.mrf.mxu2  ;;  %v1064_v38 = vpop.f32.mrf.mxu0 }
 0x138   : > { %v1328_v34 = vpop.f32.mrf.mxu3  ;;  %v1240_v37 = vadd.f32 %v1239_v33, %v1151_v32  ;;  %v1153_v39 = vpop.f32.mrf.mxu1  ;;  %v1916_v32 = vor.u32 %v2165_v22, %v1913_v23  ;;  %v2174_v22 = vld [vmem:[%s2648_s26 + $0x1ac] sm:$0xf]  ;;  %v1953_v23 = vld [vmem:[%s2648_s26 + $0x1b8] sm:$0xf0] }
 0x139   : > { %v1154_v45 = vadd.f32 %v1153_v39, %v1064_v38  ;;  %v379_v38 = vld [vmem:[#allocation2 + $0x68] sm:$0xff] }
 0x13a   : > { %v1329_v43 = vadd.f32 %v1328_v34, %v1240_v37  ;;  %1103 = vmatmul.bf16.gmra.mxu0 %v1880_v35  ;;  %v1924_v37 = vor.u32 %v2166_v26, %v1921_v27 }
 0x13b   : > { %1192 = vmatmul.bf16.gmra.mxu1 %v1884_v36  ;;  %v1920_v36 = vor.u32 %v2168_v25, %v1919_v24 }
 0x13c   : > { %v1407_v44 = vadd.f32 %v1329_v43, %v375_v42  ;;  %1281 = vmatmul.bf16.gmra.mxu2 %v1888_v40 }
 0x13d   : > { %1370 = vmatmul.bf16.gmra.mxu3 %v1892_v41 }
 0x13e   : > { %1439 = vst [vmem:[#allocation2] sm:$0xff] %v1407_v44 }
 0x13f   : > { %v1242_v46 = vpop.f32.mrf.mxu2  ;;  %v1066_v49 = vpop.f32.mrf.mxu0 }
 0x140   : > { %v1331_v47 = vpop.f32.mrf.mxu3  ;;  %v1243_v48 = vadd.f32 %v1242_v46, %v1154_v45  ;;  %v1155_v50 = vpop.f32.mrf.mxu1 }
 0x141   : > { %v1156_v62 = vadd.f32 %v1155_v50, %v1066_v49  ;;  %v1927_v49 = vld [vmem:[%s2648_s26 + $0x180] sm:$0xf]  ;;  %v2171_v50 = vld [vmem:[%s2648_s26 + $0x18c] sm:$0xf0] }
 0x142   : > { %v1332_v52 = vadd.f32 %v1331_v47, %v1243_v48  ;;  %v380_v47 = vld [vmem:[#allocation2 + $0x30] sm:$0xff]  ;;  %v1928_v61 = vor.u32 %v2171_v50, %v1927_v49  ;;  %v1967_v50 = vld [vmem:[%s2648_s26 + $0x1c8] sm:$0xf] }
 0x143   : > { %v1961_v49 = vld [vmem:[%s2648_s26 + $0x1d0] sm:$0xf0] }
 0x144   : > { %v1408_v55 = vadd.f32 %v1332_v52, %v376_v51  ;;  %v2169_v52 = vld [vmem:[%s2648_s26 + $0x184] sm:$0xf] }
 0x146   : > { %1440 = vst [vmem:[#allocation2 + $0xd8] sm:$0xff] %v1408_v55  ;;  %v2172_v55 = vld [vmem:[%s2648_s26 + $0x194] sm:$0xf0] }
 0x147   : > { %v1244_v63 = vpop.f32.mrf.mxu2  ;;  %v1069_v4 = vpop.f32.mrf.mxu0 }
 0x148   : > { %v1333_v0 = vpop.f32.mrf.mxu3  ;;  %v1245_v3 = vadd.f32 %v1244_v63, %v1156_v62  ;;  %v1158_v5 = vpop.f32.mrf.mxu1  ;;  %v1932_v62 = vor.u32 %v2169_v52, %v1929_v53  ;;  %v2178_v52 = vld [vmem:[%s2648_s26 + $0x1cc] sm:$0xf]  ;;  %v1969_v53 = vld [vmem:[%s2648_s26 + $0x1d8] sm:$0xf0] }
 0x149   : > { %v1159_v11 = vadd.f32 %v1158_v5, %v1069_v4  ;;  %v381_v4 = vld [vmem:[#allocation2 + $0x48] sm:$0xff] }
 0x14a   : > { %v1334_v9 = vadd.f32 %v1333_v0, %v1245_v3  ;;  %1108 = vmatmul.bf16.gmra.mxu0 %v1896_v1  ;;  %v1940_v3 = vor.u32 %v2170_v56, %v1937_v57 }
 0x14b   : > { %1197 = vmatmul.bf16.gmra.mxu1 %v1900_v2  ;;  %v1936_v2 = vor.u32 %v2172_v55, %v1935_v54 }
 0x14c   : > { %v1409_v10 = vadd.f32 %v1334_v9, %v377_v8  ;;  %1286 = vmatmul.bf16.gmra.mxu2 %v1904_v6 }
 0x14d   : > { %1375 = vmatmul.bf16.gmra.mxu3 %v1908_v7 }
 0x14e   : > { %1441 = vst [vmem:[#allocation2 + $0x18] sm:$0xff] %v1409_v10 }
 0x14f   : > { %v1247_v12 = vpop.f32.mrf.mxu2  ;;  %v1071_v15 = vpop.f32.mrf.mxu0 }
 0x150   : > { %v1336_v13 = vpop.f32.mrf.mxu3  ;;  %v1248_v14 = vadd.f32 %v1247_v12, %v1159_v11  ;;  %v1160_v16 = vpop.f32.mrf.mxu1 }
 0x151   : > { %v1161_v28 = vadd.f32 %v1160_v16, %v1071_v15  ;;  %v1943_v15 = vld [vmem:[%s2648_s26 + $0x1a0] sm:$0xf]  ;;  %v2175_v16 = vld [vmem:[%s2648_s26 + $0x1ac] sm:$0xf0] }
 0x152   : > { %v1337_v18 = vadd.f32 %v1336_v13, %v1248_v14  ;;  %v382_v13 = vld [vmem:[#allocation2 + $0x80] sm:$0xff]  ;;  %v1944_v27 = vor.u32 %v2175_v16, %v1943_v15  ;;  %v1977_v15 = vld [vmem:[%s2648_s26 + $0x1f0] sm:$0xf0]  ;;  %v1983_v16 = vld [vmem:[%s2648_s26 + $0x1e8] sm:$0xf] }
 0x154   : > { %v1410_v21 = vadd.f32 %v1337_v18, %v378_v17  ;;  %v2173_v18 = vld [vmem:[%s2648_s26 + $0x1a4] sm:$0xf] }
 0x156   : > { %1442 = vst [vmem:[#allocation2 + $0x50] sm:$0xff] %v1410_v21  ;;  %v2176_v21 = vld [vmem:[%s2648_s26 + $0x1b4] sm:$0xf0] }
 0x157   : > { %v1249_v29 = vpop.f32.mrf.mxu2  ;;  %v1074_v34 = vpop.f32.mrf.mxu0 }
 0x158   : > { %v1338_v30 = vpop.f32.mrf.mxu3  ;;  %v1250_v33 = vadd.f32 %v1249_v29, %v1161_v28  ;;  %v1163_v35 = vpop.f32.mrf.mxu1  ;;  %v1948_v28 = vor.u32 %v2173_v18, %v1945_v19  ;;  %v2182_v18 = vld [vmem:[%s2648_s26 + $0x1ec] sm:$0xf]  ;;  %v1985_v19 = vld [vmem:[%s2648_s26 + $0x1f8] sm:$0xf0] }
 0x159   : > { %v1164_v41 = vadd.f32 %v1163_v35, %v1074_v34  ;;  %v383_v34 = vld [vmem:[#allocation2 + $0x88] sm:$0xff] }
 0x15a   : > { %v1339_v39 = vadd.f32 %v1338_v30, %v1250_v33  ;;  %1113 = vmatmul.bf16.gmra.mxu0 %v1912_v31  ;;  %v1956_v33 = vor.u32 %v2174_v22, %v1953_v23 }
 0x15b   : > { %1202 = vmatmul.bf16.gmra.mxu1 %v1916_v32  ;;  %v1952_v32 = vor.u32 %v2176_v21, %v1951_v20 }
 0x15c   : > { %v1411_v40 = vadd.f32 %v1339_v39, %v379_v38  ;;  %1291 = vmatmul.bf16.gmra.mxu2 %v1920_v36 }
 0x15d   : > { %1380 = vmatmul.bf16.gmra.mxu3 %v1924_v37 }
 0x15e   : > { %1443 = vst [vmem:[#allocation2 + $0x68] sm:$0xff] %v1411_v40 }
 0x15f   : > { %v1252_v42 = vpop.f32.mrf.mxu2  ;;  %v1076_v45 = vpop.f32.mrf.mxu0 }
 0x160   : > { %v1341_v43 = vpop.f32.mrf.mxu3  ;;  %v1253_v44 = vadd.f32 %v1252_v42, %v1164_v41  ;;  %v1165_v46 = vpop.f32.mrf.mxu1 }
 0x161   : > { %v1166_v58 = vadd.f32 %v1165_v46, %v1076_v45  ;;  %v1959_v45 = vld [vmem:[%s2648_s26 + $0x1c0] sm:$0xf]  ;;  %v2179_v46 = vld [vmem:[%s2648_s26 + $0x1cc] sm:$0xf0] }
 0x162   : > { %v1342_v48 = vadd.f32 %v1341_v43, %v1253_v44  ;;  %v384_v43 = vld [vmem:[#allocation2 + $0xe8] sm:$0xff]  ;;  %v1960_v57 = vor.u32 %v2179_v46, %v1959_v45 }
 0x164   : > { %v1412_v51 = vadd.f32 %v1342_v48, %v380_v47  ;;  %v2177_v48 = vld [vmem:[%s2648_s26 + $0x1c4] sm:$0xf] }
 0x166   : > { %1444 = vst [vmem:[#allocation2 + $0x30] sm:$0xff] %v1412_v51  ;;  %v2180_v51 = vld [vmem:[%s2648_s26 + $0x1d4] sm:$0xf0] }
 0x167   : > { %v1254_v59 = vpop.f32.mrf.mxu2  ;;  %v1079_v0 = vpop.f32.mrf.mxu0 }
 0x168   : > { %v1343_v60 = vpop.f32.mrf.mxu3  ;;  %v1255_v63 = vadd.f32 %v1254_v59, %v1166_v58  ;;  %v1168_v1 = vpop.f32.mrf.mxu1  ;;  %v1964_v58 = vor.u32 %v2177_v48, %v1961_v49  ;;  %v389_v48 = vld [vmem:[#allocation2 + $0x78] sm:$0xff] }
 0x169   : > { %v1169_v7 = vadd.f32 %v1168_v1, %v1079_v0  ;;  %v385_v0 = vld [vmem:[#allocation2 + $0xb8] sm:$0xff] }
 0x16a   : > { %v1344_v5 = vadd.f32 %v1343_v60, %v1255_v63  ;;  %1118 = vmatmul.bf16.gmra.mxu0 %v1928_v61  ;;  %v1972_v63 = vor.u32 %v2178_v52, %v1969_v53 }
 0x16b   : > { %1207 = vmatmul.bf16.gmra.mxu1 %v1932_v62  ;;  %v1968_v62 = vor.u32 %v2180_v51, %v1967_v50 }
 0x16c   : > { %v1413_v6 = vadd.f32 %v1344_v5, %v381_v4  ;;  %1296 = vmatmul.bf16.gmra.mxu2 %v1936_v2 }
 0x16d   : > { %1385 = vmatmul.bf16.gmra.mxu3 %v1940_v3 }
 0x16e   : > { %1445 = vst [vmem:[#allocation2 + $0x48] sm:$0xff] %v1413_v6 }
 0x16f   : > { %v1257_v8 = vpop.f32.mrf.mxu2  ;;  %v1081_v11 = vpop.f32.mrf.mxu0 }
 0x170   : > { %v1346_v9 = vpop.f32.mrf.mxu3  ;;  %v1258_v10 = vadd.f32 %v1257_v8, %v1169_v7  ;;  %v1170_v12 = vpop.f32.mrf.mxu1 }
 0x171   : > { %v1171_v24 = vadd.f32 %v1170_v12, %v1081_v11  ;;  %v1975_v11 = vld [vmem:[%s2648_s26 + $0x1e0] sm:$0xf]  ;;  %v2183_v12 = vld [vmem:[%s2648_s26 + $0x1ec] sm:$0xf0] }
 0x172   : > { %v1347_v14 = vadd.f32 %v1346_v9, %v1258_v10  ;;  %v386_v9 = vld [vmem:[#allocation2 + $0x60] sm:$0xff]  ;;  %v1976_v23 = vor.u32 %v2183_v12, %v1975_v11 }
 0x173   : > { %v392_v11 = vld [vmem:[#allocation2 + $0x40] sm:$0xff] }
 0x174   : > { %v1414_v17 = vadd.f32 %v1347_v14, %v382_v13  ;;  %v2181_v14 = vld [vmem:[%s2648_s26 + $0x1e4] sm:$0xf] }
 0x176   : > { %1446 = vst [vmem:[#allocation2 + $0x80] sm:$0xff] %v1414_v17  ;;  %v2184_v17 = vld [vmem:[%s2648_s26 + $0x1f4] sm:$0xf0] }
 0x177   : > { %v1259_v25 = vpop.f32.mrf.mxu2  ;;  %v1084_v30 = vpop.f32.mrf.mxu0 }
 0x178   : > { %v1348_v26 = vpop.f32.mrf.mxu3  ;;  %v1260_v29 = vadd.f32 %v1259_v25, %v1171_v24  ;;  %v1173_v31 = vpop.f32.mrf.mxu1  ;;  %v1980_v24 = vor.u32 %v2181_v14, %v1977_v15 }
 0x179   : > { %v1174_v37 = vadd.f32 %v1173_v31, %v1084_v30  ;;  %v387_v30 = vld [vmem:[#allocation2 + $0xf0] sm:$0xff] }
 0x17a   : > { %v1349_v35 = vadd.f32 %v1348_v26, %v1260_v29  ;;  %1123 = vmatmul.bf16.gmra.mxu0 %v1944_v27  ;;  %v1988_v29 = vor.u32 %v2182_v18, %v1985_v19 }
 0x17b   : > { %1212 = vmatmul.bf16.gmra.mxu1 %v1948_v28  ;;  %v1984_v28 = vor.u32 %v2184_v17, %v1983_v16 }
 0x17c   : > { %v1415_v36 = vadd.f32 %v1349_v35, %v383_v34  ;;  %1301 = vmatmul.bf16.gmra.mxu2 %v1952_v32 }
 0x17d   : > { %1390 = vmatmul.bf16.gmra.mxu3 %v1956_v33 }
 0x17e   : > { %1447 = vst [vmem:[#allocation2 + $0x88] sm:$0xff] %v1415_v36 }
 0x17f   : > { %v1262_v38 = vpop.f32.mrf.mxu2  ;;  %v1086_v41 = vpop.f32.mrf.mxu0 }
 0x180   : > { %v1351_v39 = vpop.f32.mrf.mxu3  ;;  %v1263_v40 = vadd.f32 %v1262_v38, %v1174_v37  ;;  %v1175_v42 = vpop.f32.mrf.mxu1 }
 0x181   : > { %v1176_v54 = vadd.f32 %v1175_v42, %v1086_v41 }
 0x182   : > { %v1352_v44 = vadd.f32 %v1351_v39, %v1263_v40  ;;  %v388_v39 = vld [vmem:[#allocation2 + $0x8] sm:$0xff] }
 0x184   : > { %v1416_v47 = vadd.f32 %v1352_v44, %v384_v43 }
 0x186   : > { %1448 = vst [vmem:[#allocation2 + $0xe8] sm:$0xff] %v1416_v47 }
 0x187   : > { %v1264_v55 = vpop.f32.mrf.mxu2  ;;  %v1089_v60 = vpop.f32.mrf.mxu0 }
 0x188   : > { %v1353_v56 = vpop.f32.mrf.mxu3  ;;  %v1265_v59 = vadd.f32 %v1264_v55, %v1176_v54  ;;  %v1178_v61 = vpop.f32.mrf.mxu1 }
 0x189   : > { %v1179_v3 = vadd.f32 %v1178_v61, %v1089_v60 }
 0x18a   : > { %v1354_v1 = vadd.f32 %v1353_v56, %v1265_v59  ;;  %1128 = vmatmul.bf16.gmra.mxu0 %v1960_v57  ;;  %v390_v57 = vld [vmem:[#allocation2 + $0x38] sm:$0xff] }
 0x18b   : > { %1217 = vmatmul.bf16.gmra.mxu1 %v1964_v58 }
 0x18c   : > { %v1417_v2 = vadd.f32 %v1354_v1, %v385_v0  ;;  %1306 = vmatmul.bf16.gmra.mxu2 %v1968_v62 }
 0x18d   : > { %1395 = vmatmul.bf16.gmra.mxu3 %v1972_v63 }
 0x18e   : > { %1449 = vst [vmem:[#allocation2 + $0xb8] sm:$0xff] %v1417_v2  ;;  %v391_v2 = vld [vmem:[#allocation2 + $0x58] sm:$0xff] }
 0x18f   : > { %v1267_v4 = vpop.f32.mrf.mxu2  ;;  %v1091_v7 = vpop.f32.mrf.mxu0 }
 0x190   : > { %v1356_v5 = vpop.f32.mrf.mxu3  ;;  %v1268_v6 = vadd.f32 %v1267_v4, %v1179_v3  ;;  %v1180_v8 = vpop.f32.mrf.mxu1 }
 0x191   : > { %v1181_v20 = vadd.f32 %v1180_v8, %v1091_v7 }
 0x192   : > { %v1357_v10 = vadd.f32 %v1356_v5, %v1268_v6 }
 0x194   : > { %v1418_v13 = vadd.f32 %v1357_v10, %v386_v9 }
 0x196   : > { %1450 = vst [vmem:[#allocation2 + $0x60] sm:$0xff] %v1418_v13 }
 0x197   : > { %v1269_v21 = vpop.f32.mrf.mxu2  ;;  %v1094_v26 = vpop.f32.mrf.mxu0 }
 0x198   : > { %v1358_v22 = vpop.f32.mrf.mxu3  ;;  %v1270_v25 = vadd.f32 %v1269_v21, %v1181_v20  ;;  %v1183_v27 = vpop.f32.mrf.mxu1  ;;  %v393_v20 = vld [vmem:[#allocation2 + $0xc8] sm:$0xff] }
 0x199   : > { %v1184_v33 = vadd.f32 %v1183_v27, %v1094_v26 }
 0x19a   : > { %v1359_v31 = vadd.f32 %v1358_v22, %v1270_v25  ;;  %1133 = vmatmul.bf16.gmra.mxu0 %v1976_v23 }
 0x19b   : > { %1222 = vmatmul.bf16.gmra.mxu1 %v1980_v24 }
 0x19c   : > { %v1419_v32 = vadd.f32 %v1359_v31, %v387_v30  ;;  %1311 = vmatmul.bf16.gmra.mxu2 %v1984_v28 }
 0x19d   : > { %1400 = vmatmul.bf16.gmra.mxu3 %v1988_v29  ;;  %v394_v29 = vld [vmem:[#allocation2 + $0xe0] sm:$0xff] }
 0x19e   : > { %1451 = vst [vmem:[#allocation2 + $0xf0] sm:$0xff] %v1419_v32 }
 0x19f   : > { %v1272_v34 = vpop.f32.mrf.mxu2  ;;  %v1096_v37 = vpop.f32.mrf.mxu0 }
 0x1a0   : > { %v1361_v35 = vpop.f32.mrf.mxu3  ;;  %v1273_v36 = vadd.f32 %v1272_v34, %v1184_v33  ;;  %v1185_v38 = vpop.f32.mrf.mxu1 }
 0x1a1   : > { %v1186_v42 = vadd.f32 %v1185_v38, %v1096_v37  ;;  %v395_v38 = vld [vmem:[#allocation2 + $0x90] sm:$0xff] }
 0x1a2   : > { %v1362_v40 = vadd.f32 %v1361_v35, %v1273_v36 }
 0x1a4   : > { %v1420_v41 = vadd.f32 %v1362_v40, %v388_v39 }
 0x1a6   : > { %1452 = vst [vmem:[#allocation2 + $0x8] sm:$0xff] %v1420_v41 }
 0x1a7   : > { %v1274_v43 = vpop.f32.mrf.mxu2  ;;  %v1099_v46 = vpop.f32.mrf.mxu0 }
 0x1a8   : > { %v1363_v44 = vpop.f32.mrf.mxu3  ;;  %v1275_v45 = vadd.f32 %v1274_v43, %v1186_v42  ;;  %v1188_v47 = vpop.f32.mrf.mxu1 }
 0x1a9   : > { %v1189_v51 = vadd.f32 %v1188_v47, %v1099_v46  ;;  %v396_v47 = vld [vmem:[#allocation2 + $0x70] sm:$0xff] }
 0x1aa   : > { %v1364_v49 = vadd.f32 %v1363_v44, %v1275_v45 }
 0x1ac   : > { %v1421_v50 = vadd.f32 %v1364_v49, %v389_v48 }
 0x1ae   : > { %1453 = vst [vmem:[#allocation2 + $0x78] sm:$0xff] %v1421_v50 }
 0x1af   : > { %v1277_v52 = vpop.f32.mrf.mxu2  ;;  %v1101_v55 = vpop.f32.mrf.mxu0 }
 0x1b0   : > { %v1366_v53 = vpop.f32.mrf.mxu3  ;;  %v1278_v54 = vadd.f32 %v1277_v52, %v1189_v51  ;;  %v1190_v56 = vpop.f32.mrf.mxu1 }
 0x1b1   : > { %v1191_v60 = vadd.f32 %v1190_v56, %v1101_v55  ;;  %v397_v56 = vld [vmem:[#allocation2 + $0xc0] sm:$0xff] }
 0x1b2   : > { %v1367_v58 = vadd.f32 %v1366_v53, %v1278_v54 }
 0x1b4   : > { %v1422_v59 = vadd.f32 %v1367_v58, %v390_v57 }
 0x1b6   : > { %1454 = vst [vmem:[#allocation2 + $0x38] sm:$0xff] %v1422_v59 }
 0x1b7   : > { %v1279_v61 = vpop.f32.mrf.mxu2  ;;  %v1104_v0 = vpop.f32.mrf.mxu0 }
 0x1b8   : > { %v1368_v62 = vpop.f32.mrf.mxu3  ;;  %v1280_v63 = vadd.f32 %v1279_v61, %v1191_v60  ;;  %v1193_v1 = vpop.f32.mrf.mxu1 }
 0x1b9   : > { %v1194_v5 = vadd.f32 %v1193_v1, %v1104_v0  ;;  %v398_v1 = vld [vmem:[#allocation2 + $0xa8] sm:$0xff] }
 0x1ba   : > { %v1369_v3 = vadd.f32 %v1368_v62, %v1280_v63 }
 0x1bc   : > { %v1423_v4 = vadd.f32 %v1369_v3, %v391_v2 }
 0x1be   : > { %1455 = vst [vmem:[#allocation2 + $0x58] sm:$0xff] %v1423_v4 }
 0x1bf   : > { %v1282_v6 = vpop.f32.mrf.mxu2  ;;  %v1106_v9 = vpop.f32.mrf.mxu0 }
 0x1c0   : > { %v1371_v7 = vpop.f32.mrf.mxu3  ;;  %v1283_v8 = vadd.f32 %v1282_v6, %v1194_v5  ;;  %v1195_v10 = vpop.f32.mrf.mxu1 }
 0x1c1   : > { %v1196_v14 = vadd.f32 %v1195_v10, %v1106_v9  ;;  %v399_v10 = vld [vmem:[#allocation2 + $0xd0] sm:$0xff] }
 0x1c2   : > { %v1372_v12 = vadd.f32 %v1371_v7, %v1283_v8 }
 0x1c4   : > { %v1424_v13 = vadd.f32 %v1372_v12, %v392_v11 }
 0x1c6   : > { %1456 = vst [vmem:[#allocation2 + $0x40] sm:$0xff] %v1424_v13 }
 0x1c7   : > { %v1284_v15 = vpop.f32.mrf.mxu2  ;;  %v1109_v18 = vpop.f32.mrf.mxu0 }
 0x1c8   : > { %v1373_v16 = vpop.f32.mrf.mxu3  ;;  %v1285_v17 = vadd.f32 %v1284_v15, %v1196_v14  ;;  %v1198_v19 = vpop.f32.mrf.mxu1 }
 0x1c9   : > { %v1199_v23 = vadd.f32 %v1198_v19, %v1109_v18  ;;  %v400_v19 = vld [vmem:[#allocation2 + $0x10] sm:$0xff] }
 0x1ca   : > { %v1374_v21 = vadd.f32 %v1373_v16, %v1285_v17 }
 0x1cc   : > { %v1425_v22 = vadd.f32 %v1374_v21, %v393_v20 }
 0x1ce   : > { %1457 = vst [vmem:[#allocation2 + $0xc8] sm:$0xff] %v1425_v22 }
 0x1cf   : > { %v1287_v24 = vpop.f32.mrf.mxu2  ;;  %v1111_v27 = vpop.f32.mrf.mxu0 }
 0x1d0   : > { %v1376_v25 = vpop.f32.mrf.mxu3  ;;  %v1288_v26 = vadd.f32 %v1287_v24, %v1199_v23  ;;  %v1200_v28 = vpop.f32.mrf.mxu1 }
 0x1d1   : > { %v1201_v32 = vadd.f32 %v1200_v28, %v1111_v27  ;;  %v401_v28 = vld [vmem:[#allocation2 + $0x28] sm:$0xff] }
 0x1d2   : > { %v1377_v30 = vadd.f32 %v1376_v25, %v1288_v26 }
 0x1d4   : > { %v1426_v31 = vadd.f32 %v1377_v30, %v394_v29 }
 0x1d6   : > { %1458 = vst [vmem:[#allocation2 + $0xe0] sm:$0xff] %v1426_v31 }
 0x1d7   : > { %v1289_v33 = vpop.f32.mrf.mxu2  ;;  %v1114_v36 = vpop.f32.mrf.mxu0 }
 0x1d8   : > { %v1378_v34 = vpop.f32.mrf.mxu3  ;;  %v1290_v35 = vadd.f32 %v1289_v33, %v1201_v32  ;;  %v1203_v37 = vpop.f32.mrf.mxu1 }
 0x1d9   : > { %v1204_v41 = vadd.f32 %v1203_v37, %v1114_v36  ;;  %v402_v37 = vld [vmem:[#allocation2 + $0xa0] sm:$0xff] }
 0x1da   : > { %v1379_v39 = vadd.f32 %v1378_v34, %v1290_v35 }
 0x1dc   : > { %v1427_v40 = vadd.f32 %v1379_v39, %v395_v38 }
 0x1de   : > { %1459 = vst [vmem:[#allocation2 + $0x90] sm:$0xff] %v1427_v40 }
 0x1df   : > { %v1292_v42 = vpop.f32.mrf.mxu2  ;;  %v1116_v45 = vpop.f32.mrf.mxu0 }
 0x1e0   : > { %v1381_v43 = vpop.f32.mrf.mxu3  ;;  %v1293_v44 = vadd.f32 %v1292_v42, %v1204_v41  ;;  %v1205_v46 = vpop.f32.mrf.mxu1 }
 0x1e1   : > { %v1206_v50 = vadd.f32 %v1205_v46, %v1116_v45 }
 0x1e2   : > { %v1382_v48 = vadd.f32 %v1381_v43, %v1293_v44  ;;  %v403_v44 = vld [vmem:[#allocation2 + $0xf8] sm:$0xff] }
 0x1e4   : > { %v1428_v49 = vadd.f32 %v1382_v48, %v396_v47 }
 0x1e6   : > { %1460 = vst [vmem:[#allocation2 + $0x70] sm:$0xff] %v1428_v49 }
 0x1e7   : > { %v1294_v51 = vpop.f32.mrf.mxu2  ;;  %v1119_v54 = vpop.f32.mrf.mxu0 }
 0x1e8   : > { %v1383_v52 = vpop.f32.mrf.mxu3  ;;  %v1295_v53 = vadd.f32 %v1294_v51, %v1206_v50  ;;  %v1208_v55 = vpop.f32.mrf.mxu1 }
 0x1e9   : > { %v1209_v59 = vadd.f32 %v1208_v55, %v1119_v54 }
 0x1ea   : > { %v1384_v57 = vadd.f32 %v1383_v52, %v1295_v53  ;;  %v404_v53 = vld [vmem:[#allocation2 + $0x20] sm:$0xff] }
 0x1ec   : > { %v1429_v58 = vadd.f32 %v1384_v57, %v397_v56 }
 0x1ee   : > { %1461 = vst [vmem:[#allocation2 + $0xc0] sm:$0xff] %v1429_v58 }
 0x1ef   : > { %v1297_v60 = vpop.f32.mrf.mxu2  ;;  %v1121_v63 = vpop.f32.mrf.mxu0 }
 0x1f0   : > { %v1386_v61 = vpop.f32.mrf.mxu3  ;;  %v1298_v62 = vadd.f32 %v1297_v60, %v1209_v59  ;;  %v1210_v0 = vpop.f32.mrf.mxu1 }
 0x1f1   : > { %v1211_v4 = vadd.f32 %v1210_v0, %v1121_v63 }
 0x1f2   : > { %v1387_v2 = vadd.f32 %v1386_v61, %v1298_v62  ;;  %v405_v61 = vld [vmem:[#allocation2 + $0x98] sm:$0xff] }
 0x1f4   : > { %v1430_v3 = vadd.f32 %v1387_v2, %v398_v1 }
 0x1f6   : > { %1462 = vst [vmem:[#allocation2 + $0xa8] sm:$0xff] %v1430_v3 }
 0x1f7   : > { %v1299_v5 = vpop.f32.mrf.mxu2  ;;  %v1124_v8 = vpop.f32.mrf.mxu0 }
 0x1f8   : > { %v1388_v6 = vpop.f32.mrf.mxu3  ;;  %v1300_v7 = vadd.f32 %v1299_v5, %v1211_v4  ;;  %v1213_v9 = vpop.f32.mrf.mxu1 }
 0x1f9   : > { %v1214_v13 = vadd.f32 %v1213_v9, %v1124_v8 }
 0x1fa   : > { %v1389_v11 = vadd.f32 %v1388_v6, %v1300_v7 }
 0x1fc   : > { %v1431_v12 = vadd.f32 %v1389_v11, %v399_v10 }
 0x1fe   : > { %1463 = vst [vmem:[#allocation2 + $0xd0] sm:$0xff] %v1431_v12 }
 0x1ff   : > { %v1302_v14 = vpop.f32.mrf.mxu2  ;;  %v1126_v17 = vpop.f32.mrf.mxu0 }
 0x200   : > { %v1391_v15 = vpop.f32.mrf.mxu3  ;;  %v1303_v16 = vadd.f32 %v1302_v14, %v1214_v13  ;;  %v1215_v18 = vpop.f32.mrf.mxu1 }
 0x201   : > { %v1216_v22 = vadd.f32 %v1215_v18, %v1126_v17 }
 0x202   : > { %v1392_v20 = vadd.f32 %v1391_v15, %v1303_v16 }
 0x204   : > { %v1432_v21 = vadd.f32 %v1392_v20, %v400_v19 }
 0x206   : > { %1464 = vst [vmem:[#allocation2 + $0x10] sm:$0xff] %v1432_v21 }
 0x207   : > { %v1304_v23 = vpop.f32.mrf.mxu2  ;;  %v1129_v26 = vpop.f32.mrf.mxu0 }
 0x208   : > { %v1393_v24 = vpop.f32.mrf.mxu3  ;;  %v1305_v25 = vadd.f32 %v1304_v23, %v1216_v22  ;;  %v1218_v27 = vpop.f32.mrf.mxu1 }
 0x209   : > { %v1219_v31 = vadd.f32 %v1218_v27, %v1129_v26 }
 0x20a   : > { %v1394_v29 = vadd.f32 %v1393_v24, %v1305_v25 }
 0x20c   : > { %v1433_v30 = vadd.f32 %v1394_v29, %v401_v28 }
 0x20e   : > { %1465 = vst [vmem:[#allocation2 + $0x28] sm:$0xff] %v1433_v30 }
 0x20f   : > { %v1307_v32 = vpop.f32.mrf.mxu2  ;;  %v1131_v35 = vpop.f32.mrf.mxu0 }
 0x210   : > { %v1396_v33 = vpop.f32.mrf.mxu3  ;;  %v1308_v34 = vadd.f32 %v1307_v32, %v1219_v31  ;;  %v1220_v36 = vpop.f32.mrf.mxu1 }
 0x211   : > { %v1221_v40 = vadd.f32 %v1220_v36, %v1131_v35 }
 0x212   : > { %v1397_v38 = vadd.f32 %v1396_v33, %v1308_v34 }
 0x214   : > { %v1434_v39 = vadd.f32 %v1397_v38, %v402_v37 }
 0x216   : > { %1466 = vst [vmem:[#allocation2 + $0xa0] sm:$0xff] %v1434_v39 }
 0x217   : > { %v1309_v41 = vpop.f32.mrf.mxu2  ;;  %v1134_v45 = vpop.f32.mrf.mxu0 }
 0x218   : > { %v1398_v42 = vpop.f32.mrf.mxu3  ;;  %v1310_v43 = vadd.f32 %v1309_v41, %v1221_v40  ;;  %v1223_v46 = vpop.f32.mrf.mxu1 }
 0x219   : > { %v1224_v49 = vadd.f32 %v1223_v46, %v1134_v45 }
 0x21a   : > { %v1399_v47 = vadd.f32 %v1398_v42, %v1310_v43 }
 0x21c   : > { %v1435_v48 = vadd.f32 %v1399_v47, %v403_v44 }
 0x21e   : > { %1467 = vst [vmem:[#allocation2 + $0xf8] sm:$0xff] %v1435_v48 }
 0x21f   : > { %v1312_v50 = vpop.f32.mrf.mxu2  ;;  %v1136_v55 = vpop.f32.mrf.mxu0 }
 0x220   : > { %v1401_v51 = vpop.f32.mrf.mxu3  ;;  %v1313_v52 = vadd.f32 %v1312_v50, %v1224_v49  ;;  %v1225_v56 = vpop.f32.mrf.mxu1 }
 0x221   : > { %v1226_v58 = vadd.f32 %v1225_v56, %v1136_v55 }
 0x222   : > { %v1402_v54 = vadd.f32 %v1401_v51, %v1313_v52 }
 0x224   : > { %v1436_v57 = vadd.f32 %v1402_v54, %v404_v53 }
 0x226   : > { %1468 = vst [vmem:[#allocation2 + $0x20] sm:$0xff] %v1436_v57 }
 0x227   : > { %v1314_v59 = vpop.f32.mrf.mxu2 }
 0x228   : > { %v1315_v60 = vadd.f32 %v1314_v59, %v1226_v58  ;;  %v1403_v62 = vpop.f32.mrf.mxu3 }
 0x22a   : > { %v1404_v63 = vadd.f32 %v1403_v62, %v1315_v60  ;;  %1473 = sbr.rel (%p2117_p12) target bundleno = 585 (0x249), region = 63 }
 0x22c   : > { %v1437_v0 = vadd.f32 %v1404_v63, %v405_v61 }
 0x22e   : > { %1469 = vst [vmem:[#allocation2 + $0x98] sm:$0xff] %v1437_v0 }
 0x22f   : > { %v1474_v1 = vld [vmem:[#allocation2 + $0xb0] sm:$0xff]  ;;  %v1475_v2 = vld [vmem:[#allocation2] sm:$0xff]  ;;  %v1476_v4 = vld [vmem:[#allocation2 + $0xd8] sm:$0xff] }
 0x230   : > { %v2821_v3 = vld [vmem:[%s2894_s2] ss:$0 sm:$0xff]  ;;  %v1477_v5 = vld [vmem:[#allocation2 + $0x18] sm:$0xff]  ;;  %v1478_v6 = vld [vmem:[#allocation2 + $0x50] sm:$0xff] }
 0x231   : > { %v1479_v7 = vld [vmem:[#allocation2 + $0x68] sm:$0xff]  ;;  %v1480_v8 = vld [vmem:[#allocation2 + $0x30] sm:$0xff]  ;;  %v1510_v9 = vadd.f32 %v2821_v3, %v1474_v1  ;;  %v1511_v10 = vadd.f32 %v2821_v3, %v1475_v2  ;;  %v1512_v11 = vadd.f32 %v2821_v3, %v1476_v4  ;;  %v1513_v12 = vadd.f32 %v2821_v3, %v1477_v5  ;;  %v1482_v18 = vld [vmem:[#allocation2 + $0x80] sm:$0xff] }
 0x232   : > { %v1481_v13 = vld [vmem:[#allocation2 + $0x48] sm:$0xff]  ;;  %v1514_v14 = vadd.f32 %v2821_v3, %v1478_v6  ;;  %v1515_v15 = vadd.f32 %v2821_v3, %v1479_v7  ;;  %v1516_v16 = vadd.f32 %v2821_v3, %v1480_v8  ;;  %v1485_v25 = vld [vmem:[#allocation2 + $0xb8] sm:$0xff]  ;;  %v1486_v30 = vld [vmem:[#allocation2 + $0x60] sm:$0xff]  ;;  %v1518_v34 = vadd.f32 %v2821_v3, %v1482_v18 }
 0x233   : > { %v1517_v17 = vadd.f32 %v2821_v3, %v1481_v13  ;;  %v1483_v19 = vld [vmem:[#allocation2 + $0x88] sm:$0xff]  ;;  %v1542_v20 = vmax.f32 %v1510_v9, 0.0  ;;  %v1543_v21 = vmax.f32 %v1511_v10, 0.0  ;;  %v1544_v22 = vmax.f32 %v1512_v11, 0.0  ;;  %v1487_v31 = vld [vmem:[#allocation2 + $0xf0] sm:$0xff]  ;;  %v1489_v37 = vld [vmem:[#allocation2 + $0x78] sm:$0xff] }
 0x234   : > { %v1545_v23 = vmax.f32 %v1513_v12, 0.0  ;;  %v1484_v24 = vld [vmem:[#allocation2 + $0xe8] sm:$0xff]  ;;  %v1546_v26 = vmax.f32 %v1514_v14, 0.0  ;;  %v1547_v27 = vmax.f32 %v1515_v15, 0.0  ;;  %v1548_v28 = vmax.f32 %v1516_v16, 0.0  ;;  %v1490_v42 = vld [vmem:[#allocation2 + $0x38] sm:$0xff] }
 0x235   : > { %v1549_v29 = vmax.f32 %v1517_v17, 0.0  ;;  %v2220_v32 = vpack.c.bf16 %v1543_v21, %v1542_v20  ;;  %v1519_v35 = vadd.f32 %v2821_v3, %v1483_v19  ;;  %v1488_v36 = vld [vmem:[#allocation2 + $0x8] sm:$0xff]  ;;  %v1520_v40 = vadd.f32 %v2821_v3, %v1484_v24  ;;  %v1491_v47 = vld [vmem:[#allocation2 + $0x58] sm:$0xff]  ;;  %v1492_v52 = vld [vmem:[#allocation2 + $0x40] sm:$0xff] }
 0x236   : > { %v2225_v33 = vpack.c.bf16 %v1545_v23, %v1544_v22  ;;  %v2230_v38 = vpack.c.bf16 %v1547_v27, %v1546_v26  ;;  %v1521_v41 = vadd.f32 %v2821_v3, %v1485_v25  ;;  %v1550_v43 = vmax.f32 %v1518_v34, 0.0  ;;  %v1493_v53 = vld [vmem:[#allocation2 + $0xc8] sm:$0xff]  ;;  %v1494_v58 = vld [vmem:[#allocation2 + $0xe0] sm:$0xff]  ;;  %v1495_v59 = vld [vmem:[#allocation2 + $0x90] sm:$0xff] }
 0x237   : > { %v2235_v39 = vpack.c.bf16 %v1549_v29, %v1548_v28  ;;  %2221 = vst [vmem:[%s2646_s24] sm:$0xff] %v2220_v32   ;;  %v1551_v44 = vmax.f32 %v1519_v35, 0.0  ;;  %v1522_v45 = vadd.f32 %v2821_v3, %v1486_v30  ;;  %v1523_v46 = vadd.f32 %v2821_v3, %v1487_v31  ;;  %v1496_v0 = vld [vmem:[#allocation2 + $0x70] sm:$0xff]  ;;  %v1497_v1 = vld [vmem:[#allocation2 + $0xc0] sm:$0xff]  ;;  %v1498_v7 = vld [vmem:[#allocation2 + $0xa8] sm:$0xff] }
 0x238   : > { %2297 = vst [vmem:[%s2646_s24 + $0x8] sm:$0xff] %v2225_v33   ;;  %v1552_v48 = vmax.f32 %v1520_v40, 0.0  ;;  %v1553_v49 = vmax.f32 %v1521_v41, 0.0  ;;  %v1524_v50 = vadd.f32 %v2821_v3, %v1488_v36  ;;  %v1525_v51 = vadd.f32 %v2821_v3, %v1489_v37  ;;  %v1499_v12 = vld [vmem:[#allocation2 + $0xd0] sm:$0xff]  ;;  %v1501_v18 = vld [vmem:[#allocation2 + $0x28] sm:$0xff]  ;;  %v1502_v23 = vld [vmem:[#allocation2 + $0xa0] sm:$0xff] }
 0x239   : > { %2298 = vst [vmem:[%s2646_s24 + $0x10] sm:$0xff] %v2230_v38   ;;  %v2240_v54 = vpack.c.bf16 %v1551_v44, %v1550_v43  ;;  %v1554_v55 = vmax.f32 %v1522_v45, 0.0  ;;  %v1555_v56 = vmax.f32 %v1523_v46, 0.0  ;;  %v1526_v57 = vadd.f32 %v2821_v3, %v1490_v42  ;;  %v1500_v17 = vld [vmem:[#allocation2 + $0x10] sm:$0xff]  ;;  %v1503_v24 = vld [vmem:[#allocation2 + $0xf8] sm:$0xff]  ;;  %v1504_v29 = vld [vmem:[#allocation2 + $0x20] sm:$0xff] }
 0x23a   : > { %2299 = vst [vmem:[%s2646_s24 + $0x18] sm:$0xff] %v2235_v39   ;;  %v2245_v60 = vpack.c.bf16 %v1553_v49, %v1552_v48  ;;  %v1556_v61 = vmax.f32 %v1524_v50, 0.0  ;;  %v1557_v62 = vmax.f32 %v1525_v51, 0.0  ;;  %v1527_v63 = vadd.f32 %v2821_v3, %v1491_v47  ;;  %v1505_v30 = vld [vmem:[#allocation2 + $0x98] sm:$0xff] }
 0x23b   : > { %2300 = vst [vmem:[%s2646_s24 + $0x20] sm:$0xff] %v2240_v54   ;;  %v2250_v2 = vpack.c.bf16 %v1555_v56, %v1554_v55  ;;  %v1558_v4 = vmax.f32 %v1526_v57, 0.0  ;;  %v1528_v5 = vadd.f32 %v2821_v3, %v1492_v52  ;;  %v1529_v6 = vadd.f32 %v2821_v3, %v1493_v53 }
 0x23c   : > { %2301 = vst [vmem:[%s2646_s24 + $0x28] sm:$0xff] %v2245_v60   ;;  %v2255_v8 = vpack.c.bf16 %v1557_v62, %v1556_v61  ;;  %v1559_v9 = vmax.f32 %v1527_v63, 0.0  ;;  %v1530_v10 = vadd.f32 %v2821_v3, %v1494_v58  ;;  %v1531_v11 = vadd.f32 %v2821_v3, %v1495_v59 }
 0x23d   : > { %2302 = vst [vmem:[%s2646_s24 + $0x30] sm:$0xff] %v2250_v2   ;;  %v1560_v13 = vmax.f32 %v1528_v5, 0.0  ;;  %v1561_v14 = vmax.f32 %v1529_v6, 0.0  ;;  %v1532_v15 = vadd.f32 %v2821_v3, %v1496_v0  ;;  %v1533_v16 = vadd.f32 %v2821_v3, %v1497_v1 }
 0x23e   : > { %2303 = vst [vmem:[%s2646_s24 + $0x38] sm:$0xff] %v2255_v8   ;;  %v2260_v19 = vpack.c.bf16 %v1559_v9, %v1558_v4  ;;  %v1562_v20 = vmax.f32 %v1530_v10, 0.0  ;;  %v1563_v21 = vmax.f32 %v1531_v11, 0.0  ;;  %v1534_v22 = vadd.f32 %v2821_v3, %v1498_v7 }
 0x23f   : > { %v2265_v25 = vpack.c.bf16 %v1561_v14, %v1560_v13  ;;  %v1564_v26 = vmax.f32 %v1532_v15, 0.0  ;;  %v1565_v27 = vmax.f32 %v1533_v16, 0.0  ;;  %v1535_v28 = vadd.f32 %v2821_v3, %v1499_v12 }
 0x240   : > { %2304 = vst [vmem:[%s2646_s24 + $0x40] sm:$0xff] %v2260_v19   ;;  %v2270_v31 = vpack.c.bf16 %v1563_v21, %v1562_v20  ;;  %v1566_v32 = vmax.f32 %v1534_v22, 0.0  ;;  %v1536_v33 = vadd.f32 %v2821_v3, %v1500_v17  ;;  %v1537_v34 = vadd.f32 %v2821_v3, %v1501_v18 }
 0x241   : > { %2305 = vst [vmem:[%s2646_s24 + $0x48] sm:$0xff] %v2265_v25   ;;  %v2275_v35 = vpack.c.bf16 %v1565_v27, %v1564_v26  ;;  %v1567_v36 = vmax.f32 %v1535_v28, 0.0  ;;  %v1538_v37 = vadd.f32 %v2821_v3, %v1502_v23  ;;  %v1539_v38 = vadd.f32 %v2821_v3, %v1503_v24 }
 0x242   : > { %2306 = vst [vmem:[%s2646_s24 + $0x50] sm:$0xff] %v2270_v31   ;;  %v1568_v39 = vmax.f32 %v1536_v33, 0.0  ;;  %v1569_v40 = vmax.f32 %v1537_v34, 0.0  ;;  %v1540_v41 = vadd.f32 %v2821_v3, %v1504_v29  ;;  %v1541_v42 = vadd.f32 %v2821_v3, %v1505_v30 }
 0x243   : > { %2307 = vst [vmem:[%s2646_s24 + $0x58] sm:$0xff] %v2275_v35   ;;  %v2280_v43 = vpack.c.bf16 %v1567_v36, %v1566_v32  ;;  %v1570_v44 = vmax.f32 %v1538_v37, 0.0  ;;  %v1571_v45 = vmax.f32 %v1539_v38, 0.0 }
 0x244   : > { %v2285_v46 = vpack.c.bf16 %v1569_v40, %v1568_v39  ;;  %v1572_v47 = vmax.f32 %v1540_v41, 0.0  ;;  %v1573_v48 = vmax.f32 %v1541_v42, 0.0 }
 0x245   : > { %2308 = vst [vmem:[%s2646_s24 + $0x60] sm:$0xff] %v2280_v43   ;;  %v2290_v49 = vpack.c.bf16 %v1571_v45, %v1570_v44 }
 0x246   : > { %2309 = vst [vmem:[%s2646_s24 + $0x68] sm:$0xff] %v2285_v46   ;;  %v2295_v50 = vpack.c.bf16 %v1573_v48, %v1572_v47 }
 0x247   : > { %2310 = vst [vmem:[%s2646_s24 + $0x70] sm:$0xff] %v2290_v49  }
 0x248   : > { %2311 = vst [vmem:[%s2646_s24 + $0x78] sm:$0xff] %v2295_v50  }
 0x249 PF: > { %s13_s18 = sadd.s32 1, %s2424_s18   ;;  %s2896_s12 = smov %s2404_s13 }
 0x24a   : > { %p10_p13 = scmp.ge.s32.totalorder %s13_s18, 10   ;;  %s2897_s13 = smov %s2498_s25 }
 0x24b   : > { %s2898_s14 = smov %s2416_s16  ;;  %s2899_s15 = smov %s2420_s17 }
 0x24c   : > { %s2900_s16 = smov %s2903_s19  ;;  %s2901_s17 = smov %s2907_s20 }
 0x24d   :  { %12 = sbr.rel (!%p10_p13) target bundleno = 4 (0x4), region = 99 }

// kernel: gcn_forward.13
= control target key start
LH: loop header
LB: loop body
LE: loop exit
PB: predicated region body
PF: predicated region fallthrough
CT: control target
= control target key end

     0   :  { %11 = vsyncpa [#allocation4], 0  ;;  %s1175_s21 = smov 0   ;;  %s1298_s0 = inlined_call_operand.vmem [shape: bf16[2,1024], index: 0, kind: input, shape index: {}]   ;;  %s1299_s1 = inlined_call_operand.vmem [shape: bf16[1024,128], index: 1, kind: input, shape index: {}]   ;;  %s1300_s2 = inlined_call_operand.vmem [shape: bf16[2,128], index: 2, kind: input, shape index: {}]   ;;  %s1301_s3 = inlined_call_operand.vmem [shape: bf16[128,128], index: 3, kind: input, shape index: {}]   ;;  %s1302_s4 = inlined_call_operand.vmem [shape: bf16[128,128], index: 4, kind: input, shape index: {}]   ;;  %s1303_s5 = inlined_call_operand.vmem [shape: f32[1,128], index: 5, kind: input, shape index: {}]   ;;  %s1304_s6 = inlined_call_operand.hbm [shape: f32[2,128], index: 6, kind: output, shape index: {}]  }
   0x1 LB: > { %s1181_s22 = sadd.s32 4294967295, %s1136_s21   ;;  %p827_p0 = scmp.ge.s32.totalorder %s1136_s21, 1  ;;  %s1136_s21 = sphi %s1175_s21, %s17_s21  }
   0x2   : > { %p219_p1 = scmp.lt.s32.totalorder %s1136_s21, 3 }
   0x4   : > { %p220_p2 = pnand %p827_p0, %p219_p1 }
   0x5   : > { %s828_s23 = sshll.u32 (!%p220_p2), %s1181_s22, 2  ;;  %s829_s24 = sshll.u32 (!%p220_p2), %s1181_s22, 6 }
   0x6   : > { %223 = sbr.rel (%p220_p2) target bundleno = 622 (0x26e), region = 44  ;;  %p249_p3 = scmp.lt.s32.totalorder (!%p220_p2), %s828_s23, 7 }
   0x7   : > { %p254_p4 = scmp.lt.s32.totalorder (!%p220_p2), %s829_s24, 127  ;;  %p831_p5 = scmp.ne.s32.totalorder (!%p220_p2), %s1181_s22, 0 }
   0xb   : > { %s1306_s23 = smov (!%p249_p3, %s828_s23), 7  ;;  %s1308_s24 = smov (!%p254_p4, %s829_s24), 127 }
   0xc   : > { %s251_s27 = scalar_lea.vmem %s1298_s0, %s1306_s23  ;;  %s830_s28 = sshll.u32 %s1308_s24, 2 }
   0xd   : > { %s1196_s7 = scalar_lea.vmem %s1299_s1, %s830_s28  ;;  %262 = sbr.rel (%p831_p5) target bundleno = 20 (0x14), region = 48 }
  0x12   : > { %v1138_v0 = vmov 0.0  }
  0x13   : > { %263 = vst [vmem:[#allocation2] sm:$0x3] %v1138_v0 }
  0x14 PF: > { %v1036_v1 = vld [vmem:[%s1196_s7 + $0x38] sm:$0xff]  ;;  %v1035_v5 = vld [vmem:[%s1196_s7 + $0x30] sm:$0xff]  ;;  %v1034_v9 = vld [vmem:[%s1196_s7 + $0x28] sm:$0xff]  ;;  %p960_p6 = scmp.ne.s32.totalorder %s1181_s22, 1 }
  0x15   : > { %v1044_v2 = vld [vmem:[%s1196_s7 + $0x78] sm:$0xff]  ;;  %532 = vmatpush.bf16.msra.mxu0 %v1036_v1  ;;  %v1043_v6 = vld [vmem:[%s1196_s7 + $0x70] sm:$0xff]  ;;  %v1042_v10 = vld [vmem:[%s1196_s7 + $0x68] sm:$0xff] }
  0x16   : > { %v1052_v3 = vld [vmem:[%s1196_s7 + $0xb8] sm:$0xff]  ;;  %545 = vmatpush.bf16.msra.mxu1 %v1044_v2  ;;  %v1051_v7 = vld [vmem:[%s1196_s7 + $0xb0] sm:$0xff]  ;;  %v1050_v11 = vld [vmem:[%s1196_s7 + $0xa8] sm:$0xff] }
  0x17   : > { %v1060_v4 = vld [vmem:[%s1196_s7 + $0xf8] sm:$0xff]  ;;  %558 = vmatpush.bf16.msra.mxu2 %v1052_v3  ;;  %v1059_v8 = vld [vmem:[%s1196_s7 + $0xf0] sm:$0xff]  ;;  %v1058_v12 = vld [vmem:[%s1196_s7 + $0xe8] sm:$0xff] }
  0x18   : > { %571 = vmatpush.bf16.msra.mxu3 %v1060_v4  ;;  %v1033_v13 = vld [vmem:[%s1196_s7 + $0x20] sm:$0xff]  ;;  %v1032_v18 = vld [vmem:[%s1196_s7 + $0x18] sm:$0xff]  ;;  %v1031_v22 = vld [vmem:[%s1196_s7 + $0x10] sm:$0xff] }
  0x19   : > { %533 = vmatpush.bf16.msra.mxu0 %v1035_v5  ;;  %v1041_v14 = vld [vmem:[%s1196_s7 + $0x60] sm:$0xff]  ;;  %v1040_v19 = vld [vmem:[%s1196_s7 + $0x58] sm:$0xff]  ;;  %v1039_v23 = vld [vmem:[%s1196_s7 + $0x50] sm:$0xff] }
  0x1a   : > { %546 = vmatpush.bf16.msra.mxu1 %v1043_v6  ;;  %v265_v15 = vld [vmem:[%s251_s27] sm:$0xf]  ;;  %v1048_v20 = vld [vmem:[%s1196_s7 + $0x98] sm:$0xff]  ;;  %v1047_v24 = vld [vmem:[%s1196_s7 + $0x90] sm:$0xff] }
  0x1b   : > { %559 = vmatpush.bf16.msra.mxu2 %v1051_v7  ;;  %v1049_v16 = vld [vmem:[%s1196_s7 + $0xa0] sm:$0xff]  ;;  %331 = vst [vmem:[#allocation1] ss:$9 sm:$0xff] %v265_v15  ;;  %v1056_v21 = vld [vmem:[%s1196_s7 + $0xd8] sm:$0xff]  ;;  %v1055_v25 = vld [vmem:[%s1196_s7 + $0xd0] sm:$0xff] }
  0x1c   : > { %572 = vmatpush.bf16.msra.mxu3 %v1059_v8  ;;  %v1057_v17 = vld [vmem:[%s1196_s7 + $0xe0] sm:$0xff]  ;;  %v1030_v26 = vld [vmem:[%s1196_s7 + $0x8] sm:$0xff] }
  0x1d   : > { %534 = vmatpush.bf16.msra.mxu0 %v1034_v9  ;;  %v1038_v27 = vld [vmem:[%s1196_s7 + $0x48] sm:$0xff]  ;;  %v1029_v30 = vld [vmem:[%s1196_s7] sm:$0xff] }
  0x1e   : > { %547 = vmatpush.bf16.msra.mxu1 %v1042_v10  ;;  %v1046_v28 = vld [vmem:[%s1196_s7 + $0x88] sm:$0xff]  ;;  %v1037_v31 = vld [vmem:[%s1196_s7 + $0x40] sm:$0xff] }
  0x1f   : > { %560 = vmatpush.bf16.msra.mxu2 %v1050_v11  ;;  %v1054_v29 = vld [vmem:[%s1196_s7 + $0xc8] sm:$0xff]  ;;  %v1045_v32 = vld [vmem:[%s1196_s7 + $0x80] sm:$0xff] }
  0x20   : > { %573 = vmatpush.bf16.msra.mxu3 %v1058_v12  ;;  %v1053_v33 = vld [vmem:[%s1196_s7 + $0xc0] sm:$0xff]  ;;  %v264_v46 = vld [vmem:[#allocation2] sm:$0x3] }
  0x21   : > { %535 = vmatpush.bf16.msra.mxu0 %v1033_v13 }
  0x22   : > { %548 = vmatpush.bf16.msra.mxu1 %v1041_v14  ;;  %v332_v34 = vld [vmem:[#allocation1] sm:$0xff]  ;;  %v333_v35 = vld [vmem:[#allocation1 + $0x9] sm:$0xff]  ;;  %v334_v36 = vld [vmem:[#allocation1 + $0x12] sm:$0xff] }
  0x23   : > { %561 = vmatpush.bf16.msra.mxu2 %v1049_v16  ;;  %v335_v37 = vld [vmem:[#allocation1 + $0x1b] sm:$0xff] }
  0x24   : > { %574 = vmatpush.bf16.msra.mxu3 %v1057_v17 }
  0x25   : > { %536 = vmatpush.bf16.msra.mxu0 %v1032_v18 }
  0x26   : > { %549 = vmatpush.bf16.msra.mxu1 %v1040_v19 }
  0x27   : > { %562 = vmatpush.bf16.msra.mxu2 %v1048_v20 }
  0x28   : > { %575 = vmatpush.bf16.msra.mxu3 %v1056_v21 }
  0x29   : > { %537 = vmatpush.bf16.msra.mxu0 %v1031_v22 }
  0x2a   : > { %550 = vmatpush.bf16.msra.mxu1 %v1039_v23 }
  0x2b   : > { %563 = vmatpush.bf16.msra.mxu2 %v1047_v24 }
  0x2c   : > { %576 = vmatpush.bf16.msra.mxu3 %v1055_v25 }
  0x2d   : > { %538 = vmatpush.bf16.msra.mxu0 %v1030_v26 }
  0x2e   : > { %551 = vmatpush.bf16.msra.mxu1 %v1038_v27 }
  0x2f   : > { %564 = vmatpush.bf16.msra.mxu2 %v1046_v28 }
  0x30   : > { %577 = vmatpush.bf16.msra.mxu3 %v1054_v29 }
  0x31   : > { %539 = vmatpush.bf16.msra.mxu0 %v1029_v30 }
  0x32   : > { %552 = vmatpush.bf16.msra.mxu1 %v1037_v31 }
  0x33   : > { %565 = vmatpush.bf16.msra.mxu2 %v1045_v32 }
  0x34   : > { %578 = vmatpush.bf16.msra.mxu3 %v1053_v33  ;;  %540 = vmatmul.bf16.vlgmr.msra.gmra.mxu0 %v332_v34 }
  0x35   : > { %553 = vmatmul.bf16.vlgmr.msra.gmra.mxu1 %v333_v35 }
  0x36   : > { %566 = vmatmul.bf16.vlgmr.msra.gmra.mxu2 %v334_v36 }
  0x37   : > { %579 = vmatmul.bf16.vlgmr.msra.gmra.mxu3 %v335_v37 }
  0xb1   : > { %v541_v38 = vpop.f32.mrf.mxu0 }
  0xb2   : > { %v554_v39 = vpop.f32.mrf.mxu1 }
  0xb3   : > { %v555_v40 = vadd.f32 %v554_v39, %v541_v38 }
  0xb9   : > { %v567_v41 = vpop.f32.mrf.mxu2  ;;  %v543_v44 = vpop.f32.mrf.mxu0 }
  0xba   : > { %v580_v42 = vpop.f32.mrf.mxu3  ;;  %v568_v43 = vadd.f32 %v567_v41, %v555_v40  ;;  %v556_v45 = vpop.f32.mrf.mxu1 }
  0xbc   : > { %v581_v47 = vadd.f32 %v580_v42, %v568_v43 }
  0xbe   : > { %v584_v48 = vadd.f32 %v581_v47, %v264_v46  ;;  %589 = sbr.rel (%p960_p6) target bundleno = 617 (0x269), region = 52 }
  0xc0   : > { %585 = vst [vmem:[#allocation2] sm:$0x3] %v584_v48 }
  0xc1   : > { %v569_v49 = vpop.f32.mrf.mxu2 }
  0xc2   : > { %v582_v50 = vpop.f32.mrf.mxu3 }
  0xc3   : > { %v1076_v51 = vld [vmem:[%s1302_s4 + $0x38] sm:$0xff]  ;;  %v1075_v53 = vld [vmem:[%s1302_s4 + $0x30] sm:$0xff]  ;;  %v1074_v55 = vld [vmem:[%s1302_s4 + $0x28] sm:$0xff]  ;;  %vm752_vm0 = vcmask 1041408  }
  0xc4   : > { %v1068_v52 = vld [vmem:[%s1301_s3 + $0x38] sm:$0xff]  ;;  %673 = vmatpush.bf16.msra.mxu0 %v1076_v51  ;;  %v1067_v54 = vld [vmem:[%s1301_s3 + $0x30] sm:$0xff]  ;;  %v1066_v56 = vld [vmem:[%s1301_s3 + $0x28] sm:$0xff] }
  0xc5   : > { %734 = vmatpush.bf16.msra.mxu1 %v1068_v52  ;;  %v1073_v57 = vld [vmem:[%s1302_s4 + $0x20] sm:$0xff]  ;;  %v1072_v59 = vld [vmem:[%s1302_s4 + $0x18] sm:$0xff]  ;;  %v1071_v61 = vld [vmem:[%s1302_s4 + $0x10] sm:$0xff] }
  0xc6   : > { %v1065_v58 = vld [vmem:[%s1301_s3 + $0x20] sm:$0xff]  ;;  %v1064_v60 = vld [vmem:[%s1301_s3 + $0x18] sm:$0xff]  ;;  %v1063_v62 = vld [vmem:[%s1301_s3 + $0x10] sm:$0xff] }
  0xc7   : > { %v1070_v63 = vld [vmem:[%s1302_s4 + $0x8] sm:$0xff]  ;;  %v1069_v1 = vld [vmem:[%s1302_s4] sm:$0xff] }
  0xc8   : > { %674 = vmatpush.bf16.msra.mxu0 %v1075_v53  ;;  %v1062_v0 = vld [vmem:[%s1301_s3 + $0x8] sm:$0xff]  ;;  %v1061_v2 = vld [vmem:[%s1301_s3] sm:$0xff] }
  0xc9   : > { %735 = vmatpush.bf16.msra.mxu1 %v1067_v54  ;;  %v590_v3 = vld [vmem:[#allocation2] sm:$0x3]  ;;  %v608_v5 = vld [vmem:[%s1300_s2] sm:$0x1] }
  0xca   : > { %v591_v4 = vpack.c.bf16 %v590_v3, %v590_v3  ;;  %v1093_v6 = vld [vmem:[%s1303_s5] ss:$0 sm:$0xff] }
  0xcc   : > { %675 = vmatpush.bf16.msra.mxu0 %v1074_v55 }
  0xcd   : > { %736 = vmatpush.bf16.msra.mxu1 %v1066_v56 }
  0xd0   : > { %676 = vmatpush.bf16.msra.mxu0 %v1073_v57 }
  0xd1   : > { %737 = vmatpush.bf16.msra.mxu1 %v1065_v58 }
  0xd4   : > { %677 = vmatpush.bf16.msra.mxu0 %v1072_v59 }
  0xd5   : > { %738 = vmatpush.bf16.msra.mxu1 %v1064_v60 }
  0xd8   : > { %678 = vmatpush.bf16.msra.mxu0 %v1071_v61 }
  0xd9   : > { %739 = vmatpush.bf16.msra.mxu1 %v1063_v62 }
  0xdc   : > { %679 = vmatpush.bf16.msra.mxu0 %v1070_v63 }
  0xdd   : > { %740 = vmatpush.bf16.msra.mxu1 %v1062_v0 }
  0xe0   : > { %680 = vmatpush.bf16.msra.mxu0 %v1069_v1 }
  0xe1   : > { %741 = vmatpush.bf16.msra.mxu1 %v1061_v2 }
  0xe3   : > { %681 = vmatmul.bf16.vlgmr.msra.gmra.mxu0 %v608_v5 }
  0xe4   : > { %742 = vmatmul.bf16.vlgmr.msra.gmra.mxu1 %v591_v4 }
 0x160   : > { %v682_v7 = vpop.f32.mrf.mxu0 }
 0x161   : > { %v743_v8 = vpop.f32.mrf.mxu1 }
 0x162   : > { %v744_v9 = vadd.f32 %v743_v8, %v682_v7 }
 0x164   : > { %v751_v10 = vadd.f32 %v1093_v6, %v744_v9 }
 0x166   : > { %v753_v11 = vsel %vm752_vm0, %v751_v10, -inf }
 0x167   : > { %754 = vmax.xlane.f32.xlu0 %v753_v11 }
 0x168   : > { %v684_v12 = vpop.f32.mrf.mxu0 }
 0x169   : > { %v745_v13 = vpop.f32.mrf.mxu1 }
 0x1da   : > { %v755_v14 = vpop.xlane.xlu0 %754 }
 0x1db   : > { %v756_v15 = vsub.f32 %v751_v10, %v755_v14 }
 0x1dd   : > { %v757_v16 = vmul.f32 1.442695, %v756_v15 }
 0x1df   : > { %1094 = vpow2.f32 %v757_v16 }
 0x1e5   : > { %v1095_v17 = vpop.eup %1094 }
 0x1e6   : > { %v759_v18 = vsel %vm752_vm0, %v1095_v17, 0.0 }
 0x1e7   : > { %760 = vadd.xlane.f32.xlu0 %v759_v18 }
 0x25a   : > { %v761_v19 = vpop.xlane.xlu0 %760 }
 0x25b   : > { %1096 = vlog2.f32 %v761_v19 }
 0x261   : > { %v1097_v20 = vpop.eup %1096 }
 0x262   : > { %v763_v21 = vmul.f32 0.6931472, %v1097_v20 }
 0x264   : > { %v764_v22 = vadd.f32 %v763_v21, %v755_v14 }
 0x266   : > { %v765_v23 = vsub.f32 %v751_v10, %v764_v22 }
 0x268   : > { %766 = vst [vmem:[#allocation3] sm:$0x3] %v765_v23 }
 0x269 PF: > { %p1081_p7 = scmp.eq.s32.totalorder %s1181_s22, 1  ;;  %s1139_s26 = smov [#allocation3]  }
 0x26a   : > { %s773_s27 = sshll.u32 %s1139_s26, 4  ;;  %s775_s30 = sshll.u32 %s1304_s6, 4  ;;  %s774_s27 = int_to_ptr.vmem [resolvable:$true] %s773_s27  ;;  %s776_s30 = int_to_ptr.hbm [resolvable:$true] %s775_s30 }
 0x26b   : > { %1078 = dma.vmem_to_hbm [thread:$0]  (%p1081_p7), %s774_s27, 32, %s776_s30, [#allocation4]  }
 0x26c   : > { %1131 = dma.done.wait (%p1081_p7), [#allocation4], 32  }
 0x26d   : > { %1133 = vsyncadd (%p1081_p7), [#allocation4], 4294967264 }
 0x26e PF: > { %s17_s21 = sadd.s32 1, %s1136_s21  }
 0x26f   : > { %p14_p8 = scmp.ge.s32.totalorder %s17_s21, 4  }
 0x271   :  { %16 = sbr.rel (!%p14_p8) target bundleno = 1 (0x1), region = 82 }
 0x276   :  { %789 = vsyncpa [#allocation4], 1 }
 0x277   :  { %791 = vsyncpa [#allocation4 + $0x1], 1 }

</bundles_post_ra>
